<compile_context>
chip_gen: v6e
topology: v6e:2x2x1
jax: 0.10.0
libtpu: 0.0.40
codegen_flags: <defaults>
</compile_context>

<pallas_src>
import jax
import jax.numpy as jnp
from jax import lax
from jax.experimental import pallas as pl
from jax.experimental.pallas import tpu as pltpu

_EPS = 1e-5
_GUARD = 16  # pair-aligned guard rows around the staged scratch


def _leaky(x, slope=0.1):
    return jnp.where(x >= 0, x, slope * x)


def _round_up(n, m):
    return ((n + m - 1) // m) * m


def _vmem_limit_bytes():
    # ~48 MiB on v7x (64 MiB physical), ~96 MiB on v5e/v6e (128 MiB physical).
    try:
        cap = pltpu.get_tpu_info().vmem_capacity_bytes
        return min(int(cap * 3 // 4), 100 * 1024 * 1024)
    except Exception:
        return 48 * 1024 * 1024


def _pick_strip_h(H, W, Cin_p, Cmid_p, Cout_p, fused_cols, budget_bytes):
    """Largest strip height dividing H whose working set fits the VMEM budget."""
    weights = (Cin_p * fused_cols + 9 * Cmid_p * Cout_p) * 2 + (Cmid_p + 2 * Cout_p) * 4
    best = 1
    for sh in range(1, H + 1):
        if H % sh:
            continue
        need = (weights
                + (sh + 2) * W * Cin_p * 2                    # x strip window (bf16)
                + ((sh + 2) * W + 2 * _GUARD) * Cmid_p * 2    # staged conv1 (bf16)
                + sh * W * Cout_p * 4                         # f32 conv2 accumulator
                + 2 * sh * W * Cout_p * 4)                    # double-buffered out block
        if need <= budget_bytes:
            best = sh
    return best


# ----------------------------------------------------------------------------
# Pallas kernel
# ----------------------------------------------------------------------------
def _make_kernel(SH, W, Cin_p, Cmid_p, Cout_p, has_downsample, scratch_dtype):
    """conv1(1x1)+bn1+leaky -> conv2(3x3,pad1)+bn2 -> (+residual) -> leaky."""
    SWIN = (SH + 2) * W   # strip + one halo row each side, flattened rows*W
    SOUT = SH * W

    def kernel(x_hbm, w1d_ref, b1_ref, w2_ref, b2_ref, *rest):
        if has_downsample:
            bd_ref, out_ref, xbuf, pad_ref, acc_ref, sem = rest
        else:
            out_ref, xbuf, pad_ref, acc_ref, sem = rest

        n = pl.program_id(0)
        s = pl.program_id(1)

        # --- fetch the (SH+2)-row input window (strip + halo) from HBM ------
        # x is pre-padded with one zero row top/bottom, so the window is
        # always in bounds.
        cp = pltpu.make_async_copy(x_hbm.at[n, pl.ds(s * SH, SH + 2)], xbuf, sem)
        cp.start()

        # One-time guard-row init (gated per perf review; the only guard reads
        # below are jnp.where-masked, so this is belt-and-suspenders).
        @pl.when((n == 0) & (s == 0))
        def _():
            pad_ref[pl.ds(0, _GUARD), :] = jnp.zeros((_GUARD, Cmid_p), scratch_dtype)
            pad_ref[pl.ds(_GUARD + SWIN, _GUARD), :] = jnp.zeros(
                (_GUARD, Cmid_p), scratch_dtype)

        cp.wait()
        xw = xbuf[...].reshape(SWIN, Cin_p)            # bf16, (rows*W, Cin_p)

        # --- fused 1x1 stage: conv1 (+ downsample) in a single MXU pass -----
        full = jnp.dot(xw, w1d_ref[...], preferred_element_type=jnp.float32)
        h = _leaky(full[:, :Cmid_p] + b1_ref[...])
        pad_ref[pl.ds(_GUARD, SWIN), :] = h.astype(scratch_dtype)  # one store

        # conv2's zero padding at the image border (top / bottom halo rows).
        @pl.when(s == 0)
        def _():
            pad_ref[pl.ds(_GUARD, W), :] = jnp.zeros((W, Cmid_p), scratch_dtype)

        @pl.when(s == pl.num_programs(1) - 1)
        def _():
            pad_ref[pl.ds(_GUARD + (SH + 1) * W, W), :] = jnp.zeros(
                (W, Cmid_p), scratch_dtype)

        # --- residual branch seeds the conv2 accumulator (+ bn2 bias) -------
        if has_downsample:
            res = full[W:(SH + 1) * W, Cmid_p:] + bd_ref[...]
        else:
            res = xw[W:(SH + 1) * W, :].astype(jnp.float32)
        acc_ref[...] = res + b2_ref[...]

        # --- conv2 (3x3, stride 1, pad 1) as 9 shifted MXU matmuls ----------
        col = lax.broadcasted_iota(jnp.int32, (SOUT, 1), 0) % W
        ml = col != 0          # dx=0 taps: out-of-image left column
        mr = col != W - 1      # dx=2 taps: out-of-image right column
        for dy in range(3):
            for dx in range(3):
                off = _GUARD + dy * W + (dx - 1)        # static offset
                win = pad_ref[pl.ds(off, SOUT), :]      # contiguous window
                if dx == 0:
                    win = jnp.where(ml, win, 0)
                elif dx == 2:
                    win = jnp.where(mr, win, 0)
                acc_ref[...] += jnp.dot(win.astype(jnp.bfloat16),
                                        w2_ref[dy * 3 + dx],
                                        preferred_element_type=jnp.float32)

        out_ref[0] = _leaky(acc_ref[...]).reshape(SH, W, Cout_p).astype(out_ref.dtype)

    return kernel


# ----------------------------------------------------------------------------
# Wrapper (param massaging in plain JAX, hot path in Pallas)
# ----------------------------------------------------------------------------
def _fold_bn(gamma, beta, mean, var, eps=_EPS):
    scale = gamma / jnp.sqrt(var + eps)
    bias = beta - mean * scale
    return scale.astype(jnp.float32), bias.astype(jnp.float32)


def darknet_residual_block(x_nchw, params, *, strip_h=None, out_dtype=jnp.float32):
    N, Cin, H, W = x_nchw.shape
    Cmid = params["w1"].shape[0]
    Cout = params["w2"].shape[0]
    has_downsample = "wd" in params
    assert has_downsample or Cin == Cout, "identity residual requires Cin == Cout"

    Cin_p = _round_up(Cin, 128)
    Cmid_p = _round_up(Cmid, 128)
    Cout_p = _round_up(Cout, 128)

    # NCHW f32 -> NHWC bf16, channels lane-padded to 128, one zero row added
    # top/bottom so every strip can DMA a fixed-size (SH+2)-row window.
    x = jnp.transpose(x_nchw, (0, 2, 3, 1))
    x = jnp.pad(x, ((0, 0), (1, 1), (0, 0), (0, Cin_p - Cin))).astype(jnp.bfloat16)

    # Fold BN scale into conv weights; keep bias separate; bf16 weights.
    s1, b1 = _fold_bn(*params["bn1"])
    s2, b2 = _fold_bn(*params["bn2"])

    w1 = (params["w1"][:, :, 0, 0] * s1[:, None]).T                 # (Cin, Cmid)
    w1 = jnp.pad(w1, ((0, Cin_p - Cin), (0, Cmid_p - Cmid)))
    if has_downsample:
        sd, bd = _fold_bn(*params["bnd"])
        wd = (params["wd"][:, :, 0, 0] * sd[:, None]).T             # (Cin, Cout)
        wd = jnp.pad(wd, ((0, Cin_p - Cin), (0, Cout_p - Cout)))
        w1d = jnp.concatenate([w1, wd], axis=1).astype(jnp.bfloat16)  # fused 1x1
        bd = jnp.pad(bd, (0, Cout_p - Cout)).reshape(1, Cout_p)
    else:
        w1d = w1.astype(jnp.bfloat16)
    b1 = jnp.pad(b1, (0, Cmid_p - Cmid)).reshape(1, Cmid_p)

    w2 = params["w2"] * s2[:, None, None, None]                     # (Cout, Cmid, 3, 3)
    w2 = jnp.transpose(w2, (2, 3, 1, 0)).reshape(9, Cmid, Cout)     # tap-major
    w2 = jnp.pad(w2, ((0, 0), (0, Cmid_p - Cmid), (0, Cout_p - Cout))).astype(jnp.bfloat16)
    b2 = jnp.pad(b2, (0, Cout_p - Cout)).reshape(1, Cout_p)

    fused_cols = w1d.shape[1]
    vmem_limit = _vmem_limit_bytes()
    SH = strip_h if strip_h is not None else _pick_strip_h(
        H, W, Cin_p, Cmid_p, Cout_p, fused_cols, int(vmem_limit * 0.8))
    assert H % SH == 0, "strip height must divide H"
    n_strips = H // SH

    args = [x, w1d, b1, w2, b2]
    if has_downsample:
        args.append(bd)

    def run(scratch_dtype, use_buffered):
        def wspec(shape):
            idx = lambda n, s: (0,) * len(shape)       # grid-invariant operand
            if use_buffered:
                return pl.BlockSpec(shape, idx, pipeline_mode=pl.Buffered(1))
            return pl.BlockSpec(shape, idx)

        in_specs = [
            pl.BlockSpec(memory_space=pl.ANY),         # x stays in HBM (manual DMA)
            wspec((Cin_p, fused_cols)),
            wspec((1, Cmid_p)),
            wspec((9, Cmid_p, Cout_p)),
            wspec((1, Cout_p)),
        ]
        if has_downsample:
            in_specs.append(wspec((1, Cout_p)))

        return pl.pallas_call(
            _make_kernel(SH, W, Cin_p, Cmid_p, Cout_p, has_downsample, scratch_dtype),
            out_shape=jax.ShapeDtypeStruct((N, H, W, Cout_p), out_dtype),
            grid=(N, n_strips),
            in_specs=in_specs,
            out_specs=pl.BlockSpec((1, SH, W, Cout_p), lambda n, s: (n, s, 0, 0)),
            scratch_shapes=[
                pltpu.VMEM((SH + 2, W, Cin_p), jnp.bfloat16),                    # x strip
                pltpu.VMEM(((SH + 2) * W + 2 * _GUARD, Cmid_p), scratch_dtype),  # staged conv1
                pltpu.VMEM((SH * W, Cout_p), jnp.float32),                       # conv2 acc
                pltpu.SemaphoreType.DMA,
            ],
            compiler_params=pltpu.CompilerParams(
                dimension_semantics=("parallel", "parallel"),
                vmem_limit_bytes=vmem_limit,
            ),
        )(*args)

    # Primary config per the perf review (bf16 staged scratch, single-buffered
    # invariant weights); fall back to the rev-2-proven lowering (f32 scratch,
    # default buffering) on toolchains that reject either feature.
    try:
        out_nhwc = run(jnp.bfloat16, True)
        jax.block_until_ready(out_nhwc)
    except Exception:
        out_nhwc = run(jnp.float32, False)

    out = out_nhwc[..., :Cout].astype(jnp.float32)     # strip lane padding
    return jnp.transpose(out, (0, 3, 1, 2))            # back to NCHW


# ----------------------------------------------------------------------------
# Deterministic parameter init (shapes per the PyTorch module, stride=1)
# ----------------------------------------------------------------------------
def init_params(key, in_ch, out_ch):
    mid = out_ch // 2
    ks = jax.random.split(key, 16)

    def bn_params(k0, k1, k2, k3, c):
        gamma = jax.random.uniform(k0, (c,), jnp.float32, 0.5, 1.5)
        beta = jax.random.normal(k1, (c,), jnp.float32) * 0.1
        mean = jax.random.normal(k2, (c,), jnp.float32) * 0.1
        var = jax.random.uniform(k3, (c,), jnp.float32, 0.5, 1.5)
        return (gamma, beta, mean, var)

    p = {
        "w1": jax.random.normal(ks[0], (mid, in_ch, 1, 1), jnp.float32) * 0.1,
        "bn1": bn_params(ks[1], ks[2], ks[3], ks[4], mid),
        "w2": jax.random.normal(ks[5], (out_ch, mid, 3, 3), jnp.float32) * 0.1,
        "bn2": bn_params(ks[6], ks[7], ks[8], ks[9], out_ch),
    }
    if in_ch != out_ch:  # stride fixed to 1 -> downsample iff channel change
        p["wd"] = jax.random.normal(ks[10], (out_ch, in_ch, 1, 1), jnp.float32) * 0.1
        p["bnd"] = bn_params(ks[11], ks[12], ks[13], ks[14], out_ch)
    return p


# ----------------------------------------------------------------------------
# Pure-JAX reference (mirrors the PyTorch forward, inference-mode BN, f32)
# ----------------------------------------------------------------------------
def ref_forward(x_nchw, p):
    def conv(x, w, padding):
        return lax.conv_general_dilated(
            x, w, (1, 1), padding, dimension_numbers=("NCHW", "OIHW", "NCHW"))

    def bn(x, gbmv):
        gamma, beta, mean, var = gbmv
        s = gamma / jnp.sqrt(var + _EPS)
        b = beta - mean * s
        return x * s[None, :, None, None] + b[None, :, None, None]

    out = _leaky(bn(conv(x_nchw, p["w1"], "VALID"), p["bn1"]))
    out = bn(conv(out, p["w2"], [(1, 1), (1, 1)]), p["bn2"])
    idn = x_nchw
    if "wd" in p:
        idn = bn(conv(x_nchw, p["wd"], "VALID"), p["bnd"])
    return _leaky(idn + out)


if __name__ == "__main__":
    key = jax.random.PRNGKey(0)
    kx1, kx2, kp1, kp2 = jax.random.split(key, 4)

    # bf16 MXU operands / bf16 residual path (f32 accumulation) vs pure-f32
    # reference -> slightly loosened tolerance.
    ATOL = RTOL = 3e-2

    # Case 1: in_channels != out_channels -> fused downsample branch; two
    # 8-row strips per image (exercises the H-strip grid + halo handling).
    x1 = jax.random.normal(kx1, (2, 4, 16, 16), jnp.float32)
    p1 = init_params(kp1, in_ch=4, out_ch=8)
    y1 = jax.block_until_ready(darknet_residual_block(x1, p1, strip_h=8))
    r1 = ref_forward(x1, p1)
    assert y1.shape == (2, 8, 16, 16)
    assert jnp.allclose(y1, r1, atol=ATOL, rtol=RTOL), "mismatch (downsample case)"

    # Case 2: in_channels == out_channels -> identity residual; auto strip
    # height and bf16 output store (halved HBM writeback when chained).
    x2 = jax.random.normal(kx2, (2, 8, 16, 16), jnp.float32)
    p2 = init_params(kp2, in_ch=8, out_ch=8)
    y2 = jax.block_until_ready(
        darknet_residual_block(x2, p2, out_dtype=jnp.bfloat16))
    r2 = ref_forward(x2, p2)
    assert y2.shape == (2, 8, 16, 16)
    assert jnp.allclose(y2, r2, atol=ATOL, rtol=RTOL), "mismatch (identity case)"

    print("KERNEL_OK")
</pallas_src>

<mosaic_0001>
module attributes {stable_mosaic.version = 11 : i64} {
  func.func @kernel(%arg0: i32, %arg1: i32, %arg2: memref<2x18x16x128xbf16, #tpu.memory_space<any>>, %arg3: memref<128x256xbf16, #tpu.memory_space<vmem>>, %arg4: memref<1x128xf32, #tpu.memory_space<vmem>>, %arg5: memref<9x128x128xbf16, #tpu.memory_space<vmem>>, %arg6: memref<1x128xf32, #tpu.memory_space<vmem>>, %arg7: memref<1x128xf32, #tpu.memory_space<vmem>>, %arg8: memref<1x8x16x128xf32, #tpu.memory_space<vmem>>, %arg9: memref<10x16x128xbf16, #tpu.memory_space<vmem>>, %arg10: memref<192x128xbf16, #tpu.memory_space<vmem>>, %arg11: memref<128x128xf32, #tpu.memory_space<vmem>>, %arg12: memref<!tpu.dma_semaphore, #tpu.memory_space<semaphore_mem>>) attributes {dimension_semantics = [#tpu.dimension_semantics<parallel>, #tpu.dimension_semantics<parallel>], iteration_bounds = array<i64: 2, 2>, scalar_prefetch = 0 : i64, scratch_operands = 4 : i64, tpu.core_type = #tpu.core_type<tc>, window_params = [{}, {pipeline_mode = #tpu.pipeline_mode<synchronous>, transform_indices = @transform_1, window_bounds = array<i64: 128, 256>}, {pipeline_mode = #tpu.pipeline_mode<synchronous>, transform_indices = @transform_2, window_bounds = array<i64: 1, 128>}, {pipeline_mode = #tpu.pipeline_mode<synchronous>, transform_indices = @transform_3, window_bounds = array<i64: 9, 128, 128>}, {pipeline_mode = #tpu.pipeline_mode<synchronous>, transform_indices = @transform_4, window_bounds = array<i64: 1, 128>}, {pipeline_mode = #tpu.pipeline_mode<synchronous>, transform_indices = @transform_5, window_bounds = array<i64: 1, 128>}, {transform_indices = @transform_6, window_bounds = array<i64: 1, 8, 16, 128>}]} {
    %c8_i32 = arith.constant 8 : i32
    %0 = arith.muli %arg1, %c8_i32 : i32
    %c0_i32 = arith.constant 0 : i32
    %c0_i32_0 = arith.constant 0 : i32
    %1 = tpu.memref_slice %arg2[%arg0, %0, %c0_i32, %c0_i32_0] : memref<2x18x16x128xbf16, #tpu.memory_space<any>> -> memref<1x10x16x128xbf16, #tpu.memory_space<any>>
    %2 = tpu.memref_squeeze %1 : memref<1x10x16x128xbf16, #tpu.memory_space<any>> -> memref<10x16x128xbf16, #tpu.memory_space<any>>
    tpu.enqueue_dma source(%2 : memref<10x16x128xbf16, #tpu.memory_space<any>>) target(%arg9 : memref<10x16x128xbf16, #tpu.memory_space<vmem>>) target_semaphore(%arg12 : memref<!tpu.dma_semaphore, #tpu.memory_space<semaphore_mem>>)
    %c0_i32_1 = arith.constant 0 : i32
    %3 = arith.cmpi eq, %arg0, %c0_i32_1 : i32
    %c0_i32_2 = arith.constant 0 : i32
    %4 = arith.cmpi eq, %arg1, %c0_i32_2 : i32
    %5 = arith.andi %3, %4 : i1
    %6 = arith.extui %5 : i1 to i32
    %c0_i32_3 = arith.constant 0 : i32
    %7 = arith.cmpi ne, %6, %c0_i32_3 : i32
    scf.if %7 {
      %cst_118 = arith.constant 0.000000e+00 : bf16
      %163 = vector.broadcast %cst_118 : bf16 to vector<16x128xbf16>
      %c0_119 = arith.constant 0 : index
      %c0_120 = arith.constant 0 : index
      %164 = vector.load %arg10[%c0_119, %c0_120] : memref<192x128xbf16, #tpu.memory_space<vmem>>, vector<16x128xbf16>
      tpu.vector_store %arg10[%c0_119, %c0_120], %163 {strides = array<i32>} : memref<192x128xbf16, #tpu.memory_space<vmem>>, vector<16x128xbf16>,
      %cst_121 = arith.constant 0.000000e+00 : bf16
      %165 = vector.broadcast %cst_121 : bf16 to vector<16x128xbf16>
      %c176 = arith.constant 176 : index
      %c0_122 = arith.constant 0 : index
      %166 = vector.load %arg10[%c176, %c0_122] : memref<192x128xbf16, #tpu.memory_space<vmem>>, vector<16x128xbf16>
      tpu.vector_store %arg10[%c176, %c0_122], %165 {strides = array<i32>} : memref<192x128xbf16, #tpu.memory_space<vmem>>, vector<16x128xbf16>,
    } else {
    }
    %c0_i32_4 = arith.constant 0 : i32
    %c0_i32_5 = arith.constant 0 : i32
    %8 = tpu.memref_slice %arg2[%arg0, %0, %c0_i32_4, %c0_i32_5] : memref<2x18x16x128xbf16, #tpu.memory_space<any>> -> memref<1x10x16x128xbf16, #tpu.memory_space<any>>
    %9 = tpu.memref_squeeze %8 : memref<1x10x16x128xbf16, #tpu.memory_space<any>> -> memref<10x16x128xbf16, #tpu.memory_space<any>>
    tpu.wait_dma2 semaphore(%arg12 : memref<!tpu.dma_semaphore, #tpu.memory_space<semaphore_mem>>) src(%9 : memref<10x16x128xbf16, #tpu.memory_space<any>>) dst(%arg9 : memref<10x16x128xbf16, #tpu.memory_space<vmem>>)
    %c0 = arith.constant 0 : index
    %c0_6 = arith.constant 0 : index
    %c0_7 = arith.constant 0 : index
    %10 = vector.load %arg9[%c0, %c0_6, %c0_7] : memref<10x16x128xbf16, #tpu.memory_space<vmem>>, vector<10x16x128xbf16>
    %11 = vector.shape_cast %10 : vector<10x16x128xbf16> to vector<160x128xbf16>
    %c0_8 = arith.constant 0 : index
    %c0_9 = arith.constant 0 : index
    %12 = vector.load %arg3[%c0_8, %c0_9] : memref<128x256xbf16, #tpu.memory_space<vmem>>, vector<128x256xbf16>
    %cst = arith.constant dense<0.000000e+00> : vector<160x256xf32>
    %13 = tpu.matmul %11, %12, %cst {dimension_numbers = #tpu.dot_dimension_numbers<[1], [0], [0], [1], [0, 0, 1, 1], [], []>} : vector<160x128xbf16>, vector<128x256xbf16>, vector<160x256xf32> -> vector<160x256xf32>
    %14 = vector.extract_strided_slice %13 {offsets = [0, 0], sizes = [160, 128], strides = [1, 1]} : vector<160x256xf32> to vector<160x128xf32>
    %c0_10 = arith.constant 0 : index
    %c0_11 = arith.constant 0 : index
    %15 = vector.load %arg4[%c0_10, %c0_11] : memref<1x128xf32, #tpu.memory_space<vmem>>, vector<1x128xf32>
    %16 = vector.broadcast %15 : vector<1x128xf32> to vector<160x128xf32>
    %17 = arith.addf %14, %16 : vector<160x128xf32>
    %cst_12 = arith.constant 0.000000e+00 : f32
    %18 = vector.broadcast %cst_12 : f32 to vector<160x128xf32>
    %19 = arith.cmpf oge, %17, %18 : vector<160x128xf32>
    %cst_13 = arith.constant 1.000000e-01 : f32
    %20 = vector.broadcast %cst_13 : f32 to vector<160x128xf32>
    %21 = arith.mulf %20, %17 : vector<160x128xf32>
    %22 = arith.select %19, %17, %21 : vector<160x128xi1>, vector<160x128xf32>
    %23 = arith.truncf %22 : vector<160x128xf32> to vector<160x128xbf16>
    %c16 = arith.constant 16 : index
    %c0_14 = arith.constant 0 : index
    %24 = vector.load %arg10[%c16, %c0_14] : memref<192x128xbf16, #tpu.memory_space<vmem>>, vector<160x128xbf16>
    tpu.vector_store %arg10[%c16, %c0_14], %23 {strides = array<i32>} : memref<192x128xbf16, #tpu.memory_space<vmem>>, vector<160x128xbf16>,
    %c0_i32_15 = arith.constant 0 : i32
    %25 = arith.cmpi eq, %arg1, %c0_i32_15 : i32
    %26 = arith.extui %25 : i1 to i32
    %c0_i32_16 = arith.constant 0 : i32
    %27 = arith.cmpi ne, %26, %c0_i32_16 : i32
    scf.if %27 {
      %cst_118 = arith.constant 0.000000e+00 : bf16
      %163 = vector.broadcast %cst_118 : bf16 to vector<16x128xbf16>
      %c16_119 = arith.constant 16 : index
      %c0_120 = arith.constant 0 : index
      %164 = vector.load %arg10[%c16_119, %c0_120] : memref<192x128xbf16, #tpu.memory_space<vmem>>, vector<16x128xbf16>
      tpu.vector_store %arg10[%c16_119, %c0_120], %163 {strides = array<i32>} : memref<192x128xbf16, #tpu.memory_space<vmem>>, vector<16x128xbf16>,
    } else {
    }
    %c1_i32 = arith.constant 1 : i32
    %28 = arith.cmpi eq, %arg1, %c1_i32 : i32
    %29 = arith.extui %28 : i1 to i32
    %c0_i32_17 = arith.constant 0 : i32
    %30 = arith.cmpi ne, %29, %c0_i32_17 : i32
    scf.if %30 {
      %cst_118 = arith.constant 0.000000e+00 : bf16
      %163 = vector.broadcast %cst_118 : bf16 to vector<16x128xbf16>
      %c160 = arith.constant 160 : index
      %c0_119 = arith.constant 0 : index
      %164 = vector.load %arg10[%c160, %c0_119] : memref<192x128xbf16, #tpu.memory_space<vmem>>, vector<16x128xbf16>
      tpu.vector_store %arg10[%c160, %c0_119], %163 {strides = array<i32>} : memref<192x128xbf16, #tpu.memory_space<vmem>>, vector<16x128xbf16>,
    } else {
    }
    %31 = vector.extract_strided_slice %13 {offsets = [16, 128], sizes = [128, 128], strides = [1, 1]} : vector<160x256xf32> to vector<128x128xf32>
    %c0_18 = arith.constant 0 : index
    %c0_19 = arith.constant 0 : index
    %32 = vector.load %arg7[%c0_18, %c0_19] : memref<1x128xf32, #tpu.memory_space<vmem>>, vector<1x128xf32>
    %33 = vector.broadcast %32 : vector<1x128xf32> to vector<128x128xf32>
    %34 = arith.addf %31, %33 : vector<128x128xf32>
    %c0_20 = arith.constant 0 : index
    %c0_21 = arith.constant 0 : index
    %35 = vector.load %arg6[%c0_20, %c0_21] : memref<1x128xf32, #tpu.memory_space<vmem>>, vector<1x128xf32>
    %36 = vector.broadcast %35 : vector<1x128xf32> to vector<128x128xf32>
    %37 = arith.addf %34, %36 : vector<128x128xf32>
    %c0_22 = arith.constant 0 : index
    %c0_23 = arith.constant 0 : index
    %38 = vector.load %arg11[%c0_22, %c0_23] : memref<128x128xf32, #tpu.memory_space<vmem>>, vector<128x128xf32>
    tpu.vector_store %arg11[%c0_22, %c0_23], %37 {strides = array<i32>} : memref<128x128xf32, #tpu.memory_space<vmem>>, vector<128x128xf32>,
    %39 = tpu.iota {dimensions = array<i32: 0>} : vector<128x1xi32>
    %c16_i32 = arith.constant 16 : i32
    %c0_i32_24 = arith.constant 0 : i32
    %40 = arith.cmpi eq, %c16_i32, %c0_i32_24 : i32
    %c1_i32_25 = arith.constant 1 : i32
    %41 = arith.select %40, %c1_i32_25, %c16_i32 : i32
    %42 = vector.broadcast %41 : i32 to vector<128x1xi32>
    %43 = arith.remsi %39, %42 : vector<128x1xi32>
    %c0_i32_26 = arith.constant 0 : i32
    %44 = vector.broadcast %c0_i32_26 : i32 to vector<128x1xi32>
    %45 = arith.cmpi ne, %43, %44 : vector<128x1xi32>
    %c0_i32_27 = arith.constant 0 : i32
    %46 = vector.broadcast %c0_i32_27 : i32 to vector<128x1xi32>
    %47 = arith.cmpi slt, %43, %46 : vector<128x1xi32>
    %c0_i32_28 = arith.constant 0 : i32
    %48 = arith.cmpi slt, %41, %c0_i32_28 : i32
    %49 = vector.broadcast %48 : i1 to vector<128x1xi1>
    %50 = vector.broadcast %49 : vector<128x1xi1> to vector<128x1xi1>
    %51 = arith.xori %47, %50 : vector<128x1xi1>
    %52 = arith.andi %51, %45 : vector<128x1xi1>
    %53 = vector.broadcast %41 : i32 to vector<128x1xi32>
    %54 = arith.addi %43, %53 : vector<128x1xi32>
    %55 = arith.select %52, %54, %43 : vector<128x1xi1>, vector<128x1xi32>
    %c0_i32_29 = arith.constant 0 : i32
    %56 = vector.broadcast %c0_i32_29 : i32 to vector<128x1xi32>
    %57 = arith.cmpi ne, %55, %56 : vector<128x1xi32>
    %c15_i32 = arith.constant 15 : i32
    %58 = vector.broadcast %c15_i32 : i32 to vector<128x1xi32>
    %59 = arith.cmpi ne, %55, %58 : vector<128x1xi32>
    %c15 = arith.constant 15 : index
    %c0_30 = arith.constant 0 : index
    %60 = vector.load %arg10[%c15, %c0_30] : memref<192x128xbf16, #tpu.memory_space<vmem>>, vector<128x128xbf16>
    %c0_i32_31 = arith.constant 0 : i32
    %61 = arith.sitofp %c0_i32_31 : i32 to bf16
    %62 = vector.shape_cast %57 : vector<128x1xi1> to vector<128x1xi1>
    %63 = vector.broadcast %62 : vector<128x1xi1> to vector<128x128xi1>
    %64 = vector.broadcast %61 : bf16 to vector<128x128xbf16>
    %65 = arith.select %63, %60, %64 : vector<128x128xi1>, vector<128x128xbf16>
    %c0_32 = arith.constant 0 : index
    %c0_33 = arith.constant 0 : index
    %66 = vector.load %arg11[%c0_32, %c0_33] : memref<128x128xf32, #tpu.memory_space<vmem>>, vector<128x128xf32>
    %c0_34 = arith.constant 0 : index
    %c0_35 = arith.constant 0 : index
    %c0_36 = arith.constant 0 : index
    %67 = vector.load %arg5[%c0_34, %c0_35, %c0_36] : memref<9x128x128xbf16, #tpu.memory_space<vmem>>, vector<1x128x128xbf16>
    %68 = vector.shape_cast %67 : vector<1x128x128xbf16> to vector<128x128xbf16>
    %cst_37 = arith.constant dense<0.000000e+00> : vector<128x128xf32>
    %69 = tpu.matmul %65, %68, %cst_37 {dimension_numbers = #tpu.dot_dimension_numbers<[1], [0], [0], [1], [0, 0, 1, 1], [], []>} : vector<128x128xbf16>, vector<128x128xbf16>, vector<128x128xf32> -> vector<128x128xf32>
    %70 = arith.addf %66, %69 : vector<128x128xf32>
    %c0_38 = arith.constant 0 : index
    %c0_39 = arith.constant 0 : index
    %71 = vector.load %arg11[%c0_38, %c0_39] : memref<128x128xf32, #tpu.memory_space<vmem>>, vector<128x128xf32>
    tpu.vector_store %arg11[%c0_38, %c0_39], %70 {strides = array<i32>} : memref<128x128xf32, #tpu.memory_space<vmem>>, vector<128x128xf32>,
    %c16_40 = arith.constant 16 : index
    %c0_41 = arith.constant 0 : index
    %72 = vector.load %arg10[%c16_40, %c0_41] : memref<192x128xbf16, #tpu.memory_space<vmem>>, vector<128x128xbf16>
    %c0_42 = arith.constant 0 : index
    %c0_43 = arith.constant 0 : index
    %73 = vector.load %arg11[%c0_42, %c0_43] : memref<128x128xf32, #tpu.memory_space<vmem>>, vector<128x128xf32>
    %c1 = arith.constant 1 : index
    %c0_44 = arith.constant 0 : index
    %c0_45 = arith.constant 0 : index
    %74 = vector.load %arg5[%c1, %c0_44, %c0_45] : memref<9x128x128xbf16, #tpu.memory_space<vmem>>, vector<1x128x128xbf16>
    %75 = vector.shape_cast %74 : vector<1x128x128xbf16> to vector<128x128xbf16>
    %cst_46 = arith.constant dense<0.000000e+00> : vector<128x128xf32>
    %76 = tpu.matmul %72, %75, %cst_46 {dimension_numbers = #tpu.dot_dimension_numbers<[1], [0], [0], [1], [0, 0, 1, 1], [], []>} : vector<128x128xbf16>, vector<128x128xbf16>, vector<128x128xf32> -> vector<128x128xf32>
    %77 = arith.addf %73, %76 : vector<128x128xf32>
    %c0_47 = arith.constant 0 : index
    %c0_48 = arith.constant 0 : index
    %78 = vector.load %arg11[%c0_47, %c0_48] : memref<128x128xf32, #tpu.memory_space<vmem>>, vector<128x128xf32>
    tpu.vector_store %arg11[%c0_47, %c0_48], %77 {strides = array<i32>} : memref<128x128xf32, #tpu.memory_space<vmem>>, vector<128x128xf32>,
    %c17 = arith.constant 17 : index
    %c0_49 = arith.constant 0 : index
    %79 = vector.load %arg10[%c17, %c0_49] : memref<192x128xbf16, #tpu.memory_space<vmem>>, vector<128x128xbf16>
    %c0_i32_50 = arith.constant 0 : i32
    %80 = arith.sitofp %c0_i32_50 : i32 to bf16
    %81 = vector.shape_cast %59 : vector<128x1xi1> to vector<128x1xi1>
    %82 = vector.broadcast %81 : vector<128x1xi1> to vector<128x128xi1>
    %83 = vector.broadcast %80 : bf16 to vector<128x128xbf16>
    %84 = arith.select %82, %79, %83 : vector<128x128xi1>, vector<128x128xbf16>
    %c0_51 = arith.constant 0 : index
    %c0_52 = arith.constant 0 : index
    %85 = vector.load %arg11[%c0_51, %c0_52] : memref<128x128xf32, #tpu.memory_space<vmem>>, vector<128x128xf32>
    %c2 = arith.constant 2 : index
    %c0_53 = arith.constant 0 : index
    %c0_54 = arith.constant 0 : index
    %86 = vector.load %arg5[%c2, %c0_53, %c0_54] : memref<9x128x128xbf16, #tpu.memory_space<vmem>>, vector<1x128x128xbf16>
    %87 = vector.shape_cast %86 : vector<1x128x128xbf16> to vector<128x128xbf16>
    %cst_55 = arith.constant dense<0.000000e+00> : vector<128x128xf32>
    %88 = tpu.matmul %84, %87, %cst_55 {dimension_numbers = #tpu.dot_dimension_numbers<[1], [0], [0], [1], [0, 0, 1, 1], [], []>} : vector<128x128xbf16>, vector<128x128xbf16>, vector<128x128xf32> -> vector<128x128xf32>
    %89 = arith.addf %85, %88 : vector<128x128xf32>
    %c0_56 = arith.constant 0 : index
    %c0_57 = arith.constant 0 : index
    %90 = vector.load %arg11[%c0_56, %c0_57] : memref<128x128xf32, #tpu.memory_space<vmem>>, vector<128x128xf32>
    tpu.vector_store %arg11[%c0_56, %c0_57], %89 {strides = array<i32>} : memref<128x128xf32, #tpu.memory_space<vmem>>, vector<128x128xf32>,
    %c31 = arith.constant 31 : index
    %c0_58 = arith.constant 0 : index
    %91 = vector.load %arg10[%c31, %c0_58] : memref<192x128xbf16, #tpu.memory_space<vmem>>, vector<128x128xbf16>
    %c0_i32_59 = arith.constant 0 : i32
    %92 = arith.sitofp %c0_i32_59 : i32 to bf16
    %93 = vector.shape_cast %57 : vector<128x1xi1> to vector<128x1xi1>
    %94 = vector.broadcast %93 : vector<128x1xi1> to vector<128x128xi1>
    %95 = vector.broadcast %92 : bf16 to vector<128x128xbf16>
    %96 = arith.select %94, %91, %95 : vector<128x128xi1>, vector<128x128xbf16>
    %c0_60 = arith.constant 0 : index
    %c0_61 = arith.constant 0 : index
    %97 = vector.load %arg11[%c0_60, %c0_61] : memref<128x128xf32, #tpu.memory_space<vmem>>, vector<128x128xf32>
    %c3 = arith.constant 3 : index
    %c0_62 = arith.constant 0 : index
    %c0_63 = arith.constant 0 : index
    %98 = vector.load %arg5[%c3, %c0_62, %c0_63] : memref<9x128x128xbf16, #tpu.memory_space<vmem>>, vector<1x128x128xbf16>
    %99 = vector.shape_cast %98 : vector<1x128x128xbf16> to vector<128x128xbf16>
    %cst_64 = arith.constant dense<0.000000e+00> : vector<128x128xf32>
    %100 = tpu.matmul %96, %99, %cst_64 {dimension_numbers = #tpu.dot_dimension_numbers<[1], [0], [0], [1], [0, 0, 1, 1], [], []>} : vector<128x128xbf16>, vector<128x128xbf16>, vector<128x128xf32> -> vector<128x128xf32>
    %101 = arith.addf %97, %100 : vector<128x128xf32>
    %c0_65 = arith.constant 0 : index
    %c0_66 = arith.constant 0 : index
    %102 = vector.load %arg11[%c0_65, %c0_66] : memref<128x128xf32, #tpu.memory_space<vmem>>, vector<128x128xf32>
    tpu.vector_store %arg11[%c0_65, %c0_66], %101 {strides = array<i32>} : memref<128x128xf32, #tpu.memory_space<vmem>>, vector<128x128xf32>,
    %c32 = arith.constant 32 : index
    %c0_67 = arith.constant 0 : index
    %103 = vector.load %arg10[%c32, %c0_67] : memref<192x128xbf16, #tpu.memory_space<vmem>>, vector<128x128xbf16>
    %c0_68 = arith.constant 0 : index
    %c0_69 = arith.constant 0 : index
    %104 = vector.load %arg11[%c0_68, %c0_69] : memref<128x128xf32, #tpu.memory_space<vmem>>, vector<128x128xf32>
    %c4 = arith.constant 4 : index
    %c0_70 = arith.constant 0 : index
    %c0_71 = arith.constant 0 : index
    %105 = vector.load %arg5[%c4, %c0_70, %c0_71] : memref<9x128x128xbf16, #tpu.memory_space<vmem>>, vector<1x128x128xbf16>
    %106 = vector.shape_cast %105 : vector<1x128x128xbf16> to vector<128x128xbf16>
    %cst_72 = arith.constant dense<0.000000e+00> : vector<128x128xf32>
    %107 = tpu.matmul %103, %106, %cst_72 {dimension_numbers = #tpu.dot_dimension_numbers<[1], [0], [0], [1], [0, 0, 1, 1], [], []>} : vector<128x128xbf16>, vector<128x128xbf16>, vector<128x128xf32> -> vector<128x128xf32>
    %108 = arith.addf %104, %107 : vector<128x128xf32>
    %c0_73 = arith.constant 0 : index
    %c0_74 = arith.constant 0 : index
    %109 = vector.load %arg11[%c0_73, %c0_74] : memref<128x128xf32, #tpu.memory_space<vmem>>, vector<128x128xf32>
    tpu.vector_store %arg11[%c0_73, %c0_74], %108 {strides = array<i32>} : memref<128x128xf32, #tpu.memory_space<vmem>>, vector<128x128xf32>,
    %c33 = arith.constant 33 : index
    %c0_75 = arith.constant 0 : index
    %110 = vector.load %arg10[%c33, %c0_75] : memref<192x128xbf16, #tpu.memory_space<vmem>>, vector<128x128xbf16>
    %c0_i32_76 = arith.constant 0 : i32
    %111 = arith.sitofp %c0_i32_76 : i32 to bf16
    %112 = vector.shape_cast %59 : vector<128x1xi1> to vector<128x1xi1>
    %113 = vector.broadcast %112 : vector<128x1xi1> to vector<128x128xi1>
    %114 = vector.broadcast %111 : bf16 to vector<128x128xbf16>
    %115 = arith.select %113, %110, %114 : vector<128x128xi1>, vector<128x128xbf16>
    %c0_77 = arith.constant 0 : index
    %c0_78 = arith.constant 0 : index
    %116 = vector.load %arg11[%c0_77, %c0_78] : memref<128x128xf32, #tpu.memory_space<vmem>>, vector<128x128xf32>
    %c5 = arith.constant 5 : index
    %c0_79 = arith.constant 0 : index
    %c0_80 = arith.constant 0 : index
    %117 = vector.load %arg5[%c5, %c0_79, %c0_80] : memref<9x128x128xbf16, #tpu.memory_space<vmem>>, vector<1x128x128xbf16>
    %118 = vector.shape_cast %117 : vector<1x128x128xbf16> to vector<128x128xbf16>
    %cst_81 = arith.constant dense<0.000000e+00> : vector<128x128xf32>
    %119 = tpu.matmul %115, %118, %cst_81 {dimension_numbers = #tpu.dot_dimension_numbers<[1], [0], [0], [1], [0, 0, 1, 1], [], []>} : vector<128x128xbf16>, vector<128x128xbf16>, vector<128x128xf32> -> vector<128x128xf32>
    %120 = arith.addf %116, %119 : vector<128x128xf32>
    %c0_82 = arith.constant 0 : index
    %c0_83 = arith.constant 0 : index
    %121 = vector.load %arg11[%c0_82, %c0_83] : memref<128x128xf32, #tpu.memory_space<vmem>>, vector<128x128xf32>
    tpu.vector_store %arg11[%c0_82, %c0_83], %120 {strides = array<i32>} : memref<128x128xf32, #tpu.memory_space<vmem>>, vector<128x128xf32>,
    %c47 = arith.constant 47 : index
    %c0_84 = arith.constant 0 : index
    %122 = vector.load %arg10[%c47, %c0_84] : memref<192x128xbf16, #tpu.memory_space<vmem>>, vector<128x128xbf16>
    %c0_i32_85 = arith.constant 0 : i32
    %123 = arith.sitofp %c0_i32_85 : i32 to bf16
    %124 = vector.shape_cast %57 : vector<128x1xi1> to vector<128x1xi1>
    %125 = vector.broadcast %124 : vector<128x1xi1> to vector<128x128xi1>
    %126 = vector.broadcast %123 : bf16 to vector<128x128xbf16>
    %127 = arith.select %125, %122, %126 : vector<128x128xi1>, vector<128x128xbf16>
    %c0_86 = arith.constant 0 : index
    %c0_87 = arith.constant 0 : index
    %128 = vector.load %arg11[%c0_86, %c0_87] : memref<128x128xf32, #tpu.memory_space<vmem>>, vector<128x128xf32>
    %c6 = arith.constant 6 : index
    %c0_88 = arith.constant 0 : index
    %c0_89 = arith.constant 0 : index
    %129 = vector.load %arg5[%c6, %c0_88, %c0_89] : memref<9x128x128xbf16, #tpu.memory_space<vmem>>, vector<1x128x128xbf16>
    %130 = vector.shape_cast %129 : vector<1x128x128xbf16> to vector<128x128xbf16>
    %cst_90 = arith.constant dense<0.000000e+00> : vector<128x128xf32>
    %131 = tpu.matmul %127, %130, %cst_90 {dimension_numbers = #tpu.dot_dimension_numbers<[1], [0], [0], [1], [0, 0, 1, 1], [], []>} : vector<128x128xbf16>, vector<128x128xbf16>, vector<128x128xf32> -> vector<128x128xf32>
    %132 = arith.addf %128, %131 : vector<128x128xf32>
    %c0_91 = arith.constant 0 : index
    %c0_92 = arith.constant 0 : index
    %133 = vector.load %arg11[%c0_91, %c0_92] : memref<128x128xf32, #tpu.memory_space<vmem>>, vector<128x128xf32>
    tpu.vector_store %arg11[%c0_91, %c0_92], %132 {strides = array<i32>} : memref<128x128xf32, #tpu.memory_space<vmem>>, vector<128x128xf32>,
    %c48 = arith.constant 48 : index
    %c0_93 = arith.constant 0 : index
    %134 = vector.load %arg10[%c48, %c0_93] : memref<192x128xbf16, #tpu.memory_space<vmem>>, vector<128x128xbf16>
    %c0_94 = arith.constant 0 : index
    %c0_95 = arith.constant 0 : index
    %135 = vector.load %arg11[%c0_94, %c0_95] : memref<128x128xf32, #tpu.memory_space<vmem>>, vector<128x128xf32>
    %c7 = arith.constant 7 : index
    %c0_96 = arith.constant 0 : index
    %c0_97 = arith.constant 0 : index
    %136 = vector.load %arg5[%c7, %c0_96, %c0_97] : memref<9x128x128xbf16, #tpu.memory_space<vmem>>, vector<1x128x128xbf16>
    %137 = vector.shape_cast %136 : vector<1x128x128xbf16> to vector<128x128xbf16>
    %cst_98 = arith.constant dense<0.000000e+00> : vector<128x128xf32>
    %138 = tpu.matmul %134, %137, %cst_98 {dimension_numbers = #tpu.dot_dimension_numbers<[1], [0], [0], [1], [0, 0, 1, 1], [], []>} : vector<128x128xbf16>, vector<128x128xbf16>, vector<128x128xf32> -> vector<128x128xf32>
    %139 = arith.addf %135, %138 : vector<128x128xf32>
    %c0_99 = arith.constant 0 : index
    %c0_100 = arith.constant 0 : index
    %140 = vector.load %arg11[%c0_99, %c0_100] : memref<128x128xf32, #tpu.memory_space<vmem>>, vector<128x128xf32>
    tpu.vector_store %arg11[%c0_99, %c0_100], %139 {strides = array<i32>} : memref<128x128xf32, #tpu.memory_space<vmem>>, vector<128x128xf32>,
    %c49 = arith.constant 49 : index
    %c0_101 = arith.constant 0 : index
    %141 = vector.load %arg10[%c49, %c0_101] : memref<192x128xbf16, #tpu.memory_space<vmem>>, vector<128x128xbf16>
    %c0_i32_102 = arith.constant 0 : i32
    %142 = arith.sitofp %c0_i32_102 : i32 to bf16
    %143 = vector.shape_cast %59 : vector<128x1xi1> to vector<128x1xi1>
    %144 = vector.broadcast %143 : vector<128x1xi1> to vector<128x128xi1>
    %145 = vector.broadcast %142 : bf16 to vector<128x128xbf16>
    %146 = arith.select %144, %141, %145 : vector<128x128xi1>, vector<128x128xbf16>
    %c0_103 = arith.constant 0 : index
    %c0_104 = arith.constant 0 : index
    %147 = vector.load %arg11[%c0_103, %c0_104] : memref<128x128xf32, #tpu.memory_space<vmem>>, vector<128x128xf32>
    %c8 = arith.constant 8 : index
    %c0_105 = arith.constant 0 : index
    %c0_106 = arith.constant 0 : index
    %148 = vector.load %arg5[%c8, %c0_105, %c0_106] : memref<9x128x128xbf16, #tpu.memory_space<vmem>>, vector<1x128x128xbf16>
    %149 = vector.shape_cast %148 : vector<1x128x128xbf16> to vector<128x128xbf16>
    %cst_107 = arith.constant dense<0.000000e+00> : vector<128x128xf32>
    %150 = tpu.matmul %146, %149, %cst_107 {dimension_numbers = #tpu.dot_dimension_numbers<[1], [0], [0], [1], [0, 0, 1, 1], [], []>} : vector<128x128xbf16>, vector<128x128xbf16>, vector<128x128xf32> -> vector<128x128xf32>
    %151 = arith.addf %147, %150 : vector<128x128xf32>
    %c0_108 = arith.constant 0 : index
    %c0_109 = arith.constant 0 : index
    %152 = vector.load %arg11[%c0_108, %c0_109] : memref<128x128xf32, #tpu.memory_space<vmem>>, vector<128x128xf32>
    tpu.vector_store %arg11[%c0_108, %c0_109], %151 {strides = array<i32>} : memref<128x128xf32, #tpu.memory_space<vmem>>, vector<128x128xf32>,
    %c0_110 = arith.constant 0 : index
    %c0_111 = arith.constant 0 : index
    %153 = vector.load %arg11[%c0_110, %c0_111] : memref<128x128xf32, #tpu.memory_space<vmem>>, vector<128x128xf32>
    %cst_112 = arith.constant 0.000000e+00 : f32
    %154 = vector.broadcast %cst_112 : f32 to vector<128x128xf32>
    %155 = arith.cmpf oge, %153, %154 : vector<128x128xf32>
    %cst_113 = arith.constant 1.000000e-01 : f32
    %156 = vector.broadcast %cst_113 : f32 to vector<128x128xf32>
    %157 = arith.mulf %156, %153 : vector<128x128xf32>
    %158 = arith.select %155, %153, %157 : vector<128x128xi1>, vector<128x128xf32>
    %159 = vector.shape_cast %158 : vector<128x128xf32> to vector<8x16x128xf32>
    %c0_114 = arith.constant 0 : index
    %c0_115 = arith.constant 0 : index
    %c0_116 = arith.constant 0 : index
    %c0_117 = arith.constant 0 : index
    %160 = vector.load %arg8[%c0_114, %c0_115, %c0_116, %c0_117] : memref<1x8x16x128xf32, #tpu.memory_space<vmem>>, vector<1x8x16x128xf32>
    %161 = vector.shape_cast %160 : vector<1x8x16x128xf32> to vector<8x16x128xf32>
    %162 = vector.shape_cast %159 : vector<8x16x128xf32> to vector<1x8x16x128xf32>
    tpu.vector_store %arg8[%c0_114, %c0_115, %c0_116, %c0_117], %162 {strides = array<i32>} : memref<1x8x16x128xf32, #tpu.memory_space<vmem>>, vector<1x8x16x128xf32>,
    return
  }
  func.func @transform_1(%arg0: i32, %arg1: i32) -> (i32, i32) {
    %c0_i32 = arith.constant 0 : i32
    %c0_i32_0 = arith.constant 0 : i32
    %c0_i32_1 = arith.constant 0 : i32
    return %c0_i32, %c0_i32_0 : i32, i32
  }
  func.func @transform_2(%arg0: i32, %arg1: i32) -> (i32, i32) {
    %c0_i32 = arith.constant 0 : i32
    %c0_i32_0 = arith.constant 0 : i32
    %c0_i32_1 = arith.constant 0 : i32
    return %c0_i32, %c0_i32_0 : i32, i32
  }
  func.func @transform_3(%arg0: i32, %arg1: i32) -> (i32, i32, i32) {
    %c0_i32 = arith.constant 0 : i32
    %c0_i32_0 = arith.constant 0 : i32
    %c0_i32_1 = arith.constant 0 : i32
    %c0_i32_2 = arith.constant 0 : i32
    return %c0_i32, %c0_i32_0, %c0_i32_1 : i32, i32, i32
  }
  func.func @transform_4(%arg0: i32, %arg1: i32) -> (i32, i32) {
    %c0_i32 = arith.constant 0 : i32
    %c0_i32_0 = arith.constant 0 : i32
    %c0_i32_1 = arith.constant 0 : i32
    return %c0_i32, %c0_i32_0 : i32, i32
  }
  func.func @transform_5(%arg0: i32, %arg1: i32) -> (i32, i32) {
    %c0_i32 = arith.constant 0 : i32
    %c0_i32_0 = arith.constant 0 : i32
    %c0_i32_1 = arith.constant 0 : i32
    return %c0_i32, %c0_i32_0 : i32, i32
  }
  func.func @transform_6(%arg0: i32, %arg1: i32) -> (i32, i32, i32, i32) {
    %c0_i32 = arith.constant 0 : i32
    %c0_i32_0 = arith.constant 0 : i32
    %c0_i32_1 = arith.constant 0 : i32
    return %arg0, %arg1, %c0_i32, %c0_i32_0 : i32, i32, i32, i32
  }
}

module attributes {stable_mosaic.version = 11 : i64} {
  func.func @kernel(%arg0: i32, %arg1: i32, %arg2: memref<2x18x16x128xbf16, #tpu.memory_space<any>>, %arg3: memref<128x256xbf16, #tpu.memory_space<vmem>>, %arg4: memref<1x128xf32, #tpu.memory_space<vmem>>, %arg5: memref<9x128x128xbf16, #tpu.memory_space<vmem>>, %arg6: memref<1x128xf32, #tpu.memory_space<vmem>>, %arg7: memref<1x128xf32, #tpu.memory_space<vmem>>, %arg8: memref<1x8x16x128xf32, #tpu.memory_space<vmem>>, %arg9: memref<10x16x128xbf16, #tpu.memory_space<vmem>>, %arg10: memref<192x128xf32, #tpu.memory_space<vmem>>, %arg11: memref<128x128xf32, #tpu.memory_space<vmem>>, %arg12: memref<!tpu.dma_semaphore, #tpu.memory_space<semaphore_mem>>) attributes {dimension_semantics = [#tpu.dimension_semantics<parallel>, #tpu.dimension_semantics<parallel>], iteration_bounds = array<i64: 2, 2>, scalar_prefetch = 0 : i64, scratch_operands = 4 : i64, tpu.core_type = #tpu.core_type<tc>, window_params = [{}, {pipeline_mode = #tpu.pipeline_mode<synchronous>, transform_indices = @transform_1, window_bounds = array<i64: 128, 256>}, {pipeline_mode = #tpu.pipeline_mode<synchronous>, transform_indices = @transform_2, window_bounds = array<i64: 1, 128>}, {pipeline_mode = #tpu.pipeline_mode<synchronous>, transform_indices = @transform_3, window_bounds = array<i64: 9, 128, 128>}, {pipeline_mode = #tpu.pipeline_mode<synchronous>, transform_indices = @transform_4, window_bounds = array<i64: 1, 128>}, {pipeline_mode = #tpu.pipeline_mode<synchronous>, transform_indices = @transform_5, window_bounds = array<i64: 1, 128>}, {transform_indices = @transform_6, window_bounds = array<i64: 1, 8, 16, 128>}]} {
    %c8_i32 = arith.constant 8 : i32
    %0 = arith.muli %arg1, %c8_i32 : i32
    %c0_i32 = arith.constant 0 : i32
    %c0_i32_0 = arith.constant 0 : i32
    %1 = tpu.memref_slice %arg2[%arg0, %0, %c0_i32, %c0_i32_0] : memref<2x18x16x128xbf16, #tpu.memory_space<any>> -> memref<1x10x16x128xbf16, #tpu.memory_space<any>>
    %2 = tpu.memref_squeeze %1 : memref<1x10x16x128xbf16, #tpu.memory_space<any>> -> memref<10x16x128xbf16, #tpu.memory_space<any>>
    tpu.enqueue_dma source(%2 : memref<10x16x128xbf16, #tpu.memory_space<any>>) target(%arg9 : memref<10x16x128xbf16, #tpu.memory_space<vmem>>) target_semaphore(%arg12 : memref<!tpu.dma_semaphore, #tpu.memory_space<semaphore_mem>>)
    %c0_i32_1 = arith.constant 0 : i32
    %3 = arith.cmpi eq, %arg0, %c0_i32_1 : i32
    %c0_i32_2 = arith.constant 0 : i32
    %4 = arith.cmpi eq, %arg1, %c0_i32_2 : i32
    %5 = arith.andi %3, %4 : i1
    %6 = arith.extui %5 : i1 to i32
    %c0_i32_3 = arith.constant 0 : i32
    %7 = arith.cmpi ne, %6, %c0_i32_3 : i32
    scf.if %7 {
      %cst_118 = arith.constant 0.000000e+00 : f32
      %171 = vector.broadcast %cst_118 : f32 to vector<16x128xf32>
      %c0_119 = arith.constant 0 : index
      %c0_120 = arith.constant 0 : index
      %172 = vector.load %arg10[%c0_119, %c0_120] : memref<192x128xf32, #tpu.memory_space<vmem>>, vector<16x128xf32>
      tpu.vector_store %arg10[%c0_119, %c0_120], %171 {strides = array<i32>} : memref<192x128xf32, #tpu.memory_space<vmem>>, vector<16x128xf32>,
      %cst_121 = arith.constant 0.000000e+00 : f32
      %173 = vector.broadcast %cst_121 : f32 to vector<16x128xf32>
      %c176 = arith.constant 176 : index
      %c0_122 = arith.constant 0 : index
      %174 = vector.load %arg10[%c176, %c0_122] : memref<192x128xf32, #tpu.memory_space<vmem>>, vector<16x128xf32>
      tpu.vector_store %arg10[%c176, %c0_122], %173 {strides = array<i32>} : memref<192x128xf32, #tpu.memory_space<vmem>>, vector<16x128xf32>,
    } else {
    }
    %c0_i32_4 = arith.constant 0 : i32
    %c0_i32_5 = arith.constant 0 : i32
    %8 = tpu.memref_slice %arg2[%arg0, %0, %c0_i32_4, %c0_i32_5] : memref<2x18x16x128xbf16, #tpu.memory_space<any>> -> memref<1x10x16x128xbf16, #tpu.memory_space<any>>
    %9 = tpu.memref_squeeze %8 : memref<1x10x16x128xbf16, #tpu.memory_space<any>> -> memref<10x16x128xbf16, #tpu.memory_space<any>>
    tpu.wait_dma2 semaphore(%arg12 : memref<!tpu.dma_semaphore, #tpu.memory_space<semaphore_mem>>) src(%9 : memref<10x16x128xbf16, #tpu.memory_space<any>>) dst(%arg9 : memref<10x16x128xbf16, #tpu.memory_space<vmem>>)
    %c0 = arith.constant 0 : index
    %c0_6 = arith.constant 0 : index
    %c0_7 = arith.constant 0 : index
    %10 = vector.load %arg9[%c0, %c0_6, %c0_7] : memref<10x16x128xbf16, #tpu.memory_space<vmem>>, vector<10x16x128xbf16>
    %11 = vector.shape_cast %10 : vector<10x16x128xbf16> to vector<160x128xbf16>
    %c0_8 = arith.constant 0 : index
    %c0_9 = arith.constant 0 : index
    %12 = vector.load %arg3[%c0_8, %c0_9] : memref<128x256xbf16, #tpu.memory_space<vmem>>, vector<128x256xbf16>
    %cst = arith.constant dense<0.000000e+00> : vector<160x256xf32>
    %13 = tpu.matmul %11, %12, %cst {dimension_numbers = #tpu.dot_dimension_numbers<[1], [0], [0], [1], [0, 0, 1, 1], [], []>} : vector<160x128xbf16>, vector<128x256xbf16>, vector<160x256xf32> -> vector<160x256xf32>
    %14 = vector.extract_strided_slice %13 {offsets = [0, 0], sizes = [160, 128], strides = [1, 1]} : vector<160x256xf32> to vector<160x128xf32>
    %c0_10 = arith.constant 0 : index
    %c0_11 = arith.constant 0 : index
    %15 = vector.load %arg4[%c0_10, %c0_11] : memref<1x128xf32, #tpu.memory_space<vmem>>, vector<1x128xf32>
    %16 = vector.broadcast %15 : vector<1x128xf32> to vector<160x128xf32>
    %17 = arith.addf %14, %16 : vector<160x128xf32>
    %cst_12 = arith.constant 0.000000e+00 : f32
    %18 = vector.broadcast %cst_12 : f32 to vector<160x128xf32>
    %19 = arith.cmpf oge, %17, %18 : vector<160x128xf32>
    %cst_13 = arith.constant 1.000000e-01 : f32
    %20 = vector.broadcast %cst_13 : f32 to vector<160x128xf32>
    %21 = arith.mulf %20, %17 : vector<160x128xf32>
    %22 = arith.select %19, %17, %21 : vector<160x128xi1>, vector<160x128xf32>
    %c16 = arith.constant 16 : index
    %c0_14 = arith.constant 0 : index
    %23 = vector.load %arg10[%c16, %c0_14] : memref<192x128xf32, #tpu.memory_space<vmem>>, vector<160x128xf32>
    tpu.vector_store %arg10[%c16, %c0_14], %22 {strides = array<i32>} : memref<192x128xf32, #tpu.memory_space<vmem>>, vector<160x128xf32>,
    %c0_i32_15 = arith.constant 0 : i32
    %24 = arith.cmpi eq, %arg1, %c0_i32_15 : i32
    %25 = arith.extui %24 : i1 to i32
    %c0_i32_16 = arith.constant 0 : i32
    %26 = arith.cmpi ne, %25, %c0_i32_16 : i32
    scf.if %26 {
      %cst_118 = arith.constant 0.000000e+00 : f32
      %171 = vector.broadcast %cst_118 : f32 to vector<16x128xf32>
      %c16_119 = arith.constant 16 : index
      %c0_120 = arith.constant 0 : index
      %172 = vector.load %arg10[%c16_119, %c0_120] : memref<192x128xf32, #tpu.memory_space<vmem>>, vector<16x128xf32>
      tpu.vector_store %arg10[%c16_119, %c0_120], %171 {strides = array<i32>} : memref<192x128xf32, #tpu.memory_space<vmem>>, vector<16x128xf32>,
    } else {
    }
    %c1_i32 = arith.constant 1 : i32
    %27 = arith.cmpi eq, %arg1, %c1_i32 : i32
    %28 = arith.extui %27 : i1 to i32
    %c0_i32_17 = arith.constant 0 : i32
    %29 = arith.cmpi ne, %28, %c0_i32_17 : i32
    scf.if %29 {
      %cst_118 = arith.constant 0.000000e+00 : f32
      %171 = vector.broadcast %cst_118 : f32 to vector<16x128xf32>
      %c160 = arith.constant 160 : index
      %c0_119 = arith.constant 0 : index
      %172 = vector.load %arg10[%c160, %c0_119] : memref<192x128xf32, #tpu.memory_space<vmem>>, vector<16x128xf32>
      tpu.vector_store %arg10[%c160, %c0_119], %171 {strides = array<i32>} : memref<192x128xf32, #tpu.memory_space<vmem>>, vector<16x128xf32>,
    } else {
    }
    %30 = vector.extract_strided_slice %13 {offsets = [16, 128], sizes = [128, 128], strides = [1, 1]} : vector<160x256xf32> to vector<128x128xf32>
    %c0_18 = arith.constant 0 : index
    %c0_19 = arith.constant 0 : index
    %31 = vector.load %arg7[%c0_18, %c0_19] : memref<1x128xf32, #tpu.memory_space<vmem>>, vector<1x128xf32>
    %32 = vector.broadcast %31 : vector<1x128xf32> to vector<128x128xf32>
    %33 = arith.addf %30, %32 : vector<128x128xf32>
    %c0_20 = arith.constant 0 : index
    %c0_21 = arith.constant 0 : index
    %34 = vector.load %arg6[%c0_20, %c0_21] : memref<1x128xf32, #tpu.memory_space<vmem>>, vector<1x128xf32>
    %35 = vector.broadcast %34 : vector<1x128xf32> to vector<128x128xf32>
    %36 = arith.addf %33, %35 : vector<128x128xf32>
    %c0_22 = arith.constant 0 : index
    %c0_23 = arith.constant 0 : index
    %37 = vector.load %arg11[%c0_22, %c0_23] : memref<128x128xf32, #tpu.memory_space<vmem>>, vector<128x128xf32>
    tpu.vector_store %arg11[%c0_22, %c0_23], %36 {strides = array<i32>} : memref<128x128xf32, #tpu.memory_space<vmem>>, vector<128x128xf32>,
    %38 = tpu.iota {dimensions = array<i32: 0>} : vector<128x1xi32>
    %c16_i32 = arith.constant 16 : i32
    %c0_i32_24 = arith.constant 0 : i32
    %39 = arith.cmpi eq, %c16_i32, %c0_i32_24 : i32
    %c1_i32_25 = arith.constant 1 : i32
    %40 = arith.select %39, %c1_i32_25, %c16_i32 : i32
    %41 = vector.broadcast %40 : i32 to vector<128x1xi32>
    %42 = arith.remsi %38, %41 : vector<128x1xi32>
    %c0_i32_26 = arith.constant 0 : i32
    %43 = vector.broadcast %c0_i32_26 : i32 to vector<128x1xi32>
    %44 = arith.cmpi ne, %42, %43 : vector<128x1xi32>
    %c0_i32_27 = arith.constant 0 : i32
    %45 = vector.broadcast %c0_i32_27 : i32 to vector<128x1xi32>
    %46 = arith.cmpi slt, %42, %45 : vector<128x1xi32>
    %c0_i32_28 = arith.constant 0 : i32
    %47 = arith.cmpi slt, %40, %c0_i32_28 : i32
    %48 = vector.broadcast %47 : i1 to vector<128x1xi1>
    %49 = vector.broadcast %48 : vector<128x1xi1> to vector<128x1xi1>
    %50 = arith.xori %46, %49 : vector<128x1xi1>
    %51 = arith.andi %50, %44 : vector<128x1xi1>
    %52 = vector.broadcast %40 : i32 to vector<128x1xi32>
    %53 = arith.addi %42, %52 : vector<128x1xi32>
    %54 = arith.select %51, %53, %42 : vector<128x1xi1>, vector<128x1xi32>
    %c0_i32_29 = arith.constant 0 : i32
    %55 = vector.broadcast %c0_i32_29 : i32 to vector<128x1xi32>
    %56 = arith.cmpi ne, %54, %55 : vector<128x1xi32>
    %c15_i32 = arith.constant 15 : i32
    %57 = vector.broadcast %c15_i32 : i32 to vector<128x1xi32>
    %58 = arith.cmpi ne, %54, %57 : vector<128x1xi32>
    %c15 = arith.constant 15 : index
    %c0_30 = arith.constant 0 : index
    %59 = vector.load %arg10[%c15, %c0_30] : memref<192x128xf32, #tpu.memory_space<vmem>>, vector<128x128xf32>
    %c0_i32_31 = arith.constant 0 : i32
    %60 = arith.sitofp %c0_i32_31 : i32 to f32
    %61 = vector.shape_cast %56 : vector<128x1xi1> to vector<128x1xi1>
    %62 = vector.broadcast %61 : vector<128x1xi1> to vector<128x128xi1>
    %63 = vector.broadcast %60 : f32 to vector<128x128xf32>
    %64 = arith.select %62, %59, %63 : vector<128x128xi1>, vector<128x128xf32>
    %c0_32 = arith.constant 0 : index
    %c0_33 = arith.constant 0 : index
    %65 = vector.load %arg11[%c0_32, %c0_33] : memref<128x128xf32, #tpu.memory_space<vmem>>, vector<128x128xf32>
    %66 = arith.truncf %64 : vector<128x128xf32> to vector<128x128xbf16>
    %c0_34 = arith.constant 0 : index
    %c0_35 = arith.constant 0 : index
    %c0_36 = arith.constant 0 : index
    %67 = vector.load %arg5[%c0_34, %c0_35, %c0_36] : memref<9x128x128xbf16, #tpu.memory_space<vmem>>, vector<1x128x128xbf16>
    %68 = vector.shape_cast %67 : vector<1x128x128xbf16> to vector<128x128xbf16>
    %cst_37 = arith.constant dense<0.000000e+00> : vector<128x128xf32>
    %69 = tpu.matmul %66, %68, %cst_37 {dimension_numbers = #tpu.dot_dimension_numbers<[1], [0], [0], [1], [0, 0, 1, 1], [], []>} : vector<128x128xbf16>, vector<128x128xbf16>, vector<128x128xf32> -> vector<128x128xf32>
    %70 = arith.addf %65, %69 : vector<128x128xf32>
    %c0_38 = arith.constant 0 : index
    %c0_39 = arith.constant 0 : index
    %71 = vector.load %arg11[%c0_38, %c0_39] : memref<128x128xf32, #tpu.memory_space<vmem>>, vector<128x128xf32>
    tpu.vector_store %arg11[%c0_38, %c0_39], %70 {strides = array<i32>} : memref<128x128xf32, #tpu.memory_space<vmem>>, vector<128x128xf32>,
    %c16_40 = arith.constant 16 : index
    %c0_41 = arith.constant 0 : index
    %72 = vector.load %arg10[%c16_40, %c0_41] : memref<192x128xf32, #tpu.memory_space<vmem>>, vector<128x128xf32>
    %c0_42 = arith.constant 0 : index
    %c0_43 = arith.constant 0 : index
    %73 = vector.load %arg11[%c0_42, %c0_43] : memref<128x128xf32, #tpu.memory_space<vmem>>, vector<128x128xf32>
    %74 = arith.truncf %72 : vector<128x128xf32> to vector<128x128xbf16>
    %c1 = arith.constant 1 : index
    %c0_44 = arith.constant 0 : index
    %c0_45 = arith.constant 0 : index
    %75 = vector.load %arg5[%c1, %c0_44, %c0_45] : memref<9x128x128xbf16, #tpu.memory_space<vmem>>, vector<1x128x128xbf16>
    %76 = vector.shape_cast %75 : vector<1x128x128xbf16> to vector<128x128xbf16>
    %cst_46 = arith.constant dense<0.000000e+00> : vector<128x128xf32>
    %77 = tpu.matmul %74, %76, %cst_46 {dimension_numbers = #tpu.dot_dimension_numbers<[1], [0], [0], [1], [0, 0, 1, 1], [], []>} : vector<128x128xbf16>, vector<128x128xbf16>, vector<128x128xf32> -> vector<128x128xf32>
    %78 = arith.addf %73, %77 : vector<128x128xf32>
    %c0_47 = arith.constant 0 : index
    %c0_48 = arith.constant 0 : index
    %79 = vector.load %arg11[%c0_47, %c0_48] : memref<128x128xf32, #tpu.memory_space<vmem>>, vector<128x128xf32>
    tpu.vector_store %arg11[%c0_47, %c0_48], %78 {strides = array<i32>} : memref<128x128xf32, #tpu.memory_space<vmem>>, vector<128x128xf32>,
    %c17 = arith.constant 17 : index
    %c0_49 = arith.constant 0 : index
    %80 = vector.load %arg10[%c17, %c0_49] : memref<192x128xf32, #tpu.memory_space<vmem>>, vector<128x128xf32>
    %c0_i32_50 = arith.constant 0 : i32
    %81 = arith.sitofp %c0_i32_50 : i32 to f32
    %82 = vector.shape_cast %58 : vector<128x1xi1> to vector<128x1xi1>
    %83 = vector.broadcast %82 : vector<128x1xi1> to vector<128x128xi1>
    %84 = vector.broadcast %81 : f32 to vector<128x128xf32>
    %85 = arith.select %83, %80, %84 : vector<128x128xi1>, vector<128x128xf32>
    %c0_51 = arith.constant 0 : index
    %c0_52 = arith.constant 0 : index
    %86 = vector.load %arg11[%c0_51, %c0_52] : memref<128x128xf32, #tpu.memory_space<vmem>>, vector<128x128xf32>
    %87 = arith.truncf %85 : vector<128x128xf32> to vector<128x128xbf16>
    %c2 = arith.constant 2 : index
    %c0_53 = arith.constant 0 : index
    %c0_54 = arith.constant 0 : index
    %88 = vector.load %arg5[%c2, %c0_53, %c0_54] : memref<9x128x128xbf16, #tpu.memory_space<vmem>>, vector<1x128x128xbf16>
    %89 = vector.shape_cast %88 : vector<1x128x128xbf16> to vector<128x128xbf16>
    %cst_55 = arith.constant dense<0.000000e+00> : vector<128x128xf32>
    %90 = tpu.matmul %87, %89, %cst_55 {dimension_numbers = #tpu.dot_dimension_numbers<[1], [0], [0], [1], [0, 0, 1, 1], [], []>} : vector<128x128xbf16>, vector<128x128xbf16>, vector<128x128xf32> -> vector<128x128xf32>
    %91 = arith.addf %86, %90 : vector<128x128xf32>
    %c0_56 = arith.constant 0 : index
    %c0_57 = arith.constant 0 : index
    %92 = vector.load %arg11[%c0_56, %c0_57] : memref<128x128xf32, #tpu.memory_space<vmem>>, vector<128x128xf32>
    tpu.vector_store %arg11[%c0_56, %c0_57], %91 {strides = array<i32>} : memref<128x128xf32, #tpu.memory_space<vmem>>, vector<128x128xf32>,
    %c31 = arith.constant 31 : index
    %c0_58 = arith.constant 0 : index
    %93 = vector.load %arg10[%c31, %c0_58] : memref<192x128xf32, #tpu.memory_space<vmem>>, vector<128x128xf32>
    %c0_i32_59 = arith.constant 0 : i32
    %94 = arith.sitofp %c0_i32_59 : i32 to f32
    %95 = vector.shape_cast %56 : vector<128x1xi1> to vector<128x1xi1>
    %96 = vector.broadcast %95 : vector<128x1xi1> to vector<128x128xi1>
    %97 = vector.broadcast %94 : f32 to vector<128x128xf32>
    %98 = arith.select %96, %93, %97 : vector<128x128xi1>, vector<128x128xf32>
    %c0_60 = arith.constant 0 : index
    %c0_61 = arith.constant 0 : index
    %99 = vector.load %arg11[%c0_60, %c0_61] : memref<128x128xf32, #tpu.memory_space<vmem>>, vector<128x128xf32>
    %100 = arith.truncf %98 : vector<128x128xf32> to vector<128x128xbf16>
    %c3 = arith.constant 3 : index
    %c0_62 = arith.constant 0 : index
    %c0_63 = arith.constant 0 : index
    %101 = vector.load %arg5[%c3, %c0_62, %c0_63] : memref<9x128x128xbf16, #tpu.memory_space<vmem>>, vector<1x128x128xbf16>
    %102 = vector.shape_cast %101 : vector<1x128x128xbf16> to vector<128x128xbf16>
    %cst_64 = arith.constant dense<0.000000e+00> : vector<128x128xf32>
    %103 = tpu.matmul %100, %102, %cst_64 {dimension_numbers = #tpu.dot_dimension_numbers<[1], [0], [0], [1], [0, 0, 1, 1], [], []>} : vector<128x128xbf16>, vector<128x128xbf16>, vector<128x128xf32> -> vector<128x128xf32>
    %104 = arith.addf %99, %103 : vector<128x128xf32>
    %c0_65 = arith.constant 0 : index
    %c0_66 = arith.constant 0 : index
    %105 = vector.load %arg11[%c0_65, %c0_66] : memref<128x128xf32, #tpu.memory_space<vmem>>, vector<128x128xf32>
    tpu.vector_store %arg11[%c0_65, %c0_66], %104 {strides = array<i32>} : memref<128x128xf32, #tpu.memory_space<vmem>>, vector<128x128xf32>,
    %c32 = arith.constant 32 : index
    %c0_67 = arith.constant 0 : index
    %106 = vector.load %arg10[%c32, %c0_67] : memref<192x128xf32, #tpu.memory_space<vmem>>, vector<128x128xf32>
    %c0_68 = arith.constant 0 : index
    %c0_69 = arith.constant 0 : index
    %107 = vector.load %arg11[%c0_68, %c0_69] : memref<128x128xf32, #tpu.memory_space<vmem>>, vector<128x128xf32>
    %108 = arith.truncf %106 : vector<128x128xf32> to vector<128x128xbf16>
    %c4 = arith.constant 4 : index
    %c0_70 = arith.constant 0 : index
    %c0_71 = arith.constant 0 : index
    %109 = vector.load %arg5[%c4, %c0_70, %c0_71] : memref<9x128x128xbf16, #tpu.memory_space<vmem>>, vector<1x128x128xbf16>
    %110 = vector.shape_cast %109 : vector<1x128x128xbf16> to vector<128x128xbf16>
    %cst_72 = arith.constant dense<0.000000e+00> : vector<128x128xf32>
    %111 = tpu.matmul %108, %110, %cst_72 {dimension_numbers = #tpu.dot_dimension_numbers<[1], [0], [0], [1], [0, 0, 1, 1], [], []>} : vector<128x128xbf16>, vector<128x128xbf16>, vector<128x128xf32> -> vector<128x128xf32>
    %112 = arith.addf %107, %111 : vector<128x128xf32>
    %c0_73 = arith.constant 0 : index
    %c0_74 = arith.constant 0 : index
    %113 = vector.load %arg11[%c0_73, %c0_74] : memref<128x128xf32, #tpu.memory_space<vmem>>, vector<128x128xf32>
    tpu.vector_store %arg11[%c0_73, %c0_74], %112 {strides = array<i32>} : memref<128x128xf32, #tpu.memory_space<vmem>>, vector<128x128xf32>,
    %c33 = arith.constant 33 : index
    %c0_75 = arith.constant 0 : index
    %114 = vector.load %arg10[%c33, %c0_75] : memref<192x128xf32, #tpu.memory_space<vmem>>, vector<128x128xf32>
    %c0_i32_76 = arith.constant 0 : i32
    %115 = arith.sitofp %c0_i32_76 : i32 to f32
    %116 = vector.shape_cast %58 : vector<128x1xi1> to vector<128x1xi1>
    %117 = vector.broadcast %116 : vector<128x1xi1> to vector<128x128xi1>
    %118 = vector.broadcast %115 : f32 to vector<128x128xf32>
    %119 = arith.select %117, %114, %118 : vector<128x128xi1>, vector<128x128xf32>
    %c0_77 = arith.constant 0 : index
    %c0_78 = arith.constant 0 : index
    %120 = vector.load %arg11[%c0_77, %c0_78] : memref<128x128xf32, #tpu.memory_space<vmem>>, vector<128x128xf32>
    %121 = arith.truncf %119 : vector<128x128xf32> to vector<128x128xbf16>
    %c5 = arith.constant 5 : index
    %c0_79 = arith.constant 0 : index
    %c0_80 = arith.constant 0 : index
    %122 = vector.load %arg5[%c5, %c0_79, %c0_80] : memref<9x128x128xbf16, #tpu.memory_space<vmem>>, vector<1x128x128xbf16>
    %123 = vector.shape_cast %122 : vector<1x128x128xbf16> to vector<128x128xbf16>
    %cst_81 = arith.constant dense<0.000000e+00> : vector<128x128xf32>
    %124 = tpu.matmul %121, %123, %cst_81 {dimension_numbers = #tpu.dot_dimension_numbers<[1], [0], [0], [1], [0, 0, 1, 1], [], []>} : vector<128x128xbf16>, vector<128x128xbf16>, vector<128x128xf32> -> vector<128x128xf32>
    %125 = arith.addf %120, %124 : vector<128x128xf32>
    %c0_82 = arith.constant 0 : index
    %c0_83 = arith.constant 0 : index
    %126 = vector.load %arg11[%c0_82, %c0_83] : memref<128x128xf32, #tpu.memory_space<vmem>>, vector<128x128xf32>
    tpu.vector_store %arg11[%c0_82, %c0_83], %125 {strides = array<i32>} : memref<128x128xf32, #tpu.memory_space<vmem>>, vector<128x128xf32>,
    %c47 = arith.constant 47 : index
    %c0_84 = arith.constant 0 : index
    %127 = vector.load %arg10[%c47, %c0_84] : memref<192x128xf32, #tpu.memory_space<vmem>>, vector<128x128xf32>
    %c0_i32_85 = arith.constant 0 : i32
    %128 = arith.sitofp %c0_i32_85 : i32 to f32
    %129 = vector.shape_cast %56 : vector<128x1xi1> to vector<128x1xi1>
    %130 = vector.broadcast %129 : vector<128x1xi1> to vector<128x128xi1>
    %131 = vector.broadcast %128 : f32 to vector<128x128xf32>
    %132 = arith.select %130, %127, %131 : vector<128x128xi1>, vector<128x128xf32>
    %c0_86 = arith.constant 0 : index
    %c0_87 = arith.constant 0 : index
    %133 = vector.load %arg11[%c0_86, %c0_87] : memref<128x128xf32, #tpu.memory_space<vmem>>, vector<128x128xf32>
    %134 = arith.truncf %132 : vector<128x128xf32> to vector<128x128xbf16>
    %c6 = arith.constant 6 : index
    %c0_88 = arith.constant 0 : index
    %c0_89 = arith.constant 0 : index
    %135 = vector.load %arg5[%c6, %c0_88, %c0_89] : memref<9x128x128xbf16, #tpu.memory_space<vmem>>, vector<1x128x128xbf16>
    %136 = vector.shape_cast %135 : vector<1x128x128xbf16> to vector<128x128xbf16>
    %cst_90 = arith.constant dense<0.000000e+00> : vector<128x128xf32>
    %137 = tpu.matmul %134, %136, %cst_90 {dimension_numbers = #tpu.dot_dimension_numbers<[1], [0], [0], [1], [0, 0, 1, 1], [], []>} : vector<128x128xbf16>, vector<128x128xbf16>, vector<128x128xf32> -> vector<128x128xf32>
    %138 = arith.addf %133, %137 : vector<128x128xf32>
    %c0_91 = arith.constant 0 : index
    %c0_92 = arith.constant 0 : index
    %139 = vector.load %arg11[%c0_91, %c0_92] : memref<128x128xf32, #tpu.memory_space<vmem>>, vector<128x128xf32>
    tpu.vector_store %arg11[%c0_91, %c0_92], %138 {strides = array<i32>} : memref<128x128xf32, #tpu.memory_space<vmem>>, vector<128x128xf32>,
    %c48 = arith.constant 48 : index
    %c0_93 = arith.constant 0 : index
    %140 = vector.load %arg10[%c48, %c0_93] : memref<192x128xf32, #tpu.memory_space<vmem>>, vector<128x128xf32>
    %c0_94 = arith.constant 0 : index
    %c0_95 = arith.constant 0 : index
    %141 = vector.load %arg11[%c0_94, %c0_95] : memref<128x128xf32, #tpu.memory_space<vmem>>, vector<128x128xf32>
    %142 = arith.truncf %140 : vector<128x128xf32> to vector<128x128xbf16>
    %c7 = arith.constant 7 : index
    %c0_96 = arith.constant 0 : index
    %c0_97 = arith.constant 0 : index
    %143 = vector.load %arg5[%c7, %c0_96, %c0_97] : memref<9x128x128xbf16, #tpu.memory_space<vmem>>, vector<1x128x128xbf16>
    %144 = vector.shape_cast %143 : vector<1x128x128xbf16> to vector<128x128xbf16>
    %cst_98 = arith.constant dense<0.000000e+00> : vector<128x128xf32>
    %145 = tpu.matmul %142, %144, %cst_98 {dimension_numbers = #tpu.dot_dimension_numbers<[1], [0], [0], [1], [0, 0, 1, 1], [], []>} : vector<128x128xbf16>, vector<128x128xbf16>, vector<128x128xf32> -> vector<128x128xf32>
    %146 = arith.addf %141, %145 : vector<128x128xf32>
    %c0_99 = arith.constant 0 : index
    %c0_100 = arith.constant 0 : index
    %147 = vector.load %arg11[%c0_99, %c0_100] : memref<128x128xf32, #tpu.memory_space<vmem>>, vector<128x128xf32>
    tpu.vector_store %arg11[%c0_99, %c0_100], %146 {strides = array<i32>} : memref<128x128xf32, #tpu.memory_space<vmem>>, vector<128x128xf32>,
    %c49 = arith.constant 49 : index
    %c0_101 = arith.constant 0 : index
    %148 = vector.load %arg10[%c49, %c0_101] : memref<192x128xf32, #tpu.memory_space<vmem>>, vector<128x128xf32>
    %c0_i32_102 = arith.constant 0 : i32
    %149 = arith.sitofp %c0_i32_102 : i32 to f32
    %150 = vector.shape_cast %58 : vector<128x1xi1> to vector<128x1xi1>
    %151 = vector.broadcast %150 : vector<128x1xi1> to vector<128x128xi1>
    %152 = vector.broadcast %149 : f32 to vector<128x128xf32>
    %153 = arith.select %151, %148, %152 : vector<128x128xi1>, vector<128x128xf32>
    %c0_103 = arith.constant 0 : index
    %c0_104 = arith.constant 0 : index
    %154 = vector.load %arg11[%c0_103, %c0_104] : memref<128x128xf32, #tpu.memory_space<vmem>>, vector<128x128xf32>
    %155 = arith.truncf %153 : vector<128x128xf32> to vector<128x128xbf16>
    %c8 = arith.constant 8 : index
    %c0_105 = arith.constant 0 : index
    %c0_106 = arith.constant 0 : index
    %156 = vector.load %arg5[%c8, %c0_105, %c0_106] : memref<9x128x128xbf16, #tpu.memory_space<vmem>>, vector<1x128x128xbf16>
    %157 = vector.shape_cast %156 : vector<1x128x128xbf16> to vector<128x128xbf16>
    %cst_107 = arith.constant dense<0.000000e+00> : vector<128x128xf32>
    %158 = tpu.matmul %155, %157, %cst_107 {dimension_numbers = #tpu.dot_dimension_numbers<[1], [0], [0], [1], [0, 0, 1, 1], [], []>} : vector<128x128xbf16>, vector<128x128xbf16>, vector<128x128xf32> -> vector<128x128xf32>
    %159 = arith.addf %154, %158 : vector<128x128xf32>
    %c0_108 = arith.constant 0 : index
    %c0_109 = arith.constant 0 : index
    %160 = vector.load %arg11[%c0_108, %c0_109] : memref<128x128xf32, #tpu.memory_space<vmem>>, vector<128x128xf32>
    tpu.vector_store %arg11[%c0_108, %c0_109], %159 {strides = array<i32>} : memref<128x128xf32, #tpu.memory_space<vmem>>, vector<128x128xf32>,
    %c0_110 = arith.constant 0 : index
    %c0_111 = arith.constant 0 : index
    %161 = vector.load %arg11[%c0_110, %c0_111] : memref<128x128xf32, #tpu.memory_space<vmem>>, vector<128x128xf32>
    %cst_112 = arith.constant 0.000000e+00 : f32
    %162 = vector.broadcast %cst_112 : f32 to vector<128x128xf32>
    %163 = arith.cmpf oge, %161, %162 : vector<128x128xf32>
    %cst_113 = arith.constant 1.000000e-01 : f32
    %164 = vector.broadcast %cst_113 : f32 to vector<128x128xf32>
    %165 = arith.mulf %164, %161 : vector<128x128xf32>
    %166 = arith.select %163, %161, %165 : vector<128x128xi1>, vector<128x128xf32>
    %167 = vector.shape_cast %166 : vector<128x128xf32> to vector<8x16x128xf32>
    %c0_114 = arith.constant 0 : index
    %c0_115 = arith.constant 0 : index
    %c0_116 = arith.constant 0 : index
    %c0_117 = arith.constant 0 : index
    %168 = vector.load %arg8[%c0_114, %c0_115, %c0_116, %c0_117] : memref<1x8x16x128xf32, #tpu.memory_space<vmem>>, vector<1x8x16x128xf32>
    %169 = vector.shape_cast %168 : vector<1x8x16x128xf32> to vector<8x16x128xf32>
    %170 = vector.shape_cast %167 : vector<8x16x128xf32> to vector<1x8x16x128xf32>
    tpu.vector_store %arg8[%c0_114, %c0_115, %c0_116, %c0_117], %170 {strides = array<i32>} : memref<1x8x16x128xf32, #tpu.memory_space<vmem>>, vector<1x8x16x128xf32>,
    return
  }
  func.func @transform_1(%arg0: i32, %arg1: i32) -> (i32, i32) {
    %c0_i32 = arith.constant 0 : i32
    %c0_i32_0 = arith.constant 0 : i32
    %c0_i32_1 = arith.constant 0 : i32
    return %c0_i32, %c0_i32_0 : i32, i32
  }
  func.func @transform_2(%arg0: i32, %arg1: i32) -> (i32, i32) {
    %c0_i32 = arith.constant 0 : i32
    %c0_i32_0 = arith.constant 0 : i32
    %c0_i32_1 = arith.constant 0 : i32
    return %c0_i32, %c0_i32_0 : i32, i32
  }
  func.func @transform_3(%arg0: i32, %arg1: i32) -> (i32, i32, i32) {
    %c0_i32 = arith.constant 0 : i32
    %c0_i32_0 = arith.constant 0 : i32
    %c0_i32_1 = arith.constant 0 : i32
    %c0_i32_2 = arith.constant 0 : i32
    return %c0_i32, %c0_i32_0, %c0_i32_1 : i32, i32, i32
  }
  func.func @transform_4(%arg0: i32, %arg1: i32) -> (i32, i32) {
    %c0_i32 = arith.constant 0 : i32
    %c0_i32_0 = arith.constant 0 : i32
    %c0_i32_1 = arith.constant 0 : i32
    return %c0_i32, %c0_i32_0 : i32, i32
  }
  func.func @transform_5(%arg0: i32, %arg1: i32) -> (i32, i32) {
    %c0_i32 = arith.constant 0 : i32
    %c0_i32_0 = arith.constant 0 : i32
    %c0_i32_1 = arith.constant 0 : i32
    return %c0_i32, %c0_i32_0 : i32, i32
  }
  func.func @transform_6(%arg0: i32, %arg1: i32) -> (i32, i32, i32, i32) {
    %c0_i32 = arith.constant 0 : i32
    %c0_i32_0 = arith.constant 0 : i32
    %c0_i32_1 = arith.constant 0 : i32
    return %arg0, %arg1, %c0_i32, %c0_i32_0 : i32, i32, i32, i32
  }
}

</mosaic_0001>

<bundles_post_ra>
// kernel: tpu_custom_call.1
= control target key start
LH: loop header
LB: loop body
LE: loop exit
PB: predicated region body
PF: predicated region fallthrough
CT: control target
= control target key end

     0   :  { %s7281_s0 = inlined_call_operand.hbm [shape: bf16[2,18,16,128], index: 0, kind: input, shape index: {}]   ;;  %s7282_s1 = inlined_call_operand.hbm [shape: bf16[128,256], index: 1, kind: input, shape index: {}]   ;;  %s7283_s2 = inlined_call_operand.vmem [shape: f32[1,128], index: 2, kind: input, shape index: {}]   ;;  %s7284_s3 = inlined_call_operand.hbm [shape: bf16[9,128,128], index: 3, kind: input, shape index: {}]   ;;  %s7285_s4 = inlined_call_operand.vmem [shape: f32[1,128], index: 4, kind: input, shape index: {}]   ;;  %s7286_s5 = inlined_call_operand.vmem [shape: f32[1,128], index: 5, kind: input, shape index: {}]   ;;  %s7287_s6 = inlined_call_operand.hbm [shape: f32[2,16,16,128], index: 6, kind: output, shape index: {}]  }
   0x1   :  { %7321 = sst [smem:[#allocation40_spill]] %s7282_s1 }
   0x2   :  { %7322 = sst [smem:[#allocation41_spill]] %s7284_s3 }
   0x3   :  { %11 = vsyncpa [#allocation7], 0 }
   0x4   :  { %12 = vsyncpa [#allocation10], 0 }
   0x5   :  { %13 = vsyncpa [#allocation8], 0 }
   0x6   :  { %15 = vsyncpa [#allocation8 + $0x1], 0  ;;  %s6004_s21 = smov 0   ;;  %s6006_s22 = smov 0  }
   0x7   :  { %s6008_s23 = smov 0   ;;  %s6010_s24 = smov 0  }
   0x8   :  { %s6012_s25 = smov 0   ;;  %s6014_s26 = smov 0  }
   0x9   :  { %s6016_s27 = smov 0   ;;  %s6018_s28 = smov 0  }
   0xa LB: > { %7323 = sst [smem:[#allocation20_spill]] %s5948_s27  ;;  %s4791_s29 = sadd.s32 4294967295, %s5952_s28   ;;  %s5952_s28 = sphi %s6018_s28, %s21_s28   ;;  %s5948_s27 = sphi %s6016_s27, %s7503_s27   ;;  %s5944_s26 = sphi %s6014_s26, %s7508_s26   ;;  %s5940_s25 = sphi %s6012_s25, %s7501_s25   ;;  %s5936_s24 = sphi %s6010_s24, %s7507_s24   ;;  %s5932_s23 = sphi %s6008_s23, %s7506_s23   ;;  %s5928_s22 = sphi %s6006_s22, %s7505_s22   ;;  %s5924_s21 = sphi %s6004_s21, %s7504_s21  }
   0xb   : > { %s4792_s30 = sadd.s32 4294967294, %s5952_s28   ;;  %s30_s7 = sadd.s32 1, %s5944_s26 }
   0xc   : > { %s33_s8 = sadd.s32 1, %s5948_s27  ;;  %p31_p0 = scmp.ge.s32.totalorder %s30_s7, 2 }
   0xd   : > { %s147_s9 = sadd.s32 1, %s5932_s23  ;;  %p157_p1 = scmp.ne.s32.totalorder %s5932_s23, %s5928_s22 }
   0xe   : > { %p158_p2 = scmp.eq.s32.totalorder %s4791_s29, 3  ;;  %s7510_s7 = smov (%p31_p0, %s30_s7), 0 }
   0xf   : > { %7324 = sst [smem:[#allocation21_spill]] %s7510_s7  ;;  %s7512_s8 = smov (!%p31_p0, %s33_s8), %s5948_s27 }
  0x10   : > { %s143_s10 = ssub.s32 %s5944_s26, %s7510_s7  ;;  %p6056_p3 = por %p158_p2, %p157_p1 }
  0x11   : > { %p35_p4 = scmp.ge.s32.totalorder %s7512_s8, 2  ;;  %p163_p5 = scmp.ne.s32.totalorder %s5928_s22, %s5924_s21 }
  0x12   : > { %p164_p6 = scmp.eq.s32.totalorder %s4792_s30, 3  ;;  %p4793_p7 = scmp.ge.s32.totalorder %s5952_s28, 1 }
  0x13   : > { %s7514_s8 = smov (%p35_p4, %s7512_s8), 0  ;;  %p171_p9 = scmp.lt.s32.totalorder %s5952_s28, 5 }
  0x14   : > { %7326 = sst [smem:[#allocation22_spill]] %s7514_s8  ;;  %p6065_p8 = por %p164_p6, %p163_p5 }
  0x15   : > { %s142_s13 = ssub.s32 %s5948_s27, %s7514_s8  ;;  %p6072_p10 = pnand %p4793_p7, %p171_p9 }
  0x16   : > { %s7327_s12 = scalar_select %p6065_p8, 1, 0 }
  0x17   : > { %s144_s14 = sor.u32 %s143_s10, %s142_s13  ;;  %p6076_p12 = scmp.eq.s32.totalorder %s4791_s29, 0 }
  0x18   : > { %p145_p11 = scmp.eq.s32.totalorder %s144_s14, 0  ;;  %p5552_p13 = pneg %p6072_p10 }
  0x19   : > { %s5954_s18 = smov [#allocation6]  }
  0x1a   : > { %s6083_s17 = scalar_select %p145_p11, %s5932_s23, %s147_s9  }
  0x1b   : > { %s183_s19 = sshll.u32 %s5954_s18, 4  ;;  %p6087_p0 = pnand %p6076_p12, %p5552_p13  ;;  %s184_s19 = int_to_ptr.vmem [resolvable:$true] %s183_s19 }
  0x1c   : > { %s5787_s29 = scalar_lea.vmem %s184_s19, 2048  ;;  %p5795_p6 = scmp.lt.s32.totalorder %s184_s19, %s184_s19 }
  0x1d   : > { %p5778_p1 = pneg %p6087_p0  ;;  %p5788_p2 = scmp.ne.s32.totalorder %s184_s19, %s5787_s29 }
  0x1e   : > { %p5796_p7 = scmp.lt.s32.totalorder %s5787_s29, %s5787_s29 }
  0x1f   : > { %p5790_p4 = pnand %p5788_p2, %p5778_p1 }
  0x20   : > { %p5797_p9 = por %p5796_p7, %p5795_p6 }
  0x21   : > { %p5791_p5 = pneg %p5790_p4 }
  0x23   : > { %p5798_p11 = pnand %p5797_p9, %p5791_p5 }
  0x25   : > { %5801 = shalt.err (!%p5798_p11)
}
  0x26   : > { %s5955_s30 = smov 128   ;;  %s5956_s9 = smov 8  }
  0x27   : > { %s7331_s1 = sld [smem:[#allocation40_spill]]  ;;  %s5957_s14 = smov [#allocation9]  }
  0x28   : > { %s199_s18 = sshll.u32 %s5957_s14, 4  ;;  %s200_s18 = int_to_ptr.vmem [resolvable:$true] %s199_s18 }
  0x29   : > { %s5813_s8 = scalar_lea.vmem %s200_s18, 9216  ;;  %p5821_p5 = scmp.lt.s32.totalorder %s200_s18, %s200_s18 }
  0x2a   : > { %p5814_p13 = scmp.ne.s32.totalorder %s200_s18, %s5813_s8  ;;  %p5822_p6 = scmp.lt.s32.totalorder %s5813_s8, %s5813_s8 }
  0x2c   : > { %p5816_p2 = pnand %p5814_p13, %p5778_p1  ;;  %p5823_p7 = por %p5822_p6, %p5821_p5 }
  0x2d   : > { %5555 = dma.hbm_to_vmem [thread:$0]  (!%p6087_p0), %s7331_s1, 2048, %s184_s19, [#allocation7], %s5955_s30, %s5955_s30, %s5956_s9  }
  0x2e   : > { %p5817_p4 = pneg %p5816_p2 }
  0x30   : > { %p5824_p9 = pnand %p5823_p7, %p5817_p4 }
  0x32   : > { %5827 = shalt.err (!%p5824_p9)
}
  0x33   : > { %s5958_s29 = smov 64   ;;  %s5959_s7 = smov 4  }
  0x34   : > { %s7332_s3 = sld [smem:[#allocation41_spill]] }
  0x36   : > { %221 = sbr.rel (%p6072_p10) target bundleno = 882 (0x372), region = 40 }
  0x3a   : > { %5558 = dma.hbm_to_vmem [thread:$0]  (!%p6087_p0), %s7332_s3, 9216, %s200_s18, [#allocation10], %s5958_s29, %s5958_s29, %s5959_s7  }
  0x3b   : > { %5909 = dma.done.wait (%p6076_p12), [#allocation7], 2048  }
  0x3c   : > { %5911 = vsyncadd (%p6076_p12), [#allocation7], 4294965248 }
  0x3d   : > { %5913 = dma.done.wait (%p6076_p12), [#allocation10], 9216  }
  0x3e   : > { %5915 = vsyncadd (%p6076_p12), [#allocation10], 4294958080  ;;  %s7291_s7 = sand.u32 1, %s5928_s22   ;;  %s5012_s8 = sshll.u32 %s5936_s24, 4 }
  0x3f   : > { %s4799_s15 = sshll.u32 %s7291_s7, 7  ;;  %s254_s20 = smul.u32 36, %s5940_s25 }
  0x40   : > { %s5960_s9 = smov [#allocation2]   ;;  %p269_p10 = scmp.eq.s32.totalorder %s5940_s25, 0 }
  0x41   : > { %s255_s30 = sadd.s32 %s5012_s8, %s254_s20  ;;  %s265_s13 = sshll.u32 %s5960_s9, 4  ;;  %s266_s13 = int_to_ptr.vmem [resolvable:$true] %s265_s13 }
  0x42   : > { %s4802_s14 = sshll.u32 %s255_s30, 6  ;;  %s5830_s3 = scalar_lea.hbm %s7281_s0, 4608 }
  0x43   : > { %s257_s29 = scalar_lea.hbm %s7281_s0, %s4802_s14 }
  0x44   : > { %s5828_s10 = scalar_lea.hbm %s257_s29, 1280  ;;  %p5831_p0 = scmp.lt.s32.totalorder %s257_s29, %s7281_s0 }
  0x45   : > { %p5829_p12 = scmp.ne.s32.totalorder %s257_s29, %s5828_s10  ;;  %p5832_p1 = scmp.lt.s32.totalorder %s5830_s3, %s5828_s10 }
  0x47   : > { %p5833_p11 = por %p5832_p1, %p5831_p0 }
  0x49   : > { %p5834_p13 = pnand %p5833_p11, %p5829_p12 }
  0x4b   : > { %5837 = shalt.err (!%p5834_p13)  }
  0x4c   : > { %s5838_s20 = scalar_lea.vmem %s266_s13, 1280  ;;  %p5843_p4 = scmp.lt.s32.totalorder %s266_s13, %s266_s13 }
  0x4d   : > { %p5839_p2 = scmp.ne.s32.totalorder %s266_s13, %s5838_s20  ;;  %p5844_p5 = scmp.lt.s32.totalorder %s5838_s20, %s5838_s20 }
  0x4f   : > { %p5845_p6 = por %p5844_p5, %p5843_p4 }
  0x51   : > { %p5846_p7 = pnand %p5845_p6, %p5839_p2 }
  0x53   : > { %5849 = shalt.err (!%p5846_p7)  }
  0x54   : > { %268 = dma.hbm_to_vmem [thread:$0]  %s257_s29, 1280, %s266_s13, [#allocation5] }
  0x55   : > { %p270_p9 = scmp.eq.s32.totalorder %s5936_s24, 0  ;;  %s6139_s1 = scalar_lea.vmem [#allocation11], %s4799_s15 }
  0x57   : > { %p271_p8 = pnand %p270_p9, %p269_p10 }
  0x59   : > { %274 = sbr.rel (%p271_p8) target bundleno = 96 (0x60), region = 56 }
  0x5e   : > { %v5961_v0 = vmov 0  }
  0x5f   : > { %276 = vst [vmem:[#allocation3 + $0x4] sm:$0xf] %v5961_v0  ;;  %277 = vst [vmem:[#allocation3 + $0x58] sm:$0xf] %v5961_v0 }
  0x60 PF: > { %5916 = dma.done.wait [#allocation5], 1280 }
  0x61   : > { %5917 = vsyncadd [#allocation5], 4294966016  ;;  %v7298_v1 = vmov 0   ;;  %v5646_v2 = vld [vmem:[#allocation6 + $0x74] ss:$8 sps:$4 sm:$0xff]   ;;  %v5672_v20 = vld [vmem:[#allocation2 + $0x10] sm:$0xff]  }
  0x62   : > { %492 = vmatprep.mubr.bf16.mxu0 %v7298_v1  ;;  %v5648_v3 = vld [vmem:[#allocation6 + $0x70] ss:$8 sps:$4 sm:$0xff]   ;;  %460 = vmatprep.subr.bf16.mxu0 %v5646_v2  ;;  %v5649_v4 = vld [vmem:[#allocation6 + $0x64] ss:$8 sps:$4 sm:$0xff]   ;;  %v5651_v5 = vld [vmem:[#allocation6 + $0x60] ss:$8 sps:$4 sm:$0xff]  }
  0x63   : > { %461 = vmatpush1.bf16.msra.mxu0 %v5648_v3  ;;  %v5652_v6 = vld [vmem:[#allocation6 + $0x54] ss:$8 sps:$4 sm:$0xff]   ;;  %v5654_v7 = vld [vmem:[#allocation6 + $0x50] ss:$8 sps:$4 sm:$0xff]   ;;  %v5655_v8 = vld [vmem:[#allocation6 + $0x44] ss:$8 sps:$4 sm:$0xff]  }
  0x64   : > { %462 = vmatprep.subr.bf16.mxu0 %v5649_v4  ;;  %v5657_v9 = vld [vmem:[#allocation6 + $0x40] ss:$8 sps:$4 sm:$0xff]   ;;  %v5658_v10 = vld [vmem:[#allocation6 + $0x34] ss:$8 sps:$4 sm:$0xff]   ;;  %v5660_v11 = vld [vmem:[#allocation6 + $0x30] ss:$8 sps:$4 sm:$0xff]  }
  0x65   : > { %v5661_v12 = vld [vmem:[#allocation6 + $0x24] ss:$8 sps:$4 sm:$0xff]   ;;  %v5663_v13 = vld [vmem:[#allocation6 + $0x20] ss:$8 sps:$4 sm:$0xff]   ;;  %v5664_v14 = vld [vmem:[#allocation6 + $0x14] ss:$8 sps:$4 sm:$0xff]  }
  0x66   : > { %v5666_v15 = vld [vmem:[#allocation6 + $0x10] ss:$8 sps:$4 sm:$0xff]   ;;  %v5667_v16 = vld [vmem:[#allocation6 + $0x4] ss:$8 sps:$4 sm:$0xff]   ;;  %v5669_v17 = vld [vmem:[#allocation6] ss:$8 sps:$4 sm:$0xff]  }
  0x67   : > { %463 = vmatpush1.bf16.msra.mxu0 %v5651_v5  ;;  %v5670_v18 = vld [vmem:[#allocation2] sm:$0xff]   ;;  %v5671_v19 = vld [vmem:[#allocation2 + $0x8] sm:$0xff]   ;;  %v5673_v21 = vld [vmem:[#allocation2 + $0x18] sm:$0xff]   ;;  %p4850_p8 = scmp.ne.s32.totalorder %s5936_s24, 0 }
  0x68   : > { %464 = vmatprep.subr.bf16.mxu0 %v5652_v6  ;;  %v5674_v22 = vld [vmem:[#allocation2 + $0x20] sm:$0xff]   ;;  %v5675_v23 = vld [vmem:[#allocation2 + $0x28] sm:$0xff]   ;;  %v5676_v24 = vld [vmem:[#allocation2 + $0x30] sm:$0xff]  }
  0x69   : > { %v5677_v25 = vld [vmem:[#allocation2 + $0x38] sm:$0xff]   ;;  %v5678_v26 = vld [vmem:[#allocation2 + $0x40] sm:$0xff]   ;;  %v5679_v27 = vld [vmem:[#allocation2 + $0x48] sm:$0xff]  }
  0x6a   : > { %v6154_v28 = vld [vmem:[%s7283_s2] ss:$0 sm:$0xff] }
  0x6b   : > { %465 = vmatpush1.bf16.msra.mxu0 %v5654_v7 }
  0x6c   : > { %466 = vmatprep.subr.bf16.mxu0 %v5655_v8 }
  0x6f   : > { %467 = vmatpush1.bf16.msra.mxu0 %v5657_v9 }
  0x70   : > { %468 = vmatprep.subr.bf16.mxu0 %v5658_v10 }
  0x73   : > { %469 = vmatpush1.bf16.msra.mxu0 %v5660_v11 }
  0x74   : > { %470 = vmatprep.subr.bf16.mxu0 %v5661_v12 }
  0x77   : > { %471 = vmatpush1.bf16.msra.mxu0 %v5663_v13 }
  0x78   : > { %472 = vmatprep.subr.bf16.mxu0 %v5664_v14 }
  0x7b   : > { %473 = vmatpush1.bf16.msra.mxu0 %v5666_v15 }
  0x7c   : > { %474 = vmatprep.subr.bf16.mxu0 %v5667_v16 }
  0x7f   : > { %475 = vmatpush1.bf16.msra.mxu0 %v5669_v17 }
  0x82   : > { %493 = vmatmul.mubr.bf16.vlgmr.msra.gmra.mxu0 %v5670_v18 }
  0x83   : > { %500 = vmatprep.mubr.bf16.mxu0 %v7298_v1 }
  0x8a   : > { %501 = vmatmul.mubr.bf16.gmra.mxu0 %v5671_v19 }
  0x8b   : > { %510 = vmatprep.mubr.bf16.mxu0 %v7298_v1 }
  0x92   : > { %511 = vmatmul.mubr.bf16.gmra.mxu0 %v5672_v20 }
  0x93   : > { %520 = vmatprep.mubr.bf16.mxu0 %v7298_v1 }
  0x9a   : > { %521 = vmatmul.mubr.bf16.gmra.mxu0 %v5673_v21 }
  0x9b   : > { %530 = vmatprep.mubr.bf16.mxu0 %v7298_v1 }
  0xa2   : > { %531 = vmatmul.mubr.bf16.gmra.mxu0 %v5674_v22 }
  0xa3   : > { %540 = vmatprep.mubr.bf16.mxu0 %v7298_v1 }
  0xaa   : > { %541 = vmatmul.mubr.bf16.gmra.mxu0 %v5675_v23 }
  0xab   : > { %550 = vmatprep.mubr.bf16.mxu0 %v7298_v1 }
  0xb2   : > { %551 = vmatmul.mubr.bf16.gmra.mxu0 %v5676_v24 }
  0xb3   : > { %560 = vmatprep.mubr.bf16.mxu0 %v7298_v1 }
  0xba   : > { %561 = vmatmul.mubr.bf16.gmra.mxu0 %v5677_v25 }
  0xbb   : > { %570 = vmatprep.mubr.bf16.mxu0 %v7298_v1 }
  0xc2   : > { %571 = vmatmul.mubr.bf16.gmra.mxu0 %v5678_v26 }
  0xc3   : > { %580 = vmatprep.mubr.bf16.mxu0 %v7298_v1 }
  0xca   : > { %581 = vmatmul.mubr.bf16.gmra.mxu0 %v5679_v27 }
 0x142   : > { %v494_v29 = vpop.f32.mrf.mxu0 }
 0x143   : > { %v596_v30 = vadd.f32 %v6154_v28, %v494_v29 }
 0x144   : > { %v496_v31 = vpop.f32.mrf.mxu0 }
 0x145   : > { %v636_v33 = vmul.f32 0.1, %v596_v30  ;;  %vm616_vm0 = vcmp.ge.f32.partialorder %v596_v30, 0.0 }
 0x146   : > { %v497_v32 = vpop.f32.mrf.mxu0 }
 0x147   : > { %v597_v34 = vadd.f32 %v6154_v28, %v497_v32  ;;  %v656_v38 = vsel %vm616_vm0, %v596_v30, %v636_v33 }
 0x148   : > { %v499_v35 = vpop.f32.mrf.mxu0 }
 0x149   : > { %vm617_vm1 = vcmp.ge.f32.partialorder %v597_v34, 0.0  ;;  %v637_v36 = vmul.f32 0.1, %v597_v34 }
 0x14a   : > { %v502_v37 = vpop.f32.mrf.mxu0 }
 0x14b   : > { %v657_v39 = vsel %vm617_vm1, %v597_v34, %v637_v36  ;;  %v598_v40 = vadd.f32 %v6154_v28, %v502_v37 }
 0x14c   : > { %v5037_v41 = vpack.c.bf16 %v657_v39, %v656_v38  ;;  %v6159_v42 = vpop.f32.mrf.mxu0 }
 0x14d   : > { %7333 = vst [vmem:[#allocation23_spill] sm:$0xff] %v6159_v42  ;;  %v638_v44 = vmul.f32 0.1, %v598_v40  ;;  %vm618_vm2 = vcmp.ge.f32.partialorder %v598_v40, 0.0 }
 0x14e   : > { %5084 = vst [vmem:[#allocation3 + $0x8] sm:$0xff] %v5037_v41   ;;  %v506_v43 = vpop.f32.mrf.mxu0 }
 0x14f   : > { %v599_v45 = vadd.f32 %v6154_v28, %v506_v43  ;;  %v658_v49 = vsel %vm618_vm2, %v598_v40, %v638_v44 }
 0x150   : > { %v6162_v46 = vpop.f32.mrf.mxu0 }
 0x151   : > { %7334 = vst [vmem:[#allocation24_spill] sm:$0xff] %v6162_v46  ;;  %vm619_vm3 = vcmp.ge.f32.partialorder %v599_v45, 0.0  ;;  %v639_v47 = vmul.f32 0.1, %v599_v45 }
 0x152   : > { %v512_v48 = vpop.f32.mrf.mxu0 }
 0x153   : > { %v659_v50 = vsel %vm619_vm3, %v599_v45, %v639_v47  ;;  %v600_v51 = vadd.f32 %v6154_v28, %v512_v48 }
 0x154   : > { %v5042_v52 = vpack.c.bf16 %v659_v50, %v658_v49  ;;  %v6165_v53 = vpop.f32.mrf.mxu0 }
 0x155   : > { %7335 = vst [vmem:[#allocation25_spill] sm:$0xff] %v6165_v53  ;;  %v640_v55 = vmul.f32 0.1, %v600_v51  ;;  %vm620_vm4 = vcmp.ge.f32.partialorder %v600_v51, 0.0 }
 0x156   : > { %5085 = vst [vmem:[#allocation3 + $0x10] sm:$0xff] %v5042_v52   ;;  %v516_v54 = vpop.f32.mrf.mxu0 }
 0x157   : > { %v601_v56 = vadd.f32 %v6154_v28, %v516_v54  ;;  %v660_v60 = vsel %vm620_vm4, %v600_v51, %v640_v55 }
 0x158   : > { %v6168_v57 = vpop.f32.mrf.mxu0 }
 0x159   : > { %7336 = vst [vmem:[#allocation26_spill] sm:$0xff] %v6168_v57  ;;  %vm621_vm5 = vcmp.ge.f32.partialorder %v601_v56, 0.0  ;;  %v641_v58 = vmul.f32 0.1, %v601_v56 }
 0x15a   : > { %v522_v59 = vpop.f32.mrf.mxu0 }
 0x15b   : > { %v661_v61 = vsel %vm621_vm5, %v601_v56, %v641_v58  ;;  %v602_v62 = vadd.f32 %v6154_v28, %v522_v59 }
 0x15c   : > { %v5047_v63 = vpack.c.bf16 %v661_v61, %v660_v60  ;;  %v6171_v0 = vpop.f32.mrf.mxu0 }
 0x15d   : > { %7337 = vst [vmem:[#allocation27_spill] sm:$0xff] %v6171_v0  ;;  %v642_v3 = vmul.f32 0.1, %v602_v62  ;;  %vm622_vm6 = vcmp.ge.f32.partialorder %v602_v62, 0.0 }
 0x15e   : > { %5086 = vst [vmem:[#allocation3 + $0x18] sm:$0xff] %v5047_v63   ;;  %v526_v2 = vpop.f32.mrf.mxu0 }
 0x15f   : > { %v603_v4 = vadd.f32 %v6154_v28, %v526_v2  ;;  %v662_v8 = vsel %vm622_vm6, %v602_v62, %v642_v3 }
 0x160   : > { %v6174_v5 = vpop.f32.mrf.mxu0 }
 0x161   : > { %7338 = vst [vmem:[#allocation28_spill] sm:$0xff] %v6174_v5  ;;  %vm623_vm7 = vcmp.ge.f32.partialorder %v603_v4, 0.0  ;;  %v643_v6 = vmul.f32 0.1, %v603_v4 }
 0x162   : > { %v532_v7 = vpop.f32.mrf.mxu0 }
 0x163   : > { %v663_v9 = vsel %vm623_vm7, %v603_v4, %v643_v6  ;;  %v604_v10 = vadd.f32 %v6154_v28, %v532_v7 }
 0x164   : > { %v5052_v11 = vpack.c.bf16 %v663_v9, %v662_v8  ;;  %v6177_v12 = vpop.f32.mrf.mxu0 }
 0x165   : > { %7339 = vst [vmem:[#allocation29_spill] sm:$0xff] %v6177_v12  ;;  %v644_v14 = vmul.f32 0.1, %v604_v10  ;;  %vm624_vm8 = vcmp.ge.f32.partialorder %v604_v10, 0.0 }
 0x166   : > { %5087 = vst [vmem:[#allocation3 + $0x20] sm:$0xff] %v5052_v11   ;;  %v536_v13 = vpop.f32.mrf.mxu0 }
 0x167   : > { %v605_v15 = vadd.f32 %v6154_v28, %v536_v13  ;;  %v664_v19 = vsel %vm624_vm8, %v604_v10, %v644_v14 }
 0x168   : > { %v6180_v16 = vpop.f32.mrf.mxu0 }
 0x169   : > { %7340 = vst [vmem:[#allocation30_spill] sm:$0xff] %v6180_v16  ;;  %vm625_vm9 = vcmp.ge.f32.partialorder %v605_v15, 0.0  ;;  %v645_v17 = vmul.f32 0.1, %v605_v15 }
 0x16a   : > { %v542_v18 = vpop.f32.mrf.mxu0 }
 0x16b   : > { %v665_v20 = vsel %vm625_vm9, %v605_v15, %v645_v17  ;;  %v606_v21 = vadd.f32 %v6154_v28, %v542_v18 }
 0x16c   : > { %v5057_v22 = vpack.c.bf16 %v665_v20, %v664_v19  ;;  %v6183_v23 = vpop.f32.mrf.mxu0 }
 0x16d   : > { %7341 = vst [vmem:[#allocation31_spill] sm:$0xff] %v6183_v23  ;;  %v646_v25 = vmul.f32 0.1, %v606_v21  ;;  %vm626_vm10 = vcmp.ge.f32.partialorder %v606_v21, 0.0 }
 0x16e   : > { %5088 = vst [vmem:[#allocation3 + $0x28] sm:$0xff] %v5057_v22   ;;  %v546_v24 = vpop.f32.mrf.mxu0 }
 0x16f   : > { %v607_v26 = vadd.f32 %v6154_v28, %v546_v24  ;;  %v666_v31 = vsel %vm626_vm10, %v606_v21, %v646_v25 }
 0x170   : > { %v6186_v27 = vpop.f32.mrf.mxu0 }
 0x171   : > { %7342 = vst [vmem:[#allocation32_spill] sm:$0xff] %v6186_v27  ;;  %vm627_vm11 = vcmp.ge.f32.partialorder %v607_v26, 0.0  ;;  %v647_v29 = vmul.f32 0.1, %v607_v26 }
 0x172   : > { %v552_v30 = vpop.f32.mrf.mxu0 }
 0x173   : > { %v667_v32 = vsel %vm627_vm11, %v607_v26, %v647_v29  ;;  %v608_v33 = vadd.f32 %v6154_v28, %v552_v30 }
 0x174   : > { %v5062_v34 = vpack.c.bf16 %v667_v32, %v666_v31  ;;  %v6189_v35 = vpop.f32.mrf.mxu0 }
 0x175   : > { %7343 = vst [vmem:[#allocation33_spill] sm:$0xff] %v6189_v35  ;;  %v648_v37 = vmul.f32 0.1, %v608_v33  ;;  %vm628_vm12 = vcmp.ge.f32.partialorder %v608_v33, 0.0 }
 0x176   : > { %5089 = vst [vmem:[#allocation3 + $0x30] sm:$0xff] %v5062_v34   ;;  %v556_v36 = vpop.f32.mrf.mxu0 }
 0x177   : > { %v609_v38 = vadd.f32 %v6154_v28, %v556_v36  ;;  %v668_v43 = vsel %vm628_vm12, %v608_v33, %v648_v37 }
 0x178   : > { %v6192_v39 = vpop.f32.mrf.mxu0 }
 0x179   : > { %7344 = vst [vmem:[#allocation34_spill] sm:$0xff] %v6192_v39  ;;  %vm629_vm13 = vcmp.ge.f32.partialorder %v609_v38, 0.0  ;;  %v649_v40 = vmul.f32 0.1, %v609_v38 }
 0x17a   : > { %v562_v41 = vpop.f32.mrf.mxu0 }
 0x17b   : > { %v669_v44 = vsel %vm629_vm13, %v609_v38, %v649_v40  ;;  %v610_v45 = vadd.f32 %v6154_v28, %v562_v41 }
 0x17c   : > { %v5067_v47 = vpack.c.bf16 %v669_v44, %v668_v43  ;;  %v6195_v48 = vpop.f32.mrf.mxu0 }
 0x17d   : > { %7345 = vst [vmem:[#allocation35_spill] sm:$0xff] %v6195_v48  ;;  %v650_v50 = vmul.f32 0.1, %v610_v45  ;;  %vm630_vm14 = vcmp.ge.f32.partialorder %v610_v45, 0.0 }
 0x17e   : > { %5090 = vst [vmem:[#allocation3 + $0x38] sm:$0xff] %v5067_v47   ;;  %v566_v49 = vpop.f32.mrf.mxu0 }
 0x17f   : > { %v611_v51 = vadd.f32 %v6154_v28, %v566_v49  ;;  %v670_v56 = vsel %vm630_vm14, %v610_v45, %v650_v50 }
 0x180   : > { %v6198_v52 = vpop.f32.mrf.mxu0 }
 0x181   : > { %7346 = vst [vmem:[#allocation36_spill] sm:$0xff] %v6198_v52  ;;  %vm631_vm15 = vcmp.ge.f32.partialorder %v611_v51, 0.0  ;;  %v651_v54 = vmul.f32 0.1, %v611_v51 }
 0x182   : > { %v572_v55 = vpop.f32.mrf.mxu0 }
 0x183   : > { %v671_v58 = vsel %vm631_vm15, %v611_v51, %v651_v54  ;;  %v612_v59 = vadd.f32 %v6154_v28, %v572_v55 }
 0x184   : > { %v5072_v60 = vpack.c.bf16 %v671_v58, %v670_v56  ;;  %v6201_v61 = vpop.f32.mrf.mxu0 }
 0x185   : > { %7347 = vst [vmem:[#allocation37_spill] sm:$0xff] %v6201_v61  ;;  %v652_v63 = vmul.f32 0.1, %v612_v59  ;;  %vm632_vm0 = vcmp.ge.f32.partialorder %v612_v59, 0.0 }
 0x186   : > { %5091 = vst [vmem:[#allocation3 + $0x40] sm:$0xff] %v5072_v60   ;;  %v576_v62 = vpop.f32.mrf.mxu0 }
 0x187   : > { %v613_v2 = vadd.f32 %v6154_v28, %v576_v62  ;;  %v672_v7 = vsel %vm632_vm0, %v612_v59, %v652_v63 }
 0x188   : > { %v6204_v3 = vpop.f32.mrf.mxu0 }
 0x189   : > { %7348 = vst [vmem:[#allocation38_spill] sm:$0xff] %v6204_v3  ;;  %vm633_vm1 = vcmp.ge.f32.partialorder %v613_v2, 0.0  ;;  %v653_v4 = vmul.f32 0.1, %v613_v2 }
 0x18a   : > { %v582_v6 = vpop.f32.mrf.mxu0 }
 0x18b   : > { %v673_v8 = vsel %vm633_vm1, %v613_v2, %v653_v4  ;;  %v614_v9 = vadd.f32 %v6154_v28, %v582_v6 }
 0x18c   : > { %v5077_v10 = vpack.c.bf16 %v673_v8, %v672_v7  ;;  %v584_v11 = vpop.f32.mrf.mxu0 }
 0x18d   : > { %v654_v14 = vmul.f32 0.1, %v614_v9  ;;  %vm634_vm2 = vcmp.ge.f32.partialorder %v614_v9, 0.0 }
 0x18e   : > { %5092 = vst [vmem:[#allocation3 + $0x48] sm:$0xff] %v5077_v10   ;;  %v585_v13 = vpop.f32.mrf.mxu0 }
 0x18f   : > { %v615_v15 = vadd.f32 %v6154_v28, %v585_v13  ;;  %v674_v19 = vsel %vm634_vm2, %v614_v9, %v654_v14 }
 0x190   : > { %v587_v17 = vpop.f32.mrf.mxu0 }
 0x191   : > { %vm635_vm3 = vcmp.ge.f32.partialorder %v615_v15, 0.0  ;;  %v655_v18 = vmul.f32 0.1, %v615_v15 }
 0x192   : > { %778 = sbr.rel (%p4850_p8) target bundleno = 409 (0x199), region = 60 }
 0x193   : > { %v675_v20 = vsel %vm635_vm3, %v615_v15, %v655_v18 }
 0x194   : > { %v5082_v21 = vpack.c.bf16 %v675_v20, %v674_v19 }
 0x196   : > { %5093 = vst [vmem:[#allocation3 + $0x50] sm:$0xff] %v5082_v21  }
 0x197   : > { %v5963_v22 = vmov 0  }
 0x198   : > { %779 = vst [vmem:[#allocation3 + $0x8] sm:$0xf] %v5963_v22  ;;  %780 = vst [vmem:[#allocation3 + $0xc] sm:$0xf] %v5963_v22 }
 0x199 PF: > { %p4851_p10 = scmp.ne.s32.totalorder %s5936_s24, 1 }
 0x19b   : > { %784 = sbr.rel (%p4851_p10) target bundleno = 418 (0x1a2), region = 64 }
 0x1a0   : > { %v5964_v24 = vmov 0  }
 0x1a1   : > { %785 = vst [vmem:[#allocation3 + $0x50] sm:$0xf] %v5964_v24  ;;  %786 = vst [vmem:[#allocation3 + $0x54] sm:$0xf] %v5964_v24 }
 0x1a2 PF: > { %v5680_v28 = vld [vmem:[#allocation9 + $0x38] sm:$0xff]   ;;  %v849_v25 = vlaneseq  ;;  %v5681_v26 = vld [vmem:[#allocation9 + $0x30] sm:$0xff]   ;;  %v5682_v30 = vld [vmem:[#allocation9 + $0x28] sm:$0xff]   ;;  %vm5965_vm7 = vmmov 1   ;;  %vm1171_vm10 = vsmask.f32 3328 }
 0x1a3   : > { %5238 = vmatprep.subr.bf16.mxu1 %v5680_v28  ;;  %v5683_v34 = vld [vmem:[#allocation9 + $0x20] sm:$0xff]   ;;  %vm1140_vm8 = vmpackc.low %vm5965_vm7, %vm5965_vm7  ;;  %v5684_v50 = vld [vmem:[#allocation9 + $0x18] sm:$0xff]   ;;  %vm1172_vm11 = vsmask.f32 7440  ;;  %s5007_s13 = sshll.u32 %s5940_s25, 5  ;;  %s4694_s18 = sshll.u32 %s6139_s1, 4  ;;  %s7224_s18 = int_to_ptr.vmem [resolvable:$true] %s4694_s18 }
 0x1a4   : > { %v6210_v29 = vshrl.u32 %v849_v25, 7  ;;  %5239 = vmatpush3.bf16.msra.mxu1 %v5680_v28  ;;  %v6217_v38 = vsel %vm1140_vm8, 65537, %v7298_v1  ;;  %v1090_v43 = vld [vmem:[#allocation3 + $0x4] sm:$0x8]  ;;  %v5685_v62 = vld [vmem:[#allocation9 + $0x10] sm:$0xff]   ;;  %vm6233_vm13 = vmor %vm1171_vm10, %vm1172_vm11  ;;  %s4691_s14 = sadd.s32 %s5012_s8, %s5007_s13  ;;  %s7499_s29 = sand.u32 1, %s5928_s22  }
 0x1a5   : > { %5240 = vmatprep.subr.bf16.mxu1 %v5681_v26  ;;  %v7297_v47 = vshll.u32 %v6217_v38, 16  ;;  %v7300_v49 = vshrl.u32 %v6217_v38, 16  ;;  %v1091_v9 = vld [vmem:[#allocation3 + $0x8] sm:$0xf]  ;;  %v5690_v18 = vld [vmem:[#allocation9 + $0xf8] sm:$0xff]   ;;  %s5008_s25 = sshll.u32 %s4691_s14, 7 }
 0x1a6   : > { %v852_v31 = vadd.s32 16, %v6210_v29  ;;  %v870_v32 = vand.u32 15, %v6210_v29  ;;  %v854_v37 = vadd.s32 32, %v6210_v29  ;;  %v856_v41 = vadd.s32 48, %v6210_v29  ;;  %v1092_v19 = vld [vmem:[#allocation3 + $0xc] sm:$0xf]  ;;  %5334 = vmatprep.subr.bf16.mxu0 %v5690_v18  ;;  %s7222_s16 = scalar_lea.hbm %s7287_s6, %s5008_s25 }
 0x1a7   : > { %v6227_v58 = vrot.slane %v7297_v47, 5  ;;  %v1190_v59 = vrot.slane %v7300_v49, 4  ;;  %v858_v13 = vadd.s32 64, %v6210_v29  ;;  %v1093_v28 = vld [vmem:[#allocation3 + $0x10] sm:$0xf]  ;;  %5335 = vmatpush3.bf16.msra.mxu0 %v5690_v18  ;;  %s7230_s10 = scalar_lea.sflag [#allocation8], %s7499_s29 }
 0x1a8   : > { %v884_v33 = vand.u32 15, %v852_v31  ;;  %5241 = vmatpush3.bf16.msra.mxu1 %v5681_v26  ;;  %vm1058_vm4 = vcmp.ne.s32.totalorder %v870_v32, 0  ;;  %v898_v60 = vand.u32 15, %v854_v37  ;;  %v912_v11 = vand.u32 15, %v856_v41  ;;  %v5686_v32 = vld [vmem:[#allocation9 + $0x8] sm:$0xff]   ;;  %s5850_s19 = scalar_lea.vmem %s7224_s18, 2048 }
 0x1a9   : > { %5242 = vmatprep.subr.bf16.mxu1 %v5682_v30  ;;  %vm1139_vm6 = vmpackc.low %vm1058_vm4, %vm1058_vm4  ;;  %v1191_v7 = vor.u32 %v1190_v59, %v6227_v58  ;;  %v6259_v31 = vadd.s32 80, %v6210_v29  ;;  %vm7293_vm4 = vsmask.f32 4352  ;;  %v1094_v37 = vld [vmem:[#allocation3 + $0x14] sm:$0xf]  ;;  %v5687_v59 = vld [vmem:[#allocation9] sm:$0xff]   ;;  %p5851_p12 = scmp.ne.s32.totalorder %s7224_s18, %s5850_s19 }
 0x1aa   : > { %vm1060_vm5 = vcmp.ne.s32.totalorder %v884_v33, 0  ;;  %v1155_v36 = vsel %vm1139_vm6, 65537, %v7298_v1  ;;  %vm1062_vm14 = vcmp.ne.s32.totalorder %v898_v60, 0  ;;  %vm6245_vm0 = vcmp.ne.s32.totalorder %v912_v11, 0  ;;  %v3226_v48 = vld [vmem:[#allocation3 + $0x20] sm:$0xf] }
 0x1ab   : > { %vm1141_vm9 = vmpackc.low %vm1060_vm5, %vm1060_vm5  ;;  %v1175_v40 = vshll.u32 %v1155_v36, 16  ;;  %v1178_v45 = vshrl.u32 %v1155_v36, 16  ;;  %v6242_v15 = vrot.slane %v1191_v7, 4  ;;  %v5692_v7 = vld [vmem:[#allocation9 + $0xf0] sm:$0xff]   ;;  %v1994_v46 = vld [vmem:[#allocation3 + $0x38] sm:$0xf]  ;;  %p5852_p0 = pnand %p5851_p12, %p6056_p3 }
 0x1ac   : > { %5243 = vmatpush3.bf16.msra.mxu1 %v5682_v30  ;;  %v1157_v44 = vsel %vm1141_vm9, 65537, %v7298_v1  ;;  %vm1143_vm15 = vmpackc.low %vm1062_vm14, %vm1062_vm14  ;;  %v926_v30 = vand.u32 15, %v858_v13  ;;  %v1096_v13 = vld [vmem:[#allocation3 + $0x1c] sm:$0xf]  ;;  %5336 = vmatprep.subr.bf16.mxu0 %v5692_v7  ;;  %v1992_v12 = vld [vmem:[#allocation3 + $0x30] sm:$0xf] }
 0x1ad   : > { %5244 = vmatprep.subr.bf16.mxu1 %v5683_v34  ;;  %v6223_v51 = vrot.slane %v1175_v40, 5  ;;  %v1194_v54 = vshll.u32 %v1157_v44, 16  ;;  %v1198_v55 = vshrl.u32 %v1157_v44, 16  ;;  %v1180_v56 = vrot.slane %v1178_v45, 4  ;;  %vm1145_vm1 = vmpackc.low %vm6245_vm0, %vm6245_vm0  ;;  %5337 = vmatpush3.bf16.msra.mxu0 %v5692_v7  ;;  %v3232_v57 = vld [vmem:[#allocation3 + $0x38] sm:$0xf]  ;;  %p5853_p1 = pneg %p5852_p0 }
 0x1ae   : > { %v1159_v17 = vsel %vm1143_vm15, 65537, %v7298_v1  ;;  %vm6297_vm7 = vcmp.ne.s32.totalorder %v926_v30, 0  ;;  %v5694_v30 = vld [vmem:[#allocation9 + $0xe8] sm:$0xff]   ;;  %v5763_v36 = vld [vmem:[#allocation3 + $0x38] sm:$0xff]   ;;  %s5966_s20 = smov [#allocation11]  }
 0x1af   : > { %v1196_v63 = vrot.slane %v1194_v54, 5  ;;  %v1200_v2 = vrot.slane %v1198_v55, 4  ;;  %vm7292_vm12 = vcmp.ne.s16.totalorder %v6223_v51, 0  ;;  %v1181_v6 = vor.u32 %v1180_v56, %v6223_v51  ;;  %vm1147_vm8 = vmpackc.low %vm6297_vm7, %vm6297_vm7  ;;  %5338 = vmatprep.subr.bf16.mxu0 %v5694_v30  ;;  %v4234_v41 = vld [vmem:[#allocation3 + $0x18] sm:$0xf]  ;;  %s5854_s3 = sshll.u32 %s5966_s20, 4  ;;  %s5855_s3 = int_to_ptr.vmem [resolvable:$false] %s5854_s3 }
 0x1b0   : > { %5245 = vmatpush3.bf16.msra.mxu1 %v5683_v34  ;;  %v1350_v8 = vsel %vm7292_vm12, %v1090_v43, 0  ;;  %v1214_v21 = vshll.u32 %v1159_v17, 16  ;;  %v1218_v22 = vshrl.u32 %v1159_v17, 16  ;;  %v1161_v56 = vsel %vm1145_vm1, 65537, %v7298_v1  ;;  %s5856_s27 = scalar_lea.vmem %s5855_s3, 4096  ;;  %p5857_p11 = scmp.lt.s32.totalorder %s7224_s18, %s5855_s3 }
 0x1b1   : > { %5246 = vmatprep.subr.bf16.mxu1 %v5684_v50  ;;  %v1201_v10 = vor.u32 %v1200_v2, %v1196_v63  ;;  %v1182_v14 = vrot.slane %v1181_v6, 4  ;;  %v1197_v26 = vsel %vm6233_vm13, %v6242_v15, %v1196_v63  ;;  %v1234_v6 = vshll.u32 %v1161_v56, 16  ;;  %5339 = vmatpush3.bf16.msra.mxu0 %v5694_v30  ;;  %v5761_v2 = vld [vmem:[#allocation9 + $0x198] sm:$0xff]   ;;  %p5858_p13 = scmp.lt.s32.totalorder %s5856_s27, %s5850_s19 }
 0x1b2   : > { %vm6268_vm3 = vcmp.ne.s16.totalorder %v1197_v26, 0  ;;  %v1216_v40 = vrot.slane %v1214_v21, 5  ;;  %v1220_v45 = vrot.slane %v1218_v22, 4 }
 0x1b3   : > { %v1202_v20 = vrot.slane %v1201_v10, 4  ;;  %v1187_v25 = vsel %vm6233_vm13, %v1182_v14, %v6227_v58  ;;  %v1352_v44 = vsel %vm6268_vm3, %v1092_v19, 0  ;;  %v1095_v10 = vld [vmem:[#allocation3 + $0x18] sm:$0xf]  ;;  %v1238_v14 = vshrl.u32 %v1161_v56, 16  ;;  %p5859_p2 = por %p5858_p13, %p5857_p11 }
 0x1b4   : > { %5247 = vmatpush3.bf16.msra.mxu1 %v5684_v50  ;;  %vm6264_vm2 = vcmp.ne.s16.totalorder %v1187_v25, 0  ;;  %v1217_v55 = vsel %vm6233_vm13, %v6242_v15, %v1216_v40  ;;  %v1221_v63 = vor.u32 %v1220_v45, %v1216_v40  ;;  %v1236_v19 = vrot.slane %v1234_v6, 5 }
 0x1b5   : > { %5248 = vmatprep.subr.bf16.mxu1 %v5685_v62  ;;  %v1207_v33 = vsel %vm6233_vm13, %v1202_v20, %v6227_v58  ;;  %v1351_v43 = vsel %vm6264_vm2, %v1091_v9, 0  ;;  %vm6291_vm6 = vcmp.ne.s16.totalorder %v1217_v55, 0  ;;  %v1240_v22 = vrot.slane %v1238_v14, 4  ;;  %v6326_v14 = vld [vmem:[#allocation3 + $0x24] sm:$0xf]  ;;  %p5860_p4 = pnand %p5859_p2, %p5853_p1 }
 0x1b6   : > { %vm6272_vm5 = vcmp.ne.s16.totalorder %v1207_v33, 0  ;;  %v4854_v54 = vcombine.low %v1350_v8, %v1351_v43  ;;  %v1354_v11 = vsel %vm6291_vm6, %v1094_v37, 0  ;;  %v1222_v18 = vrot.slane %v1221_v63, 4 }
 0x1b7   : > { %v1353_v50 = vsel %vm6272_vm5, %v1093_v28, 0  ;;  %v1237_v33 = vsel %vm6233_vm13, %v6242_v15, %v1236_v19  ;;  %v7363_v40 = vmov 0  ;;  %v1241_v43 = vor.u32 %v1240_v22, %v1236_v19 }
 0x1b8   : > { %5249 = vmatpush3.bf16.msra.mxu1 %v5685_v62  ;;  %v4855_v60 = vcombine.low %v1352_v44, %v1353_v50  ;;  %v1444_v8 = vshrl.u32 %v4854_v54, 16  ;;  %v1447_v9 = vshll.u32 %v4854_v54, 16  ;;  %v1227_v26 = vsel %vm6233_vm13, %v1222_v18, %v6227_v58 }
 0x1b9   : > { %5250 = vmatprep.subr.bf16.mxu1 %v5686_v32  ;;  %vm6310_vm9 = vcmp.ne.s16.totalorder %v1227_v26, 0  ;;  %vm6316_vm10 = vcmp.ne.s16.totalorder %v1237_v33, 0  ;;  %v7365_v44 = vmov 0  ;;  %v1163_v55 = vsel %vm1147_vm8, 65537, %v7298_v1 }
 0x1ba   : > { %v1452_v17 = vshrl.u32 %v4855_v60, 16  ;;  %v1455_v62 = vshll.u32 %v4855_v60, 16  ;;  %v1446_v20 = vrot.slane %v1444_v8, 3  ;;  %v1449_v21 = vrot.slane %v1447_v9, 4  ;;  %v1097_v60 = vld [vmem:[#allocation3 + $0x20] sm:$0xf] }
 0x1bb   : > { %v7364_v40 = vsel %vm6310_vm9, 4294967295, %v7363_v40  ;;  %v7366_v44 = vsel %vm6316_vm10, 4294967295, %v7365_v44  ;;  %v1355_v50 = vsel %vm6310_vm9, %v1095_v10, 0  ;;  %v1356_v54 = vsel %vm6316_vm10, %v1096_v13, 0  ;;  %v5696_v8 = vld [vmem:[#allocation9 + $0xe0] sm:$0xff]  }
 0x1bc   : > { %5251 = vmatpush3.bf16.msra.mxu1 %v5686_v32  ;;  %v1454_v28 = vrot.slane %v1452_v17, 3  ;;  %v1457_v25 = vrot.slane %v1455_v62, 4  ;;  %v1450_v37 = vor.u32 %v1449_v21, %v1446_v20  ;;  %v6314_v32 = vld [vmem:[#allocation9 + $0x78] sm:$0xff]   ;;  %v4856_v56 = vcombine.low %v1354_v11, %v1355_v50  ;;  %5340 = vmatprep.subr.bf16.mxu0 %v5696_v8 }
 0x1bd   : > { %5252 = vmatprep.subr.bf16.mxu1 %v5687_v59  ;;  %v1242_v63 = vrot.slane %v1241_v43, 4  ;;  %v1254_v6 = vshll.u32 %v1163_v55, 16  ;;  %v1258_v7 = vshrl.u32 %v1163_v55, 16  ;;  %v940_v10 = vand.u32 15, %v6259_v31  ;;  %5341 = vmatpush3.bf16.msra.mxu0 %v5696_v8  ;;  %v1099_v8 = vld [vmem:[#allocation3 + $0x28] sm:$0xf] }
 0x1be   : > { %v1458_v45 = vor.u32 %v1457_v25, %v1454_v28  ;;  %v862_v17 = vadd.s32 96, %v6210_v29  ;;  %v1461_v13 = vshrl.u32 %v4856_v56, 16  ;;  %v1464_v62 = vshll.u32 %v4856_v56, 16  ;;  %v5698_v28 = vld [vmem:[#allocation9 + $0xd8] sm:$0xff]   ;;  %v5689_v56 = vld [vmem:[#allocation9 + $0x70] sm:$0xff]  }
 0x1bf   : > { %v1247_v11 = vsel %vm6233_vm13, %v1242_v63, %v6227_v58  ;;  %v1256_v18 = vrot.slane %v1254_v6, 5  ;;  %v1260_v19 = vrot.slane %v1258_v7, 4  ;;  %vm1068_vm14 = vcmp.ne.s32.totalorder %v940_v10, 0  ;;  %5342 = vmatprep.subr.bf16.mxu0 %v5698_v28 }
 0x1c0   : > { %5253 = vmatpush3.bf16.msra.mxu1 %v5687_v59  ;;  %v1459_v9 = vsel %vm7293_vm4, %v1450_v37, %v1458_v45  ;;  %vm6334_vm11 = vcmp.ne.s16.totalorder %v1247_v11, 0  ;;  %v954_v20 = vand.u32 15, %v862_v17  ;;  %v1463_v31 = vrot.slane %v1461_v13, 3  ;;  %vm1149_vm15 = vmpackc.low %vm1068_vm14, %vm1068_vm14  ;;  %v5700_v17 = vld [vmem:[#allocation9 + $0xd0] sm:$0xff]  }
 0x1c1   : > { %5254 = vmatprep.mubr.bf16.mxu1 %v1459_v9  ;;  %5270 = vmatprep.subr.bf16.mxu1 %v6314_v32  ;;  %v1466_v21 = vrot.slane %v1464_v62, 4  ;;  %v1357_v22 = vsel %vm6334_vm11, %v1097_v60, 0  ;;  %v1257_v24 = vsel %vm6233_vm13, %v6242_v15, %v1256_v18  ;;  %v1261_v26 = vor.u32 %v1260_v19, %v1256_v18  ;;  %v5691_v18 = vld [vmem:[#allocation9 + $0x68] sm:$0xff]  }
 0x1c2   : > { %v4857_v25 = vcombine.low %v1356_v54, %v1357_v22  ;;  %vm6343_vm0 = vcmp.ne.s16.totalorder %v1257_v24, 0  ;;  %v1165_v30 = vsel %vm1149_vm15, 65537, %v7298_v1  ;;  %vm6351_vm1 = vcmp.ne.s32.totalorder %v954_v20, 0  ;;  %5343 = vmatpush3.bf16.msra.mxu0 %v5698_v28  ;;  %v1106_v54 = vld [vmem:[#allocation3 + $0x44] sm:$0xf] }
 0x1c3   : > { %v1467_v37 = vor.u32 %v1466_v21, %v1463_v31  ;;  %v1358_v43 = vsel %vm6343_vm0, %v6326_v14, 0  ;;  %v1274_v50 = vshll.u32 %v1165_v30, 16  ;;  %v1278_v55 = vshrl.u32 %v1165_v30, 16  ;;  %vm1151_vm7 = vmpackc.low %vm6351_vm1, %vm6351_vm1  ;;  %5344 = vmatprep.subr.bf16.mxu0 %v5700_v17 }
 0x1c4   : > { %v1470_v60 = vshrl.u32 %v4857_v25, 16  ;;  %v1473_v63 = vshll.u32 %v4857_v25, 16  ;;  %v1262_v6 = vrot.slane %v1261_v26, 4  ;;  %v864_v14 = vadd.s32 112, %v6210_v29  ;;  %v1101_v25 = vld [vmem:[#allocation3 + $0x30] sm:$0xf] }
 0x1c5   : > { %v1468_v7 = vsel %vm7293_vm4, %v1458_v45, %v1467_v37  ;;  %v1276_v9 = vrot.slane %v1274_v50, 5  ;;  %v1280_v10 = vrot.slane %v1278_v55, 4  ;;  %v1100_v45 = vld [vmem:[#allocation3 + $0x2c] sm:$0xf]  ;;  %v1167_v19 = vsel %vm1151_vm7, 65537, %v7298_v1 }
 0x1c6   : > { %5255 = vmatmul.mubr.bf16.vlgmr.msra.gmra.mxu1 %v1468_v7  ;;  %v1472_v13 = vrot.slane %v1470_v60, 3  ;;  %v1475_v62 = vrot.slane %v1473_v63, 4  ;;  %v1267_v11 = vsel %vm6233_vm13, %v1262_v6, %v6227_v58  ;;  %v1294_v22 = vshll.u32 %v1167_v19, 16  ;;  %v5702_v50 = vld [vmem:[#allocation9 + $0xc8] sm:$0xff]   ;;  %5345 = vmatpush3.bf16.msra.mxu0 %v5700_v17  ;;  %v5693_v17 = vld [vmem:[#allocation9 + $0x60] sm:$0xff]  }
 0x1c7   : > { %5271 = vmatpush3.bf16.msra.mxu1 %v6314_v32  ;;  %vm6365_vm8 = vcmp.ne.s16.totalorder %v1267_v11, 0  ;;  %v1277_v31 = vsel %vm6233_vm13, %v6242_v15, %v1276_v9  ;;  %v1281_v21 = vor.u32 %v1280_v10, %v1276_v9  ;;  %v7375_v26 = vmov 0  ;;  %v6378_v32 = vld [vmem:[#allocation3 + $0x34] sm:$0xf]  ;;  %5346 = vmatprep.subr.bf16.mxu0 %v5702_v50 }
 0x1c8   : > { %5272 = vmatprep.subr.bf16.mxu1 %v5689_v56  ;;  %v1476_v24 = vor.u32 %v1475_v62, %v1472_v13  ;;  %v1359_v28 = vsel %vm6365_vm8, %v1099_v8, 0  ;;  %vm6374_vm14 = vcmp.ne.s16.totalorder %v1277_v31, 0  ;;  %v1298_v30 = vshrl.u32 %v1167_v19, 16  ;;  %v1103_v31 = vld [vmem:[#allocation3 + $0x38] sm:$0xf] }
 0x1c9   : > { %v7376_v26 = vsel %vm6374_vm14, 4294967295, %v7375_v26  ;;  %v4858_v55 = vcombine.low %v1358_v43, %v1359_v28  ;;  %v1282_v60 = vrot.slane %v1281_v21, 4  ;;  %v1360_v63 = vsel %vm6374_vm14, %v1100_v45, 0 }
 0x1ca   : > { %v1296_v6 = vrot.slane %v1294_v22, 5  ;;  %v1477_v7 = vsel %vm7293_vm4, %v1467_v37, %v1476_v24  ;;  %v1300_v8 = vrot.slane %v1298_v30, 4  ;;  %v968_v9 = vand.u32 15, %v864_v14  ;;  %5347 = vmatpush3.bf16.msra.mxu0 %v5702_v50  ;;  %v5695_v30 = vld [vmem:[#allocation9 + $0x58] sm:$0xff]  }
 0x1cb   : > { %vm7294_vm15 = vcmp.ne.s16.totalorder %v6242_v15, 0  ;;  %5273 = vmatpush3.bf16.msra.mxu1 %v5689_v56  ;;  %5258 = vmatprep.mubr.bf16.mxu1 %v1477_v7  ;;  %v1479_v10 = vshrl.u32 %v4858_v55, 16  ;;  %v1482_v13 = vshll.u32 %v4858_v55, 16  ;;  %v1287_v43 = vsel %vm6233_vm13, %v1282_v60, %v6227_v58  ;;  %v1104_v50 = vld [vmem:[#allocation3 + $0x3c] sm:$0xf] }
 0x1cc   : > { %v1297_v62 = vsel %vm6233_vm13, %v6242_v15, %v1296_v6  ;;  %5274 = vmatprep.subr.bf16.mxu1 %v5691_v18  ;;  %vm6390_vm1 = vcmp.ne.s16.totalorder %v1287_v43, 0  ;;  %v7377_v37 = vmov 0  ;;  %v1301_v14 = vor.u32 %v1300_v8, %v1296_v6  ;;  %v5706_v6 = vld [vmem:[#allocation9 + $0xc0] sm:$0xff]  }
 0x1cd   : > { %v7378_v37 = vsel %vm6390_vm1, 4294967295, %v7377_v37  ;;  %vm6394_vm7 = vcmp.ne.s16.totalorder %v1297_v62, 0  ;;  %v7379_v56 = vmov 0  ;;  %vm1072_vm12 = vcmp.ne.s32.totalorder %v968_v9, 0  ;;  %5348 = vmatprep.subr.bf16.mxu0 %v5706_v6 }
 0x1ce   : > { %v7380_v56 = vsel %vm6394_vm7, 4294967295, %v7379_v56  ;;  %v1481_v11 = vrot.slane %v1479_v10, 3  ;;  %v1484_v45 = vrot.slane %v1482_v13, 4  ;;  %v1361_v19 = vsel %vm6390_vm1, %v1101_v25, 0  ;;  %vm1153_vm4 = vmpackc.low %vm1072_vm12, %vm1072_vm12  ;;  %5349 = vmatpush3.bf16.msra.mxu0 %v5706_v6 }
 0x1cf   : > { %v1362_v21 = vsel %vm6394_vm7, %v6378_v32, 0  ;;  %v4859_v22 = vcombine.low %v1360_v63, %v1361_v19  ;;  %v1302_v28 = vrot.slane %v1301_v14, 4  ;;  %v1169_v55 = vsel %vm1153_vm4, 65537, %v7298_v1  ;;  %5275 = vmatpush3.bf16.msra.mxu1 %v5691_v18 }
 0x1d0   : > { %v1366_v60 = vsel %vm7294_vm15, %v1106_v54, 0  ;;  %v1485_v7 = vor.u32 %v1484_v45, %v1481_v11  ;;  %v1314_v8 = vshll.u32 %v1169_v55, 16  ;;  %v1318_v25 = vshrl.u32 %v1169_v55, 16  ;;  %5276 = vmatprep.subr.bf16.mxu1 %v5693_v17  ;;  %v5697_v45 = vld [vmem:[#allocation9 + $0x50] sm:$0xff]  }
 0x1d1   : > { %v4862_v9 = vcombine.low %v1366_v60, %v1366_v60  ;;  %v1488_v10 = vshrl.u32 %v4859_v22, 16  ;;  %v1491_v13 = vshll.u32 %v4859_v22, 16  ;;  %v1307_v32 = vsel %vm6233_vm13, %v1302_v28, %v6227_v58  ;;  %v2573_v60 = vld [vmem:[#allocation3 + $0xc] sm:$0x8] }
 0x1d2   : > { %vm7381_vm12 = vsmask.f32 4352  ;;  %vm6410_vm4 = vcmp.ne.s16.totalorder %v1307_v32, 0  ;;  %v7382_v43 = vmov 0  ;;  %v1316_v54 = vrot.slane %v1314_v8, 5 }
 0x1d3   : > { %v1486_v63 = vsel %vm7381_vm12, %v1476_v24, %v1485_v7  ;;  %v7383_v43 = vsel %vm6410_vm4, 4294967295, %v7382_v43  ;;  %v1320_v18 = vrot.slane %v1318_v25, 4  ;;  %v1490_v62 = vrot.slane %v1488_v10, 3  ;;  %5277 = vmatpush3.bf16.msra.mxu1 %v5693_v17  ;;  %v2574_v8 = vld [vmem:[#allocation3 + $0x10] sm:$0xf]  ;;  %v6419_v25 = vld [vmem:[#allocation9 + $0x178] sm:$0xff]  }
 0x1d4   : > { %5259 = vmatmul.mubr.bf16.gmra.mxu1 %v1486_v63  ;;  %v1493_v14 = vrot.slane %v1491_v13, 4  ;;  %v1363_v11 = vsel %vm6410_vm4, %v1103_v31, 0  ;;  %v1515_v19 = vshrl.u32 %v4862_v9, 16  ;;  %v1317_v24 = vsel %vm6233_vm13, %v6242_v15, %v1316_v54  ;;  %5278 = vmatprep.subr.bf16.mxu1 %v5695_v30  ;;  %v1105_v10 = vld [vmem:[#allocation3 + $0x40] sm:$0xf] }
 0x1d5   : > { %v4860_v22 = vcombine.low %v1362_v21, %v1363_v11  ;;  %v1321_v28 = vor.u32 %v1320_v18, %v1316_v54  ;;  %v1518_v55 = vshll.u32 %v4862_v9, 16  ;;  %vm6421_vm12 = vcmp.ne.s16.totalorder %v1317_v24, 0  ;;  %v2575_v17 = vld [vmem:[#allocation3 + $0x14] sm:$0xf]  ;;  %v2576_v21 = vld [vmem:[#allocation3 + $0x18] sm:$0xf]  ;;  %5398 = vmatprep.subr.bf16.mxu0 %v6419_v25 }
 0x1d6   : > { %v1494_v6 = vor.u32 %v1493_v14, %v1490_v62  ;;  %v7384_v13 = vmov 0  ;;  %v6425_v31 = vrot.slane %v1515_v19, 3  ;;  %v1364_v9 = vsel %vm6421_vm12, %v1104_v50, 0  ;;  %v5699_v50 = vld [vmem:[#allocation9 + $0x48] sm:$0xff]  }
 0x1d7   : > { %v7385_v13 = vsel %vm6421_vm12, 4294967295, %v7384_v13  ;;  %v1497_v32 = vshrl.u32 %v4860_v22, 16  ;;  %v1500_v63 = vshll.u32 %v4860_v22, 16  ;;  %v1322_v11 = vrot.slane %v1321_v28, 4  ;;  %5279 = vmatpush3.bf16.msra.mxu1 %v5695_v30 }
 0x1d8   : > { %vm7386_vm15 = vsmask.f32 4352  ;;  %v1520_v18 = vrot.slane %v1518_v55, 4  ;;  %vm7387_vm4 = vcmp.ne.s16.totalorder %v6223_v51, 0  ;;  %v2591_v14 = vsel %vm6264_vm2, %v2574_v8, 0  ;;  %5280 = vmatprep.subr.bf16.mxu1 %v5697_v45 }
 0x1d9   : > { %v1495_v54 = vsel %vm7386_vm15, %v1485_v7, %v1494_v6  ;;  %v2590_v62 = vsel %vm7387_vm4, %v2573_v60, 0  ;;  %v1499_v19 = vrot.slane %v1497_v32, 3  ;;  %v1502_v24 = vrot.slane %v1500_v63, 4  ;;  %v2577_v7 = vld [vmem:[#allocation3 + $0x1c] sm:$0xf] }
 0x1da   : > { %5262 = vmatprep.mubr.bf16.mxu1 %v1495_v54  ;;  %v1327_v22 = vsel %vm6233_vm13, %v1322_v11, %v6227_v58  ;;  %v2592_v28 = vsel %vm6268_vm3, %v2575_v17, 0  ;;  %v7388_v55 = vmov 0  ;;  %v2593_v60 = vsel %vm6272_vm5, %v2576_v21, 0  ;;  %v2578_v32 = vld [vmem:[#allocation3 + $0x20] sm:$0xf] }
 0x1db   : > { %vm6440_vm15 = vcmp.ne.s16.totalorder %v1327_v22, 0  ;;  %v4904_v8 = vcombine.low %v2590_v62, %v2591_v14  ;;  %v1503_v30 = vor.u32 %v1502_v24, %v1499_v19  ;;  %v4905_v58 = vcombine.low %v2592_v28, %v2593_v60  ;;  %v5701_v11 = vld [vmem:[#allocation9 + $0x40] sm:$0xff]   ;;  %5281 = vmatpush3.bf16.msra.mxu1 %v5697_v45 }
 0x1dc   : > { %v7389_v55 = vsel %vm6440_vm15, 4294967295, %v7388_v55  ;;  %v1365_v4 = vsel %vm6440_vm15, %v1105_v10, 0  ;;  %v2594_v63 = vsel %vm6291_vm6, %v2577_v7, 0  ;;  %v2595_v47 = vsel %vm6310_vm9, %v2578_v32, 0  ;;  %5282 = vmatprep.subr.bf16.mxu1 %v5699_v50 }
 0x1dd   : > { %v4861_v17 = vcombine.low %v1364_v9, %v1365_v4  ;;  %v2684_v54 = vshrl.u32 %v4904_v8, 16  ;;  %v2687_v22 = vshll.u32 %v4904_v8, 16  ;;  %vm7390_vm13 = vsmask.f32 4352 }
 0x1de   : > { %v1504_v1 = vsel %vm7390_vm13, %v1494_v6, %v1503_v30  ;;  %v2692_v21 = vshrl.u32 %v4905_v58, 16  ;;  %v2695_v62 = vshll.u32 %v4905_v58, 16  ;;  %v4906_v14 = vcombine.low %v2594_v63, %v2595_v47  ;;  %v2579_v47 = vld [vmem:[#allocation3 + $0x24] sm:$0xf]  ;;  %v5705_v63 = vld [vmem:[#allocation9 + $0xb8] sm:$0xff]   ;;  %vm7391_vm4 = vmmov %vm7390_vm13 }
 0x1df   : > { %5263 = vmatmul.mubr.bf16.gmra.mxu1 %v1504_v1  ;;  %v1506_v19 = vshrl.u32 %v4861_v17, 16  ;;  %v1509_v10 = vshll.u32 %v4861_v17, 16  ;;  %v2686_v24 = vrot.slane %v2684_v54, 3  ;;  %v2689_v28 = vrot.slane %v2687_v22, 4  ;;  %v2580_v17 = vld [vmem:[#allocation3 + $0x28] sm:$0xf]  ;;  %vm7392_vm13 = vmmov %vm7391_vm4 }
 0x1e0   : > { %v2694_v7 = vrot.slane %v2692_v21, 3  ;;  %v2697_v9 = vrot.slane %v2695_v62, 4  ;;  %v2701_v60 = vshrl.u32 %v4906_v14, 16  ;;  %v2704_v4 = vshll.u32 %v4906_v14, 16  ;;  %5283 = vmatpush3.bf16.msra.mxu1 %v5699_v50  ;;  %v5703_v22 = vld [vmem:[#allocation3 + $0x8] sm:$0xff]   ;;  %vm7393_vm9 = vmmov %vm7391_vm4 }
 0x1e1   : > { %v1508_v8 = vrot.slane %v1506_v19, 3  ;;  %v1511_v49 = vrot.slane %v1509_v10, 4  ;;  %v1521_v32 = vor.u32 %v1520_v18, %v6425_v31  ;;  %v2690_v52 = vor.u32 %v2689_v28, %v2686_v24  ;;  %5284 = vmatprep.subr.bf16.mxu1 %v5701_v11  ;;  %v2581_v18 = vld [vmem:[#allocation3 + $0x2c] sm:$0xf]  ;;  %v2582_v19 = vld [vmem:[#allocation3 + $0x30] sm:$0xf] }
 0x1e2   : > { %v2698_v45 = vor.u32 %v2697_v9, %v2694_v7  ;;  %v2703_v6 = vrot.slane %v2701_v60, 3  ;;  %v2706_v58 = vrot.slane %v2704_v4, 4  ;;  %v2596_v54 = vsel %vm6316_vm10, %v2579_v47, 0  ;;  %vm7394_vm10 = vmmov %vm7391_vm4  ;;  %v5704_v60 = vld [vmem:[#allocation3 + $0x10] sm:$0xff]   ;;  %v5709_v47 = vld [vmem:[#allocation3 + $0x18] sm:$0xff]  }
 0x1e3   : > { %v1512_v1 = vor.u32 %v1511_v49, %v1508_v8  ;;  %v2597_v31 = vsel %vm6334_vm11, %v2580_v17, 0  ;;  %v2598_v10 = vsel %vm6343_vm0, %v2581_v18, 0  ;;  %v2599_v28 = vsel %vm6365_vm8, %v2582_v19, 0  ;;  %v2586_v19 = vld [vmem:[#allocation3 + $0x40] sm:$0xf] }
 0x1e4   : > { %v2699_v21 = vsel %vm7391_vm4, %v2690_v52, %v2698_v45  ;;  %v2707_v62 = vor.u32 %v2706_v58, %v2703_v6  ;;  %v4907_v49 = vcombine.low %v2596_v54, %v2597_v31  ;;  %5285 = vmatpush3.bf16.msra.mxu1 %v5701_v11  ;;  %v5712_v52 = vld [vmem:[#allocation9 + $0x170] sm:$0xff]   ;;  %v4908_v9 = vcombine.low %v2598_v10, %v2599_v28  ;;  %v5711_v28 = vld [vmem:[#allocation9 + $0xa8] sm:$0xff]  }
 0x1e5   : > { %v1513_v50 = vsel %vm7392_vm13, %v1503_v30, %v1512_v1  ;;  %v1522_v14 = vsel %vm7393_vm9, %v1512_v1, %v1521_v32  ;;  %5350 = vmatprep.mubr.bf16.mxu0 %v2699_v21  ;;  %5302 = vmatprep.subr.bf16.mxu1 %v5705_v63  ;;  %v2583_v6 = vld [vmem:[#allocation3 + $0x34] sm:$0xf]  ;;  %v2584_v21 = vld [vmem:[#allocation3 + $0x38] sm:$0xf]  ;;  %vm7395_vm9 = vmmov %vm7391_vm4 }
 0x1e6   : > { %5266 = vmatprep.mubr.bf16.mxu1 %v1513_v50  ;;  %v2708_v24 = vsel %vm7394_vm10, %v2698_v45, %v2707_v62  ;;  %v2710_v7 = vshrl.u32 %v4907_v49, 16  ;;  %v2713_v30 = vshll.u32 %v4907_v49, 16  ;;  %v2719_v32 = vshrl.u32 %v4908_v9, 16  ;;  %v5714_v45 = vld [vmem:[#allocation9 + $0x168] sm:$0xff]   ;;  %v5707_v58 = vld [vmem:[#allocation9 + $0xb0] sm:$0xff]   ;;  %vm7397_vm13 = vmmov %vm7391_vm4 }
 0x1e7   : > { %5267 = vmatmul.mubr.bf16.gmra.mxu1 %v1522_v14  ;;  %5351 = vmatmul.mubr.bf16.vlgmr.msra.gmra.mxu0 %v2708_v24  ;;  %v2722_v11 = vshll.u32 %v4908_v9, 16  ;;  %v2601_v31 = vsel %vm6390_vm1, %v2584_v21, 0  ;;  %v2585_v49 = vld [vmem:[#allocation3 + $0x3c] sm:$0xf]  ;;  %vm7396_vm10 = vnez %v7383_v43 }
 0x1e8   : > { %5286 = vmatprep.mubr.bf16.mxu1 %v5703_v22  ;;  %5399 = vmatpush3.bf16.msra.mxu0 %v6419_v25  ;;  %v2712_v4 = vrot.slane %v2710_v7, 3  ;;  %v2715_v8 = vrot.slane %v2713_v30, 4  ;;  %v2721_v17 = vrot.slane %v2719_v32, 3  ;;  %v2600_v22 = vsel %vm6374_vm14, %v2583_v6, 0  ;;  %v5718_v30 = vld [vmem:[#allocation9 + $0x160] sm:$0xff]  }
 0x1e9   : > { %5400 = vmatprep.subr.bf16.mxu0 %v5712_v52  ;;  %v2724_v54 = vrot.slane %v2722_v11, 4  ;;  %v851_v25 = vadd.s32 8, %v6210_v29  ;;  %v4909_v14 = vcombine.low %v2600_v22, %v2601_v31  ;;  %v2602_v10 = vsel %vm6394_vm7, %v2585_v49, 0  ;;  %v5710_v6 = vld [vmem:[#allocation3 + $0x20] sm:$0xff]   ;;  %v5720_v22 = vld [vmem:[#allocation9 + $0x158] sm:$0xff]  }
 0x1ea   : > { %v2716_v1 = vor.u32 %v2715_v8, %v2712_v4  ;;  %v2603_v24 = vsel %vm7396_vm10, %v2586_v19, 0  ;;  %v2587_v31 = vld [vmem:[#allocation3 + $0x44] sm:$0xf]  ;;  %v2589_v19 = vld [vmem:[#allocation3 + $0x4c] sm:$0xf] }
 0x1eb   : > { %v2725_v50 = vor.u32 %v2724_v54, %v2721_v17  ;;  %v2731_v9 = vshll.u32 %v4909_v14, 16  ;;  %v853_v17 = vadd.s32 24, %v6210_v29  ;;  %vm7415_vm7 = vsmask.f32 7424 }
 0x1ec   : > { %5401 = vmatpush3.bf16.msra.mxu0 %v5712_v52  ;;  %v2717_v18 = vsel %vm7395_vm9, %v2707_v62, %v2716_v1  ;;  %v2728_v52 = vshrl.u32 %v4909_v14, 16  ;;  %v4910_v62 = vcombine.low %v2602_v10, %v2603_v24  ;;  %v877_v10 = vand.u32 15, %v851_v25 }
 0x1ed   : > { %5354 = vmatprep.mubr.bf16.mxu0 %v2717_v18  ;;  %5402 = vmatprep.subr.bf16.mxu0 %v5714_v45  ;;  %v2726_v7 = vsel %vm7391_vm4, %v2716_v1, %v2725_v50  ;;  %v2733_v8 = vrot.slane %v2731_v9, 4  ;;  %v2604_v18 = vsel %vm6421_vm12, %v2587_v31, 0  ;;  %vm7398_vm9 = vcmp.ne.s16.totalorder %v6242_v15, 0  ;;  %v5724_v9 = vld [vmem:[#allocation9 + $0x150] sm:$0xff]  }
 0x1ee   : > { %v2730_v4 = vrot.slane %v2728_v52, 3  ;;  %v2737_v32 = vshrl.u32 %v4910_v62, 16  ;;  %v2740_v11 = vshll.u32 %v4910_v62, 16 }
 0x1ef   : > { %5287 = vmatmul.mubr.bf16.vlgmr.msra.gmra.mxu1 %v5704_v60  ;;  %5355 = vmatmul.mubr.bf16.gmra.mxu0 %v2726_v7  ;;  %v5713_v60 = vld [vmem:[#allocation9 + $0xa0] sm:$0xff]   ;;  %v891_v7 = vand.u32 15, %v853_v17 }
 0x1f0   : > { %5303 = vmatpush3.bf16.msra.mxu1 %v5705_v63  ;;  %5290 = vmatprep.mubr.bf16.mxu1 %v5709_v47  ;;  %v2734_v54 = vor.u32 %v2733_v8, %v2730_v4  ;;  %v2739_v1 = vrot.slane %v2737_v32, 3  ;;  %v2742_v21 = vrot.slane %v2740_v11, 4  ;;  %v5715_v63 = vld [vmem:[#allocation3 + $0x28] sm:$0xff]   ;;  %v5717_v8 = vld [vmem:[#allocation9 + $0x98] sm:$0xff]  }
 0x1f1   : > { %5304 = vmatprep.subr.bf16.mxu1 %v5707_v58  ;;  %5403 = vmatpush3.bf16.msra.mxu0 %v5714_v45  ;;  %v2588_v47 = vld [vmem:[#allocation3 + $0x48] sm:$0xf] }
 0x1f2   : > { %5404 = vmatprep.subr.bf16.mxu0 %v5718_v30  ;;  %v2735_v14 = vsel %vm7397_vm13, %v2725_v50, %v2734_v54  ;;  %v2743_v49 = vor.u32 %v2742_v21, %v2739_v1  ;;  %v2605_v45 = vsel %vm6440_vm15, %v2588_v47, 0  ;;  %vm1075_vm13 = vcmp.ne.s32.totalorder %v877_v10, 15  ;;  %v5716_v1 = vld [vmem:[#allocation3 + $0x30] sm:$0xff]  }
 0x1f3   : > { %5358 = vmatprep.mubr.bf16.mxu0 %v2735_v14  ;;  %v4911_v24 = vcombine.low %v2604_v18, %v2605_v45  ;;  %v7399_v50 = vshrl.u32 %v6217_v38, 16  ;;  %vm1077_vm15 = vcmp.ne.s32.totalorder %v891_v7, 15  ;;  %vm2032_vm12 = vmpackc.low %vm1075_vm13, %vm1075_vm13  ;;  %vm2064_vm13 = vsmask.f32 4368  ;;  %v5721_v45 = vld [vmem:[#allocation3 + $0x38] sm:$0xff]  }
 0x1f4   : > { %5305 = vmatpush3.bf16.msra.mxu1 %v5707_v58  ;;  %v2606_v58 = vsel %vm7398_vm9, %v2589_v19, 0  ;;  %v2744_v52 = vsel %vm7391_vm4, %v2734_v54, %v2743_v49  ;;  %vm2034_vm9 = vmpackc.low %vm1077_vm15, %vm1077_vm15  ;;  %v855_v54 = vadd.s32 40, %v6210_v29  ;;  %vm2063_vm4 = vsmask.f32 256 }
 0x1f5   : > { %5306 = vmatprep.subr.bf16.mxu1 %v5711_v28  ;;  %5405 = vmatpush3.bf16.msra.mxu0 %v5718_v30  ;;  %v4912_v62 = vcombine.low %v2606_v58, %v2606_v58  ;;  %v2069_v4 = vrot.slane %v7399_v50, 7  ;;  %v2746_v25 = vshrl.u32 %v4911_v24, 16  ;;  %v2749_v30 = vshll.u32 %v4911_v24, 16  ;;  %vm6503_vm10 = vmor %vm2063_vm4, %vm2064_vm13 }
 0x1f6   : > { %5406 = vmatprep.subr.bf16.mxu0 %v5720_v22 }
 0x1f7   : > { %5291 = vmatmul.mubr.bf16.gmra.mxu1 %v5710_v6  ;;  %5359 = vmatmul.mubr.bf16.gmra.mxu0 %v2744_v52  ;;  %v2755_v32 = vshrl.u32 %v4912_v62, 16  ;;  %v2758_v11 = vshll.u32 %v4912_v62, 16  ;;  %v7400_v6 = vmov 0   ;;  %v2748_v21 = vrot.slane %v2746_v25, 3  ;;  %v5726_v52 = vld [vmem:[#allocation9 + $0x148] sm:$0xff]  }
 0x1f8   : > { %5307 = vmatpush3.bf16.msra.mxu1 %v5711_v28  ;;  %5294 = vmatprep.mubr.bf16.mxu1 %v5715_v63  ;;  %v2048_v17 = vsel %vm2032_vm12, 65537, %v7400_v6  ;;  %v2751_v31 = vrot.slane %v2749_v30, 4  ;;  %v2050_v28 = vsel %vm2034_vm9, 65537, %v7400_v6  ;;  %v7401_v63 = vshll.u32 %v6217_v38, 16  ;;  %v1982_v62 = vld [vmem:[#allocation3 + $0x8] sm:$0xf] }
 0x1f9   : > { %5308 = vmatprep.subr.bf16.mxu1 %v5713_v60  ;;  %5407 = vmatpush3.bf16.msra.mxu0 %v5720_v22  ;;  %v2757_v18 = vrot.slane %v2755_v32, 3  ;;  %v2760_v14 = vrot.slane %v2758_v11, 4  ;;  %v2075_v10 = vshrl.u32 %v2048_v17, 16  ;;  %v2078_v24 = vshll.u32 %v2048_v17, 16  ;;  %v5719_v22 = vld [vmem:[#allocation9 + $0x90] sm:$0xff]   ;;  %v5723_v11 = vld [vmem:[#allocation9 + $0x88] sm:$0xff]  }
 0x1fa   : > { %v6494_v47 = vor.u32 %v2069_v4, %v7401_v63  ;;  %5408 = vmatprep.subr.bf16.mxu0 %v5724_v9  ;;  %v2752_v19 = vor.u32 %v2751_v31, %v2748_v21  ;;  %v2093_v58 = vshrl.u32 %v2050_v28, 16  ;;  %v6496_v50 = vrot.slane %v2069_v4, 4  ;;  %v1983_v21 = vld [vmem:[#allocation3 + $0xc] sm:$0xf]  ;;  %v1984_v31 = vld [vmem:[#allocation3 + $0x10] sm:$0xf] }
 0x1fb   : > { %v2761_v7 = vor.u32 %v2760_v14, %v2757_v18  ;;  %v2096_v38 = vshll.u32 %v2050_v28, 16  ;;  %vm7402_vm12 = vsmask.f32 4352  ;;  %v2077_v30 = vrot.slane %v2075_v10, 7  ;;  %v1985_v63 = vld [vmem:[#allocation3 + $0x14] sm:$0xf] }
 0x1fc   : > { %5309 = vmatpush3.bf16.msra.mxu1 %v5713_v60  ;;  %v2753_v25 = vsel %vm7402_vm12, %v2743_v49, %v2752_v19  ;;  %v2095_v32 = vrot.slane %v2093_v58, 7  ;;  %vm7305_vm15 = vcmp.ne.s16.totalorder %v6494_v47, 0  ;;  %v5728_v60 = vld [vmem:[#allocation9 + $0x140] sm:$0xff]   ;;  %vm7403_vm9 = vmmov %vm7402_vm12  ;;  %v905_v49 = vand.u32 15, %v855_v54  ;;  %v3222_v14 = vld [vmem:[#allocation3 + $0x10] sm:$0xf] }
 0x1fd   : > { %5310 = vmatprep.subr.bf16.mxu1 %v5717_v8  ;;  %5409 = vmatpush3.bf16.msra.mxu0 %v5724_v9  ;;  %v2762_v17 = vsel %vm7403_vm9, %v2752_v19, %v2761_v7  ;;  %v2080_v9 = vor.u32 %v2078_v24, %v2077_v30  ;;  %v2082_v28 = vrot.slane %v2077_v30, 4  ;;  %v5722_v10 = vld [vmem:[#allocation3 + $0x40] sm:$0xff]   ;;  %v2226_v19 = vsel %vm7305_vm15, %v1982_v62, 0  ;;  %v1986_v7 = vld [vmem:[#allocation3 + $0x18] sm:$0xf] }
 0x1fe   : > { %5362 = vmatprep.mubr.bf16.mxu0 %v2753_v25  ;;  %v2098_v18 = vor.u32 %v2096_v38, %v2095_v32  ;;  %vm6509_vm12 = vcmp.ne.s32.totalorder %v905_v49, 15  ;;  %v3223_v25 = vld [vmem:[#allocation3 + $0x14] sm:$0xf]  ;;  %v6516_v54 = vadd.s32 56, %v6210_v29  ;;  %5410 = vmatprep.subr.bf16.mxu0 %v5726_v52  ;;  %v3224_v30 = vld [vmem:[#allocation3 + $0x18] sm:$0xf] }
 0x1ff   : > { %5295 = vmatmul.mubr.bf16.gmra.mxu1 %v5716_v1  ;;  %v2100_v1 = vrot.slane %v2095_v32, 4  ;;  %5363 = vmatmul.mubr.bf16.gmra.mxu0 %v2762_v17  ;;  %v6524_v24 = vsel %vm6503_vm10, %v2082_v28, %v6494_v47  ;;  %vm2036_vm13 = vmpackc.low %vm6509_vm12, %vm6509_vm12  ;;  %v6537_v32 = vld [vmem:[#allocation9 + $0x1f8] sm:$0xff]   ;;  %v5725_v17 = vld [vmem:[#allocation9 + $0x80] sm:$0xff]  }
 0x200   : > { %5311 = vmatpush3.bf16.msra.mxu1 %v5717_v8  ;;  %5298 = vmatprep.mubr.bf16.mxu1 %v5721_v45  ;;  %v3239_v8 = vsel %vm7305_vm15, %v3222_v14, 0  ;;  %v2081_v45 = vsel %vm6503_vm10, %v6496_v50, %v2080_v9  ;;  %v2099_v62 = vsel %vm6503_vm10, %v6496_v50, %v2098_v18  ;;  %vm7307_vm15 = vcmp.ne.s16.totalorder %v6524_v24, 0  ;;  %v3225_v58 = vld [vmem:[#allocation3 + $0x1c] sm:$0xf] }
 0x201   : > { %5312 = vmatprep.subr.bf16.mxu1 %v5719_v22  ;;  %v6535_v38 = vsel %vm6503_vm10, %v2100_v1, %v6494_v47  ;;  %5411 = vmatpush3.bf16.msra.mxu0 %v5726_v52  ;;  %vm6539_vm9 = vcmp.ne.s16.totalorder %v2081_v45, 0  ;;  %vm6544_vm4 = vcmp.ne.s16.totalorder %v2099_v62, 0  ;;  %v2052_v28 = vsel %vm2036_vm13, 65537, %v7400_v6 }
 0x202   : > { %v2227_v18 = vsel %vm6539_vm9, %v1983_v21, 0  ;;  %v2228_v1 = vsel %vm7307_vm15, %v1984_v31, 0  ;;  %v2229_v52 = vsel %vm6544_vm4, %v1985_v63, 0  ;;  %v2111_v14 = vshrl.u32 %v2052_v28, 16  ;;  %5412 = vmatprep.subr.bf16.mxu0 %v5728_v60 }
 0x203   : > { %v4887_v45 = vcombine.low %v2226_v19, %v2227_v18  ;;  %v4888_v62 = vcombine.low %v2228_v1, %v2229_v52  ;;  %v2114_v3 = vshll.u32 %v2052_v28, 16  ;;  %vm7306_vm12 = vcmp.ne.s16.totalorder %v6535_v38, 0  ;;  %v1987_v28 = vld [vmem:[#allocation3 + $0x1c] sm:$0xf] }
 0x204   : > { %5313 = vmatpush3.bf16.msra.mxu1 %v5719_v22  ;;  %v2113_v22 = vrot.slane %v2111_v14, 7  ;;  %v2230_v21 = vsel %vm7306_vm12, %v1986_v7, 0  ;;  %v3240_v31 = vsel %vm6539_vm9, %v3223_v25, 0  ;;  %v3241_v63 = vsel %vm7307_vm15, %v3224_v30, 0  ;;  %v5727_v30 = vld [vmem:[#allocation9 + $0x138] sm:$0xff]  }
 0x205   : > { %5314 = vmatprep.subr.bf16.mxu1 %v5723_v11  ;;  %v2321_v61 = vshrl.u32 %v4887_v45, 16  ;;  %v2323_v27 = vshll.u32 %v4887_v45, 16  ;;  %v2328_v39 = vshll.u32 %v4888_v62, 16  ;;  %v2332_v19 = vshrl.u32 %v4888_v62, 16  ;;  %5413 = vmatpush3.bf16.msra.mxu0 %v5728_v60  ;;  %v3227_v45 = vld [vmem:[#allocation3 + $0x24] sm:$0xf] }
 0x206   : > { %v2116_v18 = vor.u32 %v2114_v3, %v2113_v22  ;;  %v3242_v1 = vsel %vm6544_vm4, %v3225_v58, 0  ;;  %v4937_v52 = vcombine.low %v3239_v8, %v3240_v31  ;;  %v3243_v7 = vsel %vm7306_vm12, %v3226_v48, 0  ;;  %5462 = vmatprep.subr.bf16.mxu0 %v6537_v32  ;;  %v3593_v48 = vld [vmem:[#allocation3 + $0x34] sm:$0xf] }
 0x207   : > { %5299 = vmatmul.mubr.bf16.gmra.mxu1 %v5722_v10  ;;  %v2325_v25 = vrot.slane %v2323_v27, 1  ;;  %v2330_v10 = vrot.slane %v2328_v39, 1  ;;  %v4938_v14 = vcombine.low %v3241_v63, %v3242_v1  ;;  %v919_v60 = vand.u32 15, %v6516_v54 }
 0x208   : > { %5315 = vmatpush3.bf16.msra.mxu1 %v5723_v11  ;;  %v2117_v3 = vsel %vm6503_vm10, %v6496_v50, %v2116_v18  ;;  %v3333_v11 = vshrl.u32 %v4937_v52, 16  ;;  %v3335_v58 = vshll.u32 %v4937_v52, 16  ;;  %v2118_v8 = vrot.slane %v2113_v22, 4 }
 0x209   : > { %5316 = vmatprep.subr.bf16.mxu1 %v5725_v17  ;;  %v2326_v62 = vor.u32 %v2325_v25, %v2321_v61  ;;  %vm6571_vm13 = vcmp.ne.s16.totalorder %v2117_v3, 0  ;;  %v3340_v31 = vshll.u32 %v4938_v14, 16  ;;  %v3344_v63 = vshrl.u32 %v4938_v14, 16 }
 0x20a   : > { %v2231_v27 = vsel %vm6571_vm13, %v1987_v28, 0  ;;  %v3337_v39 = vrot.slane %v3335_v58, 1  ;;  %v3244_v54 = vsel %vm6571_vm13, %v3227_v45, 0  ;;  %vm7414_vm12 = vsmask.f32 7424 }
 0x20b   : > { %v2331_v18 = vsel %vm7414_vm12, %v2326_v62, %v2330_v10  ;;  %v4889_v1 = vcombine.low %v2230_v21, %v2231_v27  ;;  %v3342_v22 = vrot.slane %v3340_v31, 1  ;;  %v4939_v61 = vcombine.low %v3243_v7, %v3244_v54  ;;  %v1988_v58 = vld [vmem:[#allocation3 + $0x20] sm:$0xf]  ;;  %v5729_v62 = vld [vmem:[#allocation9 + $0x130] sm:$0xff]  }
 0x20c   : > { %5317 = vmatpush3.bf16.msra.mxu1 %v5725_v17  ;;  %5318 = vmatprep.mubr.bf16.mxu1 %v2331_v18  ;;  %v3338_v52 = vor.u32 %v3337_v39, %v3333_v11  ;;  %vm1081_vm15 = vcmp.ne.s32.totalorder %v919_v60, 15  ;;  %v6583_v17 = vsel %vm6503_vm10, %v2118_v8, %v6494_v47  ;;  %v859_v28 = vadd.s32 72, %v6210_v29  ;;  %v3228_v11 = vld [vmem:[#allocation3 + $0x28] sm:$0xf] }
 0x20d   : > { %5366 = vmatprep.subr.bf16.mxu1 %v5727_v30  ;;  %v2334_v25 = vor.u32 %v2332_v19, %v2330_v10  ;;  %v2336_v14 = vshll.u32 %v4889_v1, 16  ;;  %v3346_v3 = vor.u32 %v3344_v63, %v3342_v22  ;;  %v3348_v45 = vshll.u32 %v4939_v61, 16  ;;  %vm2038_vm12 = vmpackc.low %vm1081_vm15, %vm1081_vm15  ;;  %v5732_v10 = vld [vmem:[#allocation9 + $0x1f0] sm:$0xff]  }
 0x20e   : > { %v3343_v21 = vsel %vm7415_vm7, %v3338_v52, %v3342_v22  ;;  %v2054_v7 = vsel %vm2038_vm12, 65537, %v7400_v6  ;;  %vm7310_vm1 = vcmp.ne.s16.totalorder %v6583_v17, 0  ;;  %v2340_v60 = vshrl.u32 %v4889_v1, 16  ;;  %vm7416_vm15 = vmmov %vm7415_vm7  ;;  %v1989_v1 = vld [vmem:[#allocation3 + $0x24] sm:$0xf] }
 0x20f   : > { %v2338_v31 = vrot.slane %v2336_v14, 1  ;;  %5414 = vmatprep.mubr.bf16.mxu0 %v3343_v21  ;;  %v3350_v8 = vrot.slane %v3348_v45, 1  ;;  %v2129_v27 = vshrl.u32 %v2054_v7, 16  ;;  %v2132_v39 = vshll.u32 %v2054_v7, 16  ;;  %v5731_v45 = vld [vmem:[#allocation9 + $0x128] sm:$0xff]  }
 0x210   : > { %v933_v19 = vand.u32 15, %v859_v28  ;;  %v3352_v63 = vshrl.u32 %v4939_v61, 16  ;;  %v861_v54 = vadd.s32 88, %v6210_v29  ;;  %v2232_v23 = vsel %vm7310_vm1, %v1988_v58, 0  ;;  %v1990_v28 = vld [vmem:[#allocation3 + $0x28] sm:$0xf] }
 0x211   : > { %v2339_v18 = vsel %vm7416_vm15, %v2334_v25, %v2338_v31  ;;  %v3351_v22 = vsel %vm7415_vm7, %v3346_v3, %v3350_v8  ;;  %v2131_v52 = vrot.slane %v2129_v27, 7  ;;  %v3229_v61 = vld [vmem:[#allocation3 + $0x2c] sm:$0xf]  ;;  %v3245_v21 = vsel %vm7310_vm1, %v3228_v11, 0 }
 0x212   : > { %5319 = vmatmul.mubr.bf16.vlgmr.msra.gmra.mxu1 %v2339_v18  ;;  %5415 = vmatmul.mubr.bf16.vlgmr.msra.gmra.mxu0 %v3351_v22  ;;  %vm6594_vm12 = vcmp.ne.s32.totalorder %v933_v19, 15  ;;  %v5734_v25 = vld [vmem:[#allocation9 + $0x1e8] sm:$0xff]   ;;  %v947_v7 = vand.u32 15, %v861_v54  ;;  %v863_v3 = vadd.s32 104, %v6210_v29  ;;  %v6602_v27 = vor.u32 %v2340_v60, %v2338_v31  ;;  %v3230_v22 = vld [vmem:[#allocation3 + $0x30] sm:$0xf] }
 0x213   : > { %5367 = vmatpush3.bf16.msra.mxu1 %v5727_v30  ;;  %5463 = vmatpush3.bf16.msra.mxu0 %v6537_v32  ;;  %v2134_v58 = vor.u32 %v2132_v39, %v2131_v52  ;;  %vm2040_vm15 = vmpackc.low %vm6594_vm12, %vm6594_vm12  ;;  %v2136_v19 = vrot.slane %v2131_v52, 4  ;;  %v6607_v18 = vor.u32 %v3352_v63, %v3350_v8  ;;  %v6611_v30 = vadd.s32 120, %v6210_v29 }
 0x214   : > { %5368 = vmatprep.subr.bf16.mxu1 %v5729_v62  ;;  %v2056_v11 = vsel %vm2040_vm15, 65537, %v7400_v6  ;;  %5464 = vmatprep.subr.bf16.mxu0 %v5732_v10  ;;  %vm1085_vm7 = vcmp.ne.s32.totalorder %v947_v7, 15  ;;  %v961_v54 = vand.u32 15, %v863_v3  ;;  %v7419_v39 = vmov 0 }
 0x215   : > { %v2135_v32 = vsel %vm6503_vm10, %v6496_v50, %v2134_v58  ;;  %v6619_v60 = vsel %vm6503_vm10, %v2136_v19, %v6494_v47  ;;  %v2147_v31 = vshrl.u32 %v2056_v11, 16  ;;  %v2150_v8 = vshll.u32 %v2056_v11, 16  ;;  %vm2042_vm12 = vmpackc.low %vm1085_vm7, %vm1085_vm7  ;;  %v5733_v58 = vld [vmem:[#allocation9 + $0x120] sm:$0xff]  }
 0x216   : > { %vm6621_vm1 = vcmp.ne.s16.totalorder %v2135_v32, 0  ;;  %vm7312_vm15 = vcmp.ne.s16.totalorder %v6619_v60, 0  ;;  %v2058_v29 = vsel %vm2042_vm12, 65537, %v7400_v6  ;;  %vm6627_vm14 = vcmp.ne.s32.totalorder %v961_v54, 15  ;;  %v5736_v19 = vld [vmem:[#allocation9 + $0x1e0] sm:$0xff]  }
 0x217   : > { %v7420_v39 = vsel %vm6621_vm1, 4294967295, %v7419_v39  ;;  %5369 = vmatpush3.bf16.msra.mxu1 %v5729_v62  ;;  %v2233_v52 = vsel %vm6621_vm1, %v1989_v1, 0  ;;  %v2149_v14 = vrot.slane %v2147_v31, 7  ;;  %v2234_v7 = vsel %vm7312_vm15, %v1990_v28, 0  ;;  %5465 = vmatpush3.bf16.msra.mxu0 %v5732_v10  ;;  %vm2044_vm7 = vmpackc.low %vm6627_vm14, %vm6627_vm14  ;;  %v1991_v54 = vld [vmem:[#allocation3 + $0x2c] sm:$0xf] }
 0x218   : > { %v3246_v3 = vsel %vm6621_vm1, %v3229_v61, 0  ;;  %v4890_v11 = vcombine.low %v2232_v23, %v2233_v52  ;;  %5370 = vmatprep.subr.bf16.mxu1 %v5731_v45  ;;  %v3247_v1 = vsel %vm7312_vm15, %v3230_v22, 0  ;;  %5466 = vmatprep.subr.bf16.mxu0 %v5734_v25  ;;  %v2165_v32 = vshrl.u32 %v2058_v29, 16  ;;  %v3231_v10 = vld [vmem:[#allocation3 + $0x34] sm:$0xf] }
 0x219   : > { %v4940_v62 = vcombine.low %v3245_v21, %v3246_v3  ;;  %v2152_v28 = vor.u32 %v2150_v8, %v2149_v14  ;;  %v2154_v31 = vrot.slane %v2149_v14, 4  ;;  %v2168_v35 = vshll.u32 %v2058_v29, 16  ;;  %v5735_v3 = vld [vmem:[#allocation9 + $0x118] sm:$0xff]  }
 0x21a   : > { %v2060_v61 = vsel %vm2044_vm7, 65537, %v7400_v6  ;;  %v2344_v5 = vshll.u32 %v4890_v11, 16  ;;  %v2348_v63 = vshrl.u32 %v4890_v11, 16  ;;  %v2167_v22 = vrot.slane %v2165_v32, 7  ;;  %v1993_v11 = vld [vmem:[#allocation3 + $0x34] sm:$0xf] }
 0x21b   : > { %v3356_v16 = vshll.u32 %v4940_v62, 16  ;;  %v3360_v0 = vshrl.u32 %v4940_v62, 16  ;;  %v2153_v23 = vsel %vm6503_vm10, %v6496_v50, %v2152_v28  ;;  %5371 = vmatpush3.bf16.msra.mxu1 %v5731_v45  ;;  %5467 = vmatpush3.bf16.msra.mxu0 %v5734_v25  ;;  %v6649_v21 = vsel %vm6503_vm10, %v2154_v31, %v6494_v47  ;;  %v5738_v32 = vld [vmem:[#allocation9 + $0x1d8] sm:$0xff]  }
 0x21c   : > { %v2183_v8 = vshrl.u32 %v2060_v61, 16  ;;  %v2346_v29 = vrot.slane %v2344_v5, 1  ;;  %vm6651_vm14 = vcmp.ne.s16.totalorder %v2153_v23, 0  ;;  %v7423_v52 = vmov 0  ;;  %5372 = vmatprep.subr.bf16.mxu1 %v5733_v58  ;;  %5468 = vmatprep.subr.bf16.mxu0 %v5736_v19 }
 0x21d   : > { %v7424_v52 = vsel %vm6651_vm14, 4294967295, %v7423_v52  ;;  %v3358_v14 = vrot.slane %v3356_v16, 1  ;;  %vm7313_vm12 = vcmp.ne.s16.totalorder %v6649_v21, 0  ;;  %v2235_v45 = vsel %vm6651_vm14, %v1991_v54, 0 }
 0x21e   : > { %v3248_v25 = vsel %vm6651_vm14, %v3231_v10, 0  ;;  %v2170_v62 = vor.u32 %v2168_v35, %v2167_v22  ;;  %v2236_v5 = vsel %vm7313_vm12, %v1992_v12, 0  ;;  %vm7425_vm7 = vsmask.f32 7424 }
 0x21f   : > { %v2347_v16 = vsel %vm7425_vm7, %v6602_v27, %v2346_v29  ;;  %v4891_v28 = vcombine.low %v2234_v7, %v2235_v45  ;;  %v2350_v31 = vor.u32 %v2348_v63, %v2346_v29  ;;  %vm7426_vm15 = vmmov %vm7425_vm7  ;;  %v4941_v54 = vcombine.low %v3247_v1, %v3248_v25  ;;  %5373 = vmatpush3.bf16.msra.mxu1 %v5733_v58  ;;  %v5737_v58 = vld [vmem:[#allocation9 + $0x110] sm:$0xff]  }
 0x220   : > { %v3359_v23 = vsel %vm7426_vm15, %v6607_v18, %v3358_v14  ;;  %5322 = vmatprep.mubr.bf16.mxu1 %v2347_v16  ;;  %v3362_v10 = vor.u32 %v3360_v0, %v3358_v14  ;;  %v2171_v35 = vsel %vm6503_vm10, %v6496_v50, %v2170_v62  ;;  %v2172_v12 = vrot.slane %v2167_v22, 4  ;;  %5469 = vmatpush3.bf16.msra.mxu0 %v5736_v19  ;;  %v3233_v18 = vld [vmem:[#allocation3 + $0x3c] sm:$0xf]  ;;  %v3234_v14 = vld [vmem:[#allocation3 + $0x40] sm:$0xf]  ;;  %v5740_v62 = vld [vmem:[#allocation9 + $0x1d0] sm:$0xff]  }
 0x221   : > { %5418 = vmatprep.mubr.bf16.mxu0 %v3359_v23  ;;  %v2352_v42 = vshll.u32 %v4891_v28, 16  ;;  %vm6669_vm12 = vcmp.ne.s16.totalorder %v2171_v35, 0  ;;  %v7427_v27 = vmov 0  ;;  %v2356_v7 = vshrl.u32 %v4891_v28, 16  ;;  %5374 = vmatprep.subr.bf16.mxu1 %v5735_v3 }
 0x222   : > { %v7428_v27 = vsel %vm6669_vm12, 4294967295, %v7427_v27  ;;  %v6673_v63 = vrot.slane %v2183_v8, 7  ;;  %v3364_v29 = vshll.u32 %v4941_v54, 16  ;;  %v2237_v0 = vsel %vm6669_vm12, %v1993_v11, 0  ;;  %5470 = vmatprep.subr.bf16.mxu0 %v5738_v32  ;;  %v1995_v8 = vld [vmem:[#allocation3 + $0x3c] sm:$0xf] }
 0x223   : > { %v6680_v1 = vsel %vm6503_vm10, %v2172_v12, %v6494_v47  ;;  %v2186_v22 = vshll.u32 %v2060_v61, 16  ;;  %v2354_v45 = vrot.slane %v2352_v42, 1  ;;  %v4892_v25 = vcombine.low %v2236_v5, %v2237_v0  ;;  %5375 = vmatpush3.bf16.msra.mxu1 %v5735_v3  ;;  %v3235_v12 = vld [vmem:[#allocation3 + $0x44] sm:$0xf] }
 0x224   : > { %vm7315_vm15 = vcmp.ne.s16.totalorder %v6680_v1, 0  ;;  %vm7429_vm7 = vcmp.ne.s16.totalorder %v6649_v21, 0  ;;  %v3366_v11 = vrot.slane %v3364_v29, 1  ;;  %v3250_v61 = vsel %vm6669_vm12, %v3233_v18, 0  ;;  %5471 = vmatpush3.bf16.msra.mxu0 %v5738_v32  ;;  %5376 = vmatprep.subr.bf16.mxu1 %v5737_v58 }
 0x225   : > { %v3249_v19 = vsel %vm7429_vm7, %v3232_v57, 0  ;;  %v2188_v16 = vor.u32 %v2186_v22, %v6673_v63  ;;  %v2238_v28 = vsel %vm7315_vm15, %v1994_v46, 0  ;;  %vm7430_vm14 = vsmask.f32 7424  ;;  %v5739_v22 = vld [vmem:[#allocation9 + $0x108] sm:$0xff]   ;;  %5472 = vmatprep.subr.bf16.mxu0 %v5740_v62 }
 0x226   : > { %v2355_v23 = vsel %vm7430_vm14, %v2350_v31, %v2354_v45  ;;  %v2358_v42 = vor.u32 %v2356_v7, %v2354_v45  ;;  %v2360_v5 = vshll.u32 %v4892_v25, 16  ;;  %v2364_v35 = vshrl.u32 %v4892_v25, 16  ;;  %vm7431_vm7 = vmmov %vm7430_vm14  ;;  %v5741_v25 = vld [vmem:[#allocation9 + $0x100] sm:$0xff]  }
 0x227   : > { %5323 = vmatmul.mubr.bf16.gmra.mxu1 %v2355_v23  ;;  %v3367_v57 = vsel %vm7431_vm7, %v3362_v10, %v3366_v11  ;;  %v2189_v29 = vsel %vm6503_vm10, %v6496_v50, %v2188_v16  ;;  %v4942_v0 = vcombine.low %v3249_v19, %v3250_v61  ;;  %v3368_v46 = vshrl.u32 %v4941_v54, 16  ;;  %v5742_v19 = vld [vmem:[#allocation9 + $0x1c8] sm:$0xff]  }
 0x228   : > { %5419 = vmatmul.mubr.bf16.gmra.mxu0 %v3367_v57  ;;  %v2362_v18 = vrot.slane %v2360_v5, 1  ;;  %vm6695_vm14 = vcmp.ne.s16.totalorder %v2189_v29, 0  ;;  %v7432_v31 = vmov 0  ;;  %v3251_v3 = vsel %vm7315_vm15, %v3234_v14, 0  ;;  %5377 = vmatpush3.bf16.msra.mxu1 %v5737_v58 }
 0x229   : > { %v7433_v31 = vsel %vm6695_vm14, 4294967295, %v7432_v31  ;;  %v975_v32 = vand.u32 15, %v6611_v30  ;;  %v2239_v10 = vsel %vm6695_vm14, %v1995_v8, 0  ;;  %v3370_v7 = vor.u32 %v3368_v46, %v3366_v11  ;;  %5378 = vmatprep.subr.bf16.mxu1 %v5739_v22  ;;  %5473 = vmatpush3.bf16.msra.mxu0 %v5740_v62  ;;  %v3236_v62 = vld [vmem:[#allocation3 + $0x48] sm:$0xf] }
 0x22a   : > { %7434 = vst [vmem:[#allocation39_spill] sm:$0xff] %v7433_v31  ;;  %v3372_v45 = vshll.u32 %v4942_v0, 16  ;;  %v3252_v54 = vsel %vm6695_vm14, %v3235_v12, 0  ;;  %v2363_v16 = vsel %vm7431_vm7, %v2358_v42, %v2362_v18  ;;  %v6707_v61 = vcombine.low %v2238_v28, %v2239_v10  ;;  %5474 = vmatprep.subr.bf16.mxu0 %v5742_v19 }
 0x22b   : > { %v6709_v23 = vcombine.low %v3251_v3, %v3252_v54  ;;  %5326 = vmatprep.mubr.bf16.mxu1 %v2363_v16  ;;  %v3376_v14 = vshrl.u32 %v4942_v0, 16  ;;  %vm1089_vm15 = vcmp.ne.s32.totalorder %v975_v32, 15  ;;  %v2190_v8 = vrot.slane %v6673_v63, 4  ;;  %v5746_v63 = vld [vmem:[#allocation9 + $0x1c0] sm:$0xff]   ;;  %v6721_v3 = vld [vmem:[#allocation9 + $0x1b8] sm:$0xff]  }
 0x22c   : > { %v3374_v30 = vrot.slane %v3372_v45, 1  ;;  %v2366_v11 = vor.u32 %v2364_v35, %v2362_v18  ;;  %v2368_v5 = vshll.u32 %v6707_v61, 16  ;;  %vm2046_vm14 = vmpackc.low %vm1089_vm15, %vm1089_vm15  ;;  %v1996_v0 = vld [vmem:[#allocation3 + $0x40] sm:$0xf]  ;;  %5379 = vmatpush3.bf16.msra.mxu1 %v5739_v22  ;;  %v3238_v45 = vld [vmem:[#allocation3 + $0x50] sm:$0x1] }
 0x22d   : > { %v3380_v12 = vshll.u32 %v6709_v23, 16  ;;  %v2062_v57 = vsel %vm2046_vm14, 65537, %v7400_v6  ;;  %v6719_v58 = vsel %vm6503_vm10, %v2190_v8, %v6494_v47  ;;  %5380 = vmatprep.subr.bf16.mxu1 %v5741_v25  ;;  %vm7435_vm15 = vmmov %vm7431_vm7  ;;  %5475 = vmatpush3.bf16.msra.mxu0 %v5742_v19  ;;  %v1997_v54 = vld [vmem:[#allocation3 + $0x44] sm:$0xf]  ;;  %v3237_v16 = vld [vmem:[#allocation3 + $0x4c] sm:$0xf] }
 0x22e   : > { %v3375_v28 = vsel %vm7431_vm7, %v3370_v7, %v3374_v30  ;;  %v3378_v42 = vor.u32 %v3376_v14, %v3374_v30  ;;  %v2370_v29 = vrot.slane %v2368_v5, 1  ;;  %v2201_v46 = vshrl.u32 %v2062_v57, 16  ;;  %vm7436_vm14 = vmmov %vm7431_vm7  ;;  %v1998_v7 = vld [vmem:[#allocation3 + $0x48] sm:$0x1]  ;;  %v6726_v30 = vld [vmem:[#allocation9 + $0x238] sm:$0xff]   ;;  %5476 = vmatprep.subr.bf16.mxu0 %v5746_v63 }
 0x22f   : > { %5422 = vmatprep.mubr.bf16.mxu0 %v3375_v28  ;;  %v3382_v35 = vrot.slane %v3380_v12, 1  ;;  %v2204_v18 = vshll.u32 %v2062_v57, 16  ;;  %vm7318_vm7 = vcmp.ne.s16.totalorder %v6719_v58, 0  ;;  %v2372_v14 = vshrl.u32 %v6707_v61, 16 }
 0x230   : > { %v2371_v6 = vsel %vm7435_vm15, %v2366_v11, %v2370_v29  ;;  %v2203_v10 = vrot.slane %v2201_v46, 7  ;;  %5381 = vmatpush3.bf16.msra.mxu1 %v5741_v25  ;;  %v2240_v11 = vsel %vm7318_vm7, %v1996_v0, 0  ;;  %v3384_v5 = vshrl.u32 %v6709_v23, 16 }
 0x231   : > { %v3383_v32 = vsel %vm7436_vm14, %v3378_v42, %v3382_v35  ;;  %5327 = vmatmul.mubr.bf16.gmra.mxu1 %v2371_v6  ;;  %5430 = vmatprep.subr.bf16.mxu1 %v6721_v3  ;;  %v3253_v61 = vsel %vm7318_vm7, %v3236_v62, 0  ;;  %v2374_v46 = vor.u32 %v2372_v14, %v2370_v29  ;;  %v5744_v14 = vld [vmem:[#allocation3 + $0x18] sm:$0xff]  }
 0x232   : > { %5423 = vmatmul.mubr.bf16.gmra.mxu0 %v3383_v32  ;;  %v2206_v22 = vor.u32 %v2204_v18, %v2203_v10  ;;  %v2208_v8 = vrot.slane %v2203_v10, 4  ;;  %v3386_v62 = vor.u32 %v3384_v5, %v3382_v35  ;;  %v5748_v5 = vld [vmem:[#allocation9 + $0x1b0] sm:$0xff]  }
 0x233   : > { %5477 = vmatpush3.bf16.msra.mxu0 %v5746_v63 }
 0x234   : > { %v2207_v19 = vsel %vm6503_vm10, %v6496_v50, %v2206_v22  ;;  %vm6736_vm15 = vcmp.ne.s16.totalorder %v2208_v8, 0  ;;  %5494 = vmatprep.subr.bf16.mxu0 %v6726_v30  ;;  %vm7441_vm10 = vsmask.f32 7424 }
 0x235   : > { %vm6742_vm14 = vcmp.ne.s16.totalorder %v2207_v19, 0  ;;  %v2242_v23 = vsel %vm6736_vm15, %v1998_v7, 0  ;;  %v3255_v28 = vsel %vm6736_vm15, %v3238_v45, 0  ;;  %vm7442_vm7 = vmmov %vm7441_vm10 }
 0x236   : > { %v2241_v50 = vsel %vm6742_vm14, %v1997_v54, 0  ;;  %v4895_v4 = vcombine.low %v2242_v23, %v2242_v23  ;;  %v3254_v42 = vsel %vm6742_vm14, %v3237_v16, 0  ;;  %v4945_v57 = vcombine.low %v3255_v28, %v3255_v28  ;;  %v5743_v54 = vld [vmem:[#allocation3 + $0x10] sm:$0xff]   ;;  %vm7443_vm12 = vmmov %vm7442_vm7  ;;  %v5749_v28 = vld [vmem:[#allocation3 + $0x20] sm:$0xff]  }
 0x237   : > { %v4894_v63 = vcombine.low %v2240_v11, %v2241_v50  ;;  %v4944_v0 = vcombine.low %v3253_v61, %v3254_v42  ;;  %v5747_v61 = vld [vmem:[#allocation3 + $0x18] sm:$0xff]   ;;  %vm7444_vm1 = vmmov %vm7442_vm7  ;;  %v5751_v50 = vld [vmem:[#allocation3 + $0x20] sm:$0xff]  }
 0x238   : > { %v2384_v18 = vshll.u32 %v4895_v4, 16  ;;  %v3396_v6 = vshll.u32 %v4945_v57, 16  ;;  %v6759_v4 = vld [vmem:[#allocation9 + $0x230] sm:$0xff]   ;;  %v5755_v42 = vld [vmem:[#allocation3 + $0x28] sm:$0xff]  }
 0x239   : > { %v2376_v32 = vshll.u32 %v4894_v63, 16  ;;  %v2380_v10 = vshrl.u32 %v4894_v63, 16  ;;  %v3388_v7 = vshll.u32 %v4944_v0, 16  ;;  %v3392_v45 = vshrl.u32 %v4944_v0, 16  ;;  %v6763_v57 = vld [vmem:[#allocation9 + $0x228] sm:$0xff]   ;;  %v5757_v63 = vld [vmem:[#allocation3 + $0x30] sm:$0xff]  }
 0x23a   : > { %v2386_v8 = vrot.slane %v2384_v18, 1  ;;  %v3398_v53 = vrot.slane %v3396_v6, 1  ;;  %v3585_v0 = vld [vmem:[#allocation3 + $0x14] sm:$0x8]  ;;  %v5756_v18 = vld [vmem:[#allocation9 + $0x1a0] sm:$0xff]  }
 0x23b   : > { %v2378_v22 = vrot.slane %v2376_v32, 1  ;;  %v3390_v19 = vrot.slane %v3388_v7, 1  ;;  %v3587_v6 = vld [vmem:[#allocation3 + $0x1c] sm:$0xf]  ;;  %v3588_v32 = vld [vmem:[#allocation3 + $0x20] sm:$0xf] }
 0x23c   : > { %v3604_v7 = vsel %vm6268_vm3, %v3587_v6, 0  ;;  %vm7447_vm3 = vcmp.ne.s16.totalorder %v6494_v47, 0  ;;  %v4239_v6 = vld [vmem:[#allocation3 + $0x2c] sm:$0xf] }
 0x23d   : > { %v2379_v23 = vsel %vm7441_vm10, %v2374_v46, %v2378_v22  ;;  %v2382_v31 = vor.u32 %v2380_v10, %v2378_v22  ;;  %v3391_v16 = vsel %vm7442_vm7, %v3386_v62, %v3390_v19  ;;  %v3394_v11 = vor.u32 %v3392_v45, %v3390_v19  ;;  %v3586_v46 = vld [vmem:[#allocation3 + $0x18] sm:$0xf]  ;;  %v5759_v62 = vld [vmem:[#allocation3 + $0x30] sm:$0xff]   ;;  %v3590_v19 = vld [vmem:[#allocation3 + $0x28] sm:$0xf] }
 0x23e   : > { %5330 = vmatprep.mubr.bf16.mxu1 %v2379_v23  ;;  %5426 = vmatprep.mubr.bf16.mxu0 %v3391_v16  ;;  %v3603_v10 = vsel %vm6264_vm2, %v3586_v46, 0  ;;  %v3605_v45 = vsel %vm6272_vm5, %v3588_v32, 0  ;;  %vm7446_vm2 = vnez %v7364_v40  ;;  %v6780_v23 = vld [vmem:[#allocation9 + $0x220] sm:$0xff]   ;;  %vm7448_vm5 = vcmp.ne.s16.totalorder %v6524_v24, 0 }
 0x23f   : > { %v2387_v29 = vsel %vm7443_vm12, %v2382_v31, %v2386_v8  ;;  %v3399_v35 = vsel %vm7444_vm1, %v3394_v11, %v3398_v53  ;;  %v5753_v31 = vld [vmem:[#allocation9 + $0x1a8] sm:$0xff]   ;;  %vm7445_vm1 = vcmp.ne.s16.totalorder %v6223_v51, 0  ;;  %v3589_v8 = vld [vmem:[#allocation3 + $0x24] sm:$0xf]  ;;  %v4955_v51 = vcombine.low %v3604_v7, %v3605_v45  ;;  %v5764_v7 = vld [vmem:[#allocation9 + $0x190] sm:$0xff]  }
 0x240   : > { %5331 = vmatmul.mubr.bf16.gmra.mxu1 %v2387_v29  ;;  %5427 = vmatmul.mubr.bf16.gmra.mxu0 %v3399_v35  ;;  %v5752_v53 = vld [vmem:[#allocation3 + $0x28] sm:$0xff]   ;;  %v3606_v34 = vsel %vm6291_vm6, %v3589_v8, 0  ;;  %v4235_v29 = vld [vmem:[#allocation3 + $0x1c] sm:$0xf]  ;;  %v4236_v35 = vld [vmem:[#allocation3 + $0x20] sm:$0xf]  ;;  %vm7456_vm12 = vnez %v7383_v43  ;;  %vm7458_vm10 = vnez %v7389_v55 }
 0x241   : > { %5382 = vmatprep.mubr.bf16.mxu1 %v5743_v54  ;;  %5478 = vmatprep.mubr.bf16.mxu0 %v5747_v61  ;;  %v3607_v54 = vsel %vm7446_vm2, %v3590_v19, 0  ;;  %v4237_v40 = vld [vmem:[#allocation3 + $0x24] sm:$0xf]  ;;  %vm7449_vm6 = vcmp.ne.s16.totalorder %v6535_v38, 0  ;;  %v4256_v8 = vsel %vm6571_vm13, %v4239_v6, 0  ;;  %v6811_v19 = vld [vmem:[#allocation9 + $0x210] sm:$0xff]   ;;  %vm7455_vm13 = vnez %v7380_v56 }
 0x242   : > { %v6782_v61 = vcombine.low %v3606_v34, %v3607_v54  ;;  %v4254_v47 = vsel %vm6544_vm4, %v4237_v40, 0  ;;  %v5767_v45 = vld [vmem:[#allocation3 + $0x40] sm:$0xff]   ;;  %v3595_v40 = vld [vmem:[#allocation3 + $0x3c] sm:$0xf]  ;;  %vm7452_vm4 = vnez %v7378_v37  ;;  %v5768_v6 = vld [vmem:[#allocation3 + $0x48] sm:$0xff]  }
 0x243   : > { %v3601_v55 = vld [vmem:[#allocation3 + $0x54] sm:$0xf] }
 0x244   : > { %v3713_v32 = vshrl.u32 %v6782_v61, 16  ;;  %v3716_v54 = vshll.u32 %v6782_v61, 16 }
 0x246   : > { %v3715_v59 = vrot.slane %v3713_v32, 3  ;;  %v5773_v32 = vld [vmem:[#allocation3 + $0x50] sm:$0xff]  }
 0x248   : > { %5383 = vmatmul.mubr.bf16.vlgmr.msra.gmra.mxu1 %v5744_v14  ;;  %5479 = vmatmul.mubr.bf16.vlgmr.msra.gmra.mxu0 %v5749_v28  ;;  %v6785_v14 = vld [vmem:[#allocation9 + $0x218] sm:$0xff]   ;;  %v3704_v28 = vshrl.u32 %v4955_v51, 16 }
 0x249   : > { %5431 = vmatpush3.bf16.msra.mxu1 %v6721_v3  ;;  %5495 = vmatpush3.bf16.msra.mxu0 %v6726_v30  ;;  %v3602_v3 = vsel %vm7445_vm1, %v3585_v0, 0 }
 0x24a   : > { %5432 = vmatprep.subr.bf16.mxu1 %v5748_v5  ;;  %5386 = vmatprep.mubr.bf16.mxu1 %v5751_v50  ;;  %v4954_v22 = vcombine.low %v3602_v3, %v3603_v10  ;;  %v3707_v50 = vshll.u32 %v4955_v51, 16  ;;  %v3591_v3 = vld [vmem:[#allocation3 + $0x2c] sm:$0xf]  ;;  %v3592_v10 = vld [vmem:[#allocation3 + $0x30] sm:$0xf]  ;;  %v3706_v51 = vrot.slane %v3704_v28, 3 }
 0x24b   : > { %5496 = vmatprep.subr.bf16.mxu0 %v6759_v4  ;;  %5482 = vmatprep.mubr.bf16.mxu0 %v5755_v42  ;;  %v4251_v42 = vsel %vm7447_vm3, %v4234_v41, 0  ;;  %v3609_v38 = vsel %vm6334_vm11, %v3592_v10, 0  ;;  %v3596_v28 = vld [vmem:[#allocation3 + $0x40] sm:$0xf]  ;;  %vm7451_vm11 = vnez %v7376_v26 }
 0x24c   : > { %v3696_v16 = vshrl.u32 %v4954_v22, 16  ;;  %v3699_v11 = vshll.u32 %v4954_v22, 16  ;;  %v3709_v34 = vrot.slane %v3707_v50, 4  ;;  %v5769_v50 = vld [vmem:[#allocation9 + $0x188] sm:$0xff]  }
 0x24d   : > { %5433 = vmatpush3.bf16.msra.mxu1 %v5748_v5  ;;  %5497 = vmatpush3.bf16.msra.mxu0 %v6759_v4  ;;  %v5760_v5 = vld [vmem:[#allocation3 + $0x38] sm:$0xff]  }
 0x24e   : > { %5434 = vmatprep.subr.bf16.mxu1 %v5753_v31  ;;  %5498 = vmatprep.subr.bf16.mxu0 %v6763_v57  ;;  %v6792_v0 = vrot.slane %v3696_v16, 3  ;;  %v6794_v46 = vrot.slane %v3699_v11, 4  ;;  %v3594_v11 = vld [vmem:[#allocation3 + $0x38] sm:$0xf] }
 0x250   : > { %5387 = vmatmul.mubr.bf16.gmra.mxu1 %v5752_v53  ;;  %5483 = vmatmul.mubr.bf16.gmra.mxu0 %v5757_v63  ;;  %v4252_v53 = vsel %vm6539_vm9, %v4235_v29, 0  ;;  %v4238_v63 = vld [vmem:[#allocation3 + $0x28] sm:$0xf]  ;;  %vm7450_vm9 = vnez %v7366_v44  ;;  %v3702_v61 = vor.u32 %v6794_v46, %v6792_v0  ;;  %v3612_v0 = vsel %vm7451_vm11, %v3595_v40, 0 }
 0x251   : > { %5435 = vmatpush3.bf16.msra.mxu1 %v5753_v31  ;;  %5499 = vmatpush3.bf16.msra.mxu0 %v6763_v57  ;;  %v5765_v31 = vld [vmem:[#allocation3 + $0x40] sm:$0xff]   ;;  %v4987_v49 = vcombine.low %v4251_v42, %v4252_v53  ;;  %v4255_v24 = vsel %vm7449_vm6, %v4238_v63, 0  ;;  %v3608_v9 = vsel %vm7450_vm9, %v3591_v3, 0  ;;  %v3610_v63 = vsel %vm6343_vm0, %v3593_v48, 0 }
 0x252   : > { %5436 = vmatprep.subr.bf16.mxu1 %v5756_v18  ;;  %5390 = vmatprep.mubr.bf16.mxu1 %v5759_v62  ;;  %v4253_v62 = vsel %vm7448_vm5, %v4236_v35, 0  ;;  %v6817_v29 = vcombine.low %v4255_v24, %v4256_v8  ;;  %v4957_v35 = vcombine.low %v3608_v9, %v3609_v38  ;;  %v3613_v46 = vsel %vm7452_vm4, %v3596_v28, 0  ;;  %v5772_v3 = vld [vmem:[#allocation9 + $0x180] sm:$0xff]   ;;  %v3598_v8 = vld [vmem:[#allocation3 + $0x48] sm:$0xf] }
 0x253   : > { %5500 = vmatprep.subr.bf16.mxu0 %v6780_v23  ;;  %5486 = vmatprep.mubr.bf16.mxu0 %v5763_v36  ;;  %v6802_v22 = vcombine.low %v4253_v62, %v4254_v47  ;;  %v4347_v36 = vshll.u32 %v4987_v49, 16  ;;  %v4345_v16 = vshrl.u32 %v4987_v49, 16  ;;  %v3718_v62 = vrot.slane %v3716_v54, 4  ;;  %v3597_v24 = vld [vmem:[#allocation3 + $0x44] sm:$0xf] }
 0x254   : > { %v3722_v42 = vshrl.u32 %v4957_v35, 16  ;;  %v3725_v53 = vshll.u32 %v4957_v35, 16  ;;  %v4360_v20 = vshll.u32 %v6817_v29, 16  ;;  %v4959_v37 = vcombine.low %v3612_v0, %v3613_v46  ;;  %v3599_v54 = vld [vmem:[#allocation3 + $0x4c] sm:$0xf] }
 0x255   : > { %5437 = vmatpush3.bf16.msra.mxu1 %v5756_v18  ;;  %5501 = vmatpush3.bf16.msra.mxu0 %v6780_v23  ;;  %v5771_v18 = vld [vmem:[#allocation3 + $0x48] sm:$0xff]   ;;  %v4349_v44 = vrot.slane %v4347_v36, 1  ;;  %v4352_v41 = vshll.u32 %v6802_v22, 16  ;;  %v4356_v33 = vshrl.u32 %v6802_v22, 16  ;;  %vm7453_vm0 = vsmask.f32 4352 }
 0x256   : > { %5438 = vmatprep.subr.bf16.mxu1 %v5761_v2  ;;  %5502 = vmatprep.subr.bf16.mxu0 %v6785_v14  ;;  %v3724_v26 = vrot.slane %v3722_v42, 3  ;;  %v3719_v22 = vor.u32 %v3718_v62, %v3715_v59  ;;  %v3600_v36 = vld [vmem:[#allocation3 + $0x50] sm:$0xf]  ;;  %v3614_v48 = vsel %vm7455_vm13, %v3597_v24, 0  ;;  %v3743_v35 = vshll.u32 %v4959_v37, 16  ;;  %vm7459_vm1 = vmmov %vm7453_vm0 }
 0x257   : > { %v4350_v47 = vor.u32 %v4349_v44, %v4345_v16  ;;  %v4354_v49 = vrot.slane %v4352_v41, 1  ;;  %v3740_v41 = vshrl.u32 %v4959_v37, 16  ;;  %v3617_v28 = vsel %vm7458_vm10, %v3600_v36, 0  ;;  %vm7461_vm3 = vmmov %vm7453_vm0 }
 0x258   : > { %5391 = vmatmul.mubr.bf16.gmra.mxu1 %v5760_v5  ;;  %5487 = vmatmul.mubr.bf16.gmra.mxu0 %v5765_v31  ;;  %v6822_v5 = vld [vmem:[#allocation9 + $0x208] sm:$0xff]   ;;  %v3611_v31 = vsel %vm6365_vm8, %v3594_v11, 0  ;;  %vm7454_vm8 = vmmov %vm7442_vm7  ;;  %v3615_v11 = vsel %vm7456_vm12, %v3598_v8, 0  ;;  %vm7457_vm7 = vnez %v7385_v13  ;;  %vm7462_vm5 = vcmp.ne.s16.totalorder %v6242_v15, 0 }
 0x259   : > { %5439 = vmatpush3.bf16.msra.mxu1 %v5761_v2  ;;  %5503 = vmatpush3.bf16.msra.mxu0 %v6785_v14  ;;  %v3710_v2 = vor.u32 %v3709_v34, %v3706_v51  ;;  %v4958_v10 = vcombine.low %v3610_v63, %v3611_v31  ;;  %v4358_v51 = vor.u32 %v4356_v33, %v4354_v49  ;;  %v6841_v34 = vrot.slane %v4360_v20, 1  ;;  %vm7460_vm2 = vmmov %vm7454_vm8  ;;  %v4248_v31 = vld [vmem:[#allocation3 + $0x50] sm:$0xf]  ;;  %v4250_v20 = vld [vmem:[#allocation3 + $0x58] sm:$0x1] }
 0x25a   : > { %5440 = vmatprep.subr.bf16.mxu1 %v5764_v7  ;;  %5394 = vmatprep.mubr.bf16.mxu1 %v5767_v45  ;;  %v3727_v45 = vrot.slane %v3725_v53, 4  ;;  %v3616_v40 = vsel %vm7457_vm7, %v3599_v54, 0  ;;  %v3742_v13 = vrot.slane %v3740_v41, 3  ;;  %v3745_v53 = vrot.slane %v3743_v35, 4  ;;  %vm7464_vm9 = vmmov %vm7453_vm0  ;;  %v4243_v41 = vld [vmem:[#allocation3 + $0x3c] sm:$0xf] }
 0x25b   : > { %5504 = vmatprep.subr.bf16.mxu0 %v6811_v19  ;;  %5490 = vmatprep.mubr.bf16.mxu0 %v5771_v18  ;;  %v3711_v9 = vsel %vm7453_vm0, %v3702_v61, %v3710_v2  ;;  %v6838_v18 = vld [vmem:[#allocation9 + $0x200] sm:$0xff]   ;;  %v3731_v16 = vshrl.u32 %v4958_v10, 16  ;;  %v3734_v38 = vshll.u32 %v4958_v10, 16  ;;  %v4960_v61 = vcombine.low %v3614_v48, %v3615_v11  ;;  %vm7465_vm11 = vmmov %vm7453_vm0 }
 0x25c   : > { %v3728_v44 = vor.u32 %v3727_v45, %v3724_v26  ;;  %v3720_v56 = vsel %vm7459_vm1, %v3710_v2, %v3719_v22  ;;  %v4363_v43 = vsel %vm7460_vm2, %v4358_v51, %v6841_v34  ;;  %v4961_v63 = vcombine.low %v3616_v40, %v3617_v28  ;;  %vm7471_vm13 = vmmov %vm7460_vm2 }
 0x25d   : > { %5441 = vmatpush3.bf16.msra.mxu1 %v5764_v7  ;;  %5505 = vmatpush3.bf16.msra.mxu0 %v6811_v19  ;;  %v4355_v7 = vsel %vm7454_vm8, %v4350_v47, %v4354_v49  ;;  %v3733_v59 = vrot.slane %v3731_v16, 3  ;;  %v3749_v62 = vshrl.u32 %v4960_v61, 16  ;;  %v3752_v2 = vshll.u32 %v4960_v61, 16  ;;  %v4244_v61 = vld [vmem:[#allocation3 + $0x40] sm:$0xf]  ;;  %vm7472_vm12 = vmmov %vm7459_vm1 }
 0x25e   : > { %5442 = vmatprep.subr.bf16.mxu1 %v5769_v50  ;;  %5506 = vmatprep.subr.bf16.mxu0 %v6822_v5  ;;  %v3729_v42 = vsel %vm7461_vm3, %v3719_v22, %v3728_v44  ;;  %v3618_v46 = vsel %vm7462_vm5, %v3601_v55, 0  ;;  %v3758_v47 = vshrl.u32 %v4961_v63, 16  ;;  %v3761_v49 = vshll.u32 %v4961_v63, 16  ;;  %vm7478_vm5 = vmmov %vm7471_vm13 }
 0x25f   : > { %vm7463_vm6 = vcmp.ne.s16.totalorder %v6719_v58, 0  ;;  %v3751_v10 = vrot.slane %v3749_v62, 3  ;;  %v3754_v26 = vrot.slane %v3752_v2, 4  ;;  %v4962_v45 = vcombine.low %v3618_v46, %v3618_v46  ;;  %v4247_v2 = vld [vmem:[#allocation3 + $0x4c] sm:$0xf] }
 0x260   : > { %5395 = vmatmul.mubr.bf16.gmra.mxu1 %v5768_v6  ;;  %5491 = vmatmul.mubr.bf16.gmra.mxu0 %v5773_v32  ;;  %v4249_v6 = vld [vmem:[#allocation3 + $0x54] sm:$0xf]  ;;  %v3746_v32 = vor.u32 %v3745_v53, %v3742_v13  ;;  %v4265_v33 = vsel %vm7463_vm6, %v4248_v31, 0  ;;  %v4267_v8 = vsel %vm6736_vm15, %v4250_v20, 0  ;;  %v3763_v22 = vrot.slane %v3761_v49, 4  ;;  %vm7468_vm15 = vmmov %vm7453_vm0 }
 0x261   : > { %5443 = vmatpush3.bf16.msra.mxu1 %v5769_v50  ;;  %5507 = vmatpush3.bf16.msra.mxu0 %v6822_v5  ;;  %v3736_v50 = vrot.slane %v3734_v38, 4  ;;  %v4266_v37 = vsel %vm6742_vm14, %v4249_v6, 0  ;;  %vm7466_vm4 = vcmp.ne.s16.totalorder %v6583_v17, 0  ;;  %vm7467_vm14 = vnez %v7420_v39  ;;  %vm7479_vm6 = vmmov %vm7478_vm5 }
 0x262   : > { %5444 = vmatprep.subr.bf16.mxu1 %v5772_v3  ;;  %5446 = vmatprep.mubr.bf16.mxu1 %v3711_v9  ;;  %v4994_v24 = vcombine.low %v4265_v33, %v4266_v37  ;;  %v3760_v9 = vrot.slane %v3758_v47, 3  ;;  %v3755_v36 = vor.u32 %v3754_v26, %v3751_v10  ;;  %v3767_v16 = vshrl.u32 %v4962_v45, 16 }
 0x263   : > { %5508 = vmatprep.subr.bf16.mxu0 %v6838_v18  ;;  %5510 = vmatprep.mubr.bf16.mxu0 %v4355_v7  ;;  %v3737_v0 = vor.u32 %v3736_v50, %v3733_v59  ;;  %v4995_v7 = vcombine.low %v4267_v8, %v4267_v8  ;;  %v3770_v38 = vshll.u32 %v4962_v45, 16  ;;  %vm7469_vm0 = vcmp.ne.s16.totalorder %v6619_v60, 0 }
 0x264   : > { %v4404_v54 = vshrl.u32 %v4994_v24, 16  ;;  %v3764_v11 = vor.u32 %v3763_v22, %v3760_v9  ;;  %v3756_v40 = vsel %vm7468_vm15, %v3746_v32, %v3755_v36  ;;  %v3769_v28 = vrot.slane %v3767_v16, 3  ;;  %v6922_v16 = vld [vmem:[%s7286_s5] ss:$0 sm:$0xff] }
 0x265   : > { %5445 = vmatpush3.bf16.msra.mxu1 %v5772_v3  ;;  %5509 = vmatpush3.bf16.msra.mxu0 %v6838_v18  ;;  %v4240_v3 = vld [vmem:[#allocation3 + $0x30] sm:$0xf]  ;;  %v3738_v15 = vsel %vm7464_vm9, %v3728_v44, %v3737_v0  ;;  %v3747_v58 = vsel %vm7465_vm11, %v3737_v0, %v3746_v32  ;;  %v4408_v12 = vshll.u32 %v4995_v7, 16  ;;  %v4242_v44 = vld [vmem:[#allocation3 + $0x38] sm:$0xf]  ;;  %vm7470_vm8 = vnez %v7424_v52  ;;  %vm7480_vm9 = vmmov %vm7478_vm5 }
 0x266   : > { %5526 = vmatprep.subr.bf16.mxu1 %v6726_v30  ;;  %v4257_v51 = vsel %vm7466_vm4, %v4240_v3, 0  ;;  %v4260_v59 = vsel %vm7470_vm8, %v4243_v41, 0  ;;  %v4364_v13 = vshrl.u32 %v6817_v29, 16  ;;  %vm7473_vm7 = vcmp.ne.s16.totalorder %v6649_v21, 0  ;;  %v4246_v29 = vld [vmem:[#allocation3 + $0x48] sm:$0xf]  ;;  %vm7481_vm11 = vmmov %vm7478_vm5 }
 0x267   : > { %v4410_v39 = vrot.slane %v4408_v12, 1  ;;  %v4261_v63 = vsel %vm7473_vm7, %v4244_v61, 0  ;;  %vm7474_vm10 = vnez %v7428_v27  ;;  %vm7475_vm2 = vcmp.ne.s16.totalorder %v6680_v1, 0  ;;  %vm7482_vm4 = vmmov %vm7478_vm5  ;;  %v7484_v41 = vld [vmem:[#allocation23_spill] sm:$0xff]  ;;  %v7485_v61 = vld [vmem:[#allocation26_spill] sm:$0xff] }
 0x268   : > { %5447 = vmatmul.mubr.bf16.vlgmr.msra.gmra.mxu1 %v3720_v56  ;;  %5511 = vmatmul.mubr.bf16.vlgmr.msra.gmra.mxu0 %v4363_v43  ;;  %v4245_v56 = vld [vmem:[#allocation3 + $0x44] sm:$0xf]  ;;  %v4259_v43 = vsel %vm7469_vm0, %v4242_v44, 0  ;;  %v4366_v55 = vor.u32 %v4364_v13, %v6841_v34  ;;  %v4263_v46 = vsel %vm7475_vm2, %v4246_v29, 0 }
 0x269   : > { %5534 = vmatpush3.bf16.msra.mxu1 %v6726_v30  ;;  %5450 = vmatprep.mubr.bf16.mxu1 %v3729_v42  ;;  %v4241_v30 = vld [vmem:[#allocation3 + $0x34] sm:$0xf]  ;;  %v3765_v42 = vsel %vm7472_vm12, %v3755_v36, %v3764_v11  ;;  %v4991_v60 = vcombine.low %v4259_v43, %v4260_v59 }
 0x26a   : > { %5527 = vmatprep.subr.bf16.mxu1 %v6759_v4  ;;  %v4258_v25 = vsel %vm7467_vm14, %v4241_v30, 0 }
 0x26b   : > { %v4990_v17 = vcombine.low %v4257_v51, %v4258_v25  ;;  %v4376_v0 = vshll.u32 %v4991_v60, 16  ;;  %v4380_v32 = vshrl.u32 %v4991_v60, 16  ;;  %v7487_v60 = vld [vmem:[#allocation29_spill] sm:$0xff] }
 0x26d   : > { %5535 = vmatpush3.bf16.msra.mxu1 %v6759_v4  ;;  %v4400_v4 = vshll.u32 %v4994_v24, 16  ;;  %v4368_v53 = vshll.u32 %v4990_v17, 16  ;;  %v4372_v27 = vshrl.u32 %v4990_v17, 16  ;;  %v4378_v49 = vrot.slane %v4376_v0, 1  ;;  %v6933_v17 = vld [vmem:[%s7285_s4] ss:$0 sm:$0xff] }
 0x26e   : > { %5528 = vmatprep.subr.bf16.mxu1 %v6763_v57 }
 0x26f   : > { %v6878_v48 = vrot.slane %v4400_v4, 1  ;;  %v4370_v31 = vrot.slane %v4368_v53, 1  ;;  %v4382_v1 = vor.u32 %v4380_v32, %v4378_v49 }
 0x270   : > { %5451 = vmatmul.mubr.bf16.gmra.mxu1 %v3738_v15 }
 0x271   : > { %5536 = vmatpush3.bf16.msra.mxu1 %v6763_v57  ;;  %5454 = vmatprep.mubr.bf16.mxu1 %v3747_v58  ;;  %v4406_v35 = vor.u32 %v4404_v54, %v6878_v48  ;;  %v3772_v57 = vrot.slane %v3770_v38, 4  ;;  %v4371_v34 = vsel %vm7478_vm5, %v4366_v55, %v4370_v31 }
 0x272   : > { %5529 = vmatprep.subr.bf16.mxu1 %v6780_v23 }
 0x273   : > { %v4411_v50 = vsel %vm7471_vm13, %v4406_v35, %v4410_v39  ;;  %v3773_v52 = vor.u32 %v3772_v57, %v3769_v28  ;;  %v794_v39 = vadd.f32 %v6922_v16, %v7484_v41 }
 0x275   : > { %5537 = vmatpush3.bf16.msra.mxu1 %v6780_v23  ;;  %v4262_v23 = vsel %vm7474_vm10, %v4245_v56, 0  ;;  %v3774_v21 = vsel %vm7459_vm1, %v3764_v11, %v3773_v52  ;;  %v797_v56 = vadd.f32 %v6922_v16, %v7485_v61  ;;  %v817_v59 = vadd.f32 %v6933_v17, %v794_v39  ;;  %v7493_v61 = vld [vmem:[#allocation34_spill] sm:$0xff] }
 0x276   : > { %5530 = vmatprep.subr.bf16.mxu1 %v6785_v14  ;;  %v4992_v62 = vcombine.low %v4261_v63, %v4262_v23  ;;  %v800_v52 = vadd.f32 %v6922_v16, %v7487_v60 }
 0x277   : > { %v820_v23 = vadd.f32 %v6933_v17, %v797_v56  ;;  %v805_v56 = vadd.f32 %v6922_v16, %v7493_v61 }
 0x278   : > { %5455 = vmatmul.mubr.bf16.gmra.mxu1 %v3756_v40  ;;  %v4384_v47 = vshll.u32 %v4992_v62, 16  ;;  %v4388_v26 = vshrl.u32 %v4992_v62, 16 }
 0x279   : > { %5538 = vmatpush3.bf16.msra.mxu1 %v6785_v14  ;;  %5458 = vmatprep.mubr.bf16.mxu1 %v3765_v42  ;;  %v7476_v14 = vld [vmem:[#allocation39_spill] sm:$0xff] }
 0x27a   : > { %5531 = vmatprep.subr.bf16.mxu1 %v6811_v19  ;;  %vm7477_vm3 = vnez %v7476_v14  ;;  %v4386_v20 = vrot.slane %v4384_v47, 1 }
 0x27b   : > { %v4264_v6 = vsel %vm7477_vm3, %v4247_v2, 0  ;;  %v7488_v2 = vld [vmem:[#allocation27_spill] sm:$0xff] }
 0x27c   : > { %v4993_v33 = vcombine.low %v4263_v46, %v4264_v6  ;;  %v4387_v45 = vsel %vm7480_vm9, %v4382_v1, %v4386_v20  ;;  %v4390_v15 = vor.u32 %v4388_v26, %v4386_v20  ;;  %v798_v0 = vadd.f32 %v6922_v16, %v7488_v2  ;;  %v7490_v20 = vld [vmem:[#allocation28_spill] sm:$0xff] }
 0x27d   : > { %5539 = vmatpush3.bf16.msra.mxu1 %v6811_v19  ;;  %v4374_v19 = vor.u32 %v4372_v27, %v4370_v31  ;;  %v823_v6 = vadd.f32 %v6933_v17, %v800_v52 }
 0x27e   : > { %5532 = vmatprep.subr.bf16.mxu1 %v6822_v5  ;;  %v4392_v3 = vshll.u32 %v4993_v33, 16  ;;  %v4396_v30 = vshrl.u32 %v4993_v33, 16  ;;  %v821_v1 = vadd.f32 %v6933_v17, %v798_v0 }
 0x27f   : > { %v4379_v10 = vsel %vm7479_vm6, %v4374_v19, %v4378_v49 }
 0x280   : > { %5459 = vmatmul.mubr.bf16.gmra.mxu1 %v3774_v21  ;;  %v4394_v37 = vrot.slane %v4392_v3, 1  ;;  %v799_v3 = vadd.f32 %v6922_v16, %v7490_v20  ;;  %v7497_v20 = vld [vmem:[#allocation38_spill] sm:$0xff] }
 0x281   : > { %5540 = vmatpush3.bf16.msra.mxu1 %v6822_v5  ;;  %5514 = vmatprep.mubr.bf16.mxu1 %v4371_v34  ;;  %v7489_v34 = vld [vmem:[#allocation30_spill] sm:$0xff] }
 0x282   : > { %5533 = vmatprep.subr.bf16.mxu1 %v6838_v18  ;;  %v4398_v24 = vor.u32 %v4396_v30, %v4394_v37  ;;  %v4395_v58 = vsel %vm7481_vm11, %v4390_v15, %v4394_v37  ;;  %v801_v32 = vadd.f32 %v6922_v16, %v7489_v34  ;;  %v7491_v15 = vld [vmem:[#allocation33_spill] sm:$0xff] }
 0x284   : > { %v4403_v22 = vsel %vm7482_vm4, %v4398_v24, %v6878_v48  ;;  %v7483_v48 = vld [vmem:[#allocation25_spill] sm:$0xff]  ;;  %v824_v37 = vadd.f32 %v6933_v17, %v801_v32 }
 0x285   : > { %5541 = vmatpush3.bf16.msra.mxu1 %v6838_v18  ;;  %v796_v11 = vadd.f32 %v6922_v16, %v7483_v48 }
 0x286   : > { %v5256_v5 = vpop.f32.mrf.mxu1 }
 0x287   : > { %v819_v28 = vadd.f32 %v6933_v17, %v796_v11 }
 0x288   : > { %5515 = vmatmul.mubr.bf16.vlgmr.msra.gmra.mxu1 %v4379_v10  ;;  %v1613_v8 = vpop.f32.mrf.mxu1 }
 0x289   : > { %5518 = vmatprep.mubr.bf16.mxu1 %v4387_v45  ;;  %v1678_v63 = vadd.f32 %v5256_v5, %v819_v28  ;;  %v1676_v62 = vadd.f32 %v1613_v8, %v817_v59  ;;  %v804_v5 = vadd.f32 %v6922_v16, %v7491_v15  ;;  %v7498_v15 = vld [vmem:[#allocation36_spill] sm:$0xff] }
 0x28a   : > { %v5257_v9 = vpop.f32.mrf.mxu1 }
 0x28b   : > { %v1679_v14 = vadd.f32 %v5257_v9, %v820_v23  ;;  %v827_v28 = vadd.f32 %v6933_v17, %v804_v5  ;;  %v807_v5 = vadd.f32 %v6922_v16, %v7498_v15 }
 0x28c   : > { %v1616_v18 = vpop.f32.mrf.mxu1 }
 0x290   : > { %5519 = vmatmul.mubr.bf16.gmra.mxu1 %v4395_v58 }
 0x291   : > { %5522 = vmatprep.mubr.bf16.mxu1 %v4403_v22  ;;  %v822_v22 = vadd.f32 %v6933_v17, %v799_v3  ;;  %v809_v3 = vadd.f32 %v6922_v16, %v7497_v20 }
 0x294   : > { %v5260_v7 = vpop.f32.mrf.mxu1 }
 0x295   : > { %v1682_v30 = vadd.f32 %v5260_v7, %v823_v6  ;;  %v7496_v6 = vld [vmem:[#allocation35_spill] sm:$0xff] }
 0x296   : > { %v1629_v51 = vpop.f32.mrf.mxu1  ;;  %v806_v34 = vadd.f32 %v6922_v16, %v7496_v6 }
 0x297   : > { %v1680_v9 = vadd.f32 %v1629_v51, %v821_v1 }
 0x298   : > { %5523 = vmatmul.mubr.bf16.gmra.mxu1 %v4411_v50  ;;  %v5261_v25 = vpop.f32.mrf.mxu1  ;;  %v7486_v50 = vld [vmem:[#allocation24_spill] sm:$0xff] }
 0x299   : > { %v795_v42 = vadd.f32 %v6922_v16, %v7486_v50  ;;  %v1683_v39 = vadd.f32 %v5261_v25, %v824_v37  ;;  %v829_v37 = vadd.f32 %v6933_v17, %v806_v34 }
 0x29a   : > { %v1632_v4 = vpop.f32.mrf.mxu1 }
 0x29b   : > { %v818_v29 = vadd.f32 %v6933_v17, %v795_v42  ;;  %v1681_v51 = vadd.f32 %v1632_v4, %v822_v22 }
 0x29d   : > { %v1677_v19 = vadd.f32 %v1616_v18, %v818_v29  ;;  %v7492_v18 = vld [vmem:[#allocation31_spill] sm:$0xff]  ;;  %v7495_v29 = vld [vmem:[#allocation37_spill] sm:$0xff] }
 0x29e   : > { %v802_v48 = vadd.f32 %v6922_v16, %v7492_v18  ;;  %v808_v2 = vadd.f32 %v6922_v16, %v7495_v29  ;;  %v832_v18 = vadd.f32 %v6933_v17, %v809_v3 }
 0x29f   : > { %v6915_v54 = vpop.f32.mrf.mxu1 }
 0x2a0   : > { %v825_v42 = vadd.f32 %v6933_v17, %v802_v48  ;;  %v1686_v25 = vadd.f32 %v6915_v54, %v827_v28  ;;  %v831_v1 = vadd.f32 %v6933_v17, %v808_v2  ;;  %v830_v28 = vadd.f32 %v6933_v17, %v807_v5 }
 0x2a1   : > { %v6917_v36 = vpop.f32.mrf.mxu1 }
 0x2a3   : > { %v6924_v12 = vpop.f32.mrf.mxu1 }
 0x2a5   : > { %v6926_v38 = vpop.f32.mrf.mxu1 }
 0x2a7   : > { %v6935_v44 = vpop.f32.mrf.mxu1  ;;  %v6939_v35 = vpop.f32.mrf.mxu0 }
 0x2a9   : > { %v6941_v40 = vpop.f32.mrf.mxu1  ;;  %v6946_v57 = vpop.f32.mrf.mxu0 }
 0x2ab   : > { %v6948_v43 = vpop.f32.mrf.mxu1  ;;  %v6953_v13 = vpop.f32.mrf.mxu0 }
 0x2ad   : > { %v6955_v53 = vpop.f32.mrf.mxu1  ;;  %v6960_v55 = vpop.f32.mrf.mxu0 }
 0x2af   : > { %v5288_v31 = vpop.f32.mrf.mxu1  ;;  %v6967_v46 = vpop.f32.mrf.mxu0 }
 0x2b0   : > { %v6965_v21 = vadd.f32 %v5288_v31, %v1678_v63  ;;  %v7494_v63 = vld [vmem:[#allocation32_spill] sm:$0xff] }
 0x2b1   : > { %v1887_v27 = vpop.f32.mrf.mxu1  ;;  %v6974_v33 = vpop.f32.mrf.mxu0  ;;  %v803_v23 = vadd.f32 %v6922_v16, %v7494_v63  ;;  %v1691_v16 = vadd.f32 %v6948_v43, %v832_v18 }
 0x2b2   : > { %v6972_v47 = vadd.f32 %v1887_v27, %v1676_v62  ;;  %v828_v62 = vadd.f32 %v6933_v17, %v805_v56  ;;  %v1684_v27 = vadd.f32 %v6917_v36, %v825_v42  ;;  %v1689_v42 = vadd.f32 %v6955_v53, %v830_v28 }
 0x2b3   : > { %v5289_v49 = vpop.f32.mrf.mxu1  ;;  %v6981_v45 = vpop.f32.mrf.mxu0 }
 0x2b4   : > { %v6979_v10 = vadd.f32 %v5289_v49, %v1679_v14  ;;  %v826_v14 = vadd.f32 %v6933_v17, %v803_v23 }
 0x2b5   : > { %v1890_v26 = vpop.f32.mrf.mxu1  ;;  %v6988_v58 = vpop.f32.mrf.mxu0 }
 0x2b6   : > { %v6986_v24 = vadd.f32 %v1890_v26, %v1677_v19  ;;  %v1687_v19 = vadd.f32 %v6924_v12, %v828_v62  ;;  %v1690_v12 = vadd.f32 %v6935_v44, %v831_v1 }
 0x2b7   : > { %v5292_v8 = vpop.f32.mrf.mxu1  ;;  %v6995_v7 = vpop.f32.mrf.mxu0 }
 0x2b8   : > { %v6993_v11 = vadd.f32 %v5292_v8, %v1682_v30  ;;  %v1685_v30 = vadd.f32 %v6926_v38, %v826_v14 }
 0x2b9   : > { %v1903_v41 = vpop.f32.mrf.mxu1  ;;  %v7007_v52 = vpop.f32.mrf.mxu0 }
 0x2ba   : > { %v7000_v59 = vadd.f32 %v1903_v41, %v1680_v9 }
 0x2bb   : > { %v5293_v50 = vpop.f32.mrf.mxu1  ;;  %v7021_v49 = vpop.f32.mrf.mxu0 }
 0x2bc   : > { %v7005_v60 = vadd.f32 %v5293_v50, %v1683_v39  ;;  %v1688_v39 = vadd.f32 %v6941_v40, %v829_v37 }
 0x2bd   : > { %v1906_v31 = vpop.f32.mrf.mxu1  ;;  %v7033_v9 = vpop.f32.mrf.mxu0 }
 0x2be   : > { %v7013_v0 = vadd.f32 %v1906_v31, %v1681_v51 }
 0x2bf   : > { %v5296_v4 = vpop.f32.mrf.mxu1  ;;  %v7041_v61 = vpop.f32.mrf.mxu0 }
 0x2c0   : > { %v7019_v32 = vadd.f32 %v5296_v4, %v1686_v25 }
 0x2c1   : > { %v1919_v54 = vpop.f32.mrf.mxu1  ;;  %v7047_v63 = vpop.f32.mrf.mxu0 }
 0x2c2   : > { %v7027_v26 = vadd.f32 %v1919_v54, %v1684_v27 }
 0x2c3   : > { %v5297_v36 = vpop.f32.mrf.mxu1  ;;  %v7051_v40 = vpop.f32.mrf.mxu0 }
 0x2c4   : > { %v1961_v8 = vadd.f32 %v5297_v36, %v1687_v19 }
 0x2c5   : > { %v1922_v22 = vpop.f32.mrf.mxu1  ;;  %v7053_v25 = vpop.f32.mrf.mxu0 }
 0x2c6   : > { %v1959_v48 = vadd.f32 %v1922_v22, %v1685_v30 }
 0x2c7   : > { %v5300_v41 = vpop.f32.mrf.mxu1 }
 0x2c8   : > { %v7039_v38 = vadd.f32 %v5300_v41, %v1690_v12 }
 0x2c9   : > { %v1935_v56 = vpop.f32.mrf.mxu1 }
 0x2ca   : > { %v1962_v50 = vadd.f32 %v1935_v56, %v1688_v39 }
 0x2cb   : > { %v5301_v51 = vpop.f32.mrf.mxu1 }
 0x2cc   : > { %v7045_v44 = vadd.f32 %v5301_v51, %v1691_v16 }
 0x2cd   : > { %v1938_v23 = vpop.f32.mrf.mxu1 }
 0x2ce   : > { %v7049_v31 = vadd.f32 %v1938_v23, %v1689_v42 }
 0x2d2   : > { %v5320_v17 = vpop.f32.mrf.mxu1  ;;  %v7060_v4 = vpop.f32.mrf.mxu0 }
 0x2d3   : > { %v2543_v62 = vadd.f32 %v5320_v17, %v6965_v21 }
 0x2d4   : > { %v2478_v29 = vpop.f32.mrf.mxu1  ;;  %v7070_v21 = vpop.f32.mrf.mxu0 }
 0x2d5   : > { %v2541_v43 = vadd.f32 %v2478_v29, %v6972_v47  ;;  %v7058_v2 = vadd.f32 %v6939_v35, %v2543_v62 }
 0x2d6   : > { %v5321_v53 = vpop.f32.mrf.mxu1  ;;  %v7075_v35 = vpop.f32.mrf.mxu0 }
 0x2d7   : > { %v2544_v27 = vadd.f32 %v5321_v53, %v6979_v10  ;;  %v7064_v14 = vadd.f32 %v6946_v57, %v2541_v43 }
 0x2d8   : > { %v2481_v6 = vpop.f32.mrf.mxu1  ;;  %v7077_v19 = vpop.f32.mrf.mxu0 }
 0x2d9   : > { %v2542_v34 = vadd.f32 %v2481_v6, %v6986_v24  ;;  %v7068_v54 = vadd.f32 %v6953_v13, %v2544_v27 }
 0x2db   : > { %v7073_v47 = vadd.f32 %v6960_v55, %v2542_v34 }
 0x2e7   : > { %v5324_v1 = vpop.f32.mrf.mxu1 }
 0x2e8   : > { %v2547_v10 = vadd.f32 %v5324_v1, %v6993_v11  ;;  %v5420_v57 = vpop.f32.mrf.mxu0 }
 0x2e9   : > { %v2494_v20 = vpop.f32.mrf.mxu1 }
 0x2ea   : > { %v2545_v3 = vadd.f32 %v2494_v20, %v7000_v59  ;;  %v3506_v24 = vpop.f32.mrf.mxu0  ;;  %v2922_v13 = vadd.f32 %v6967_v46, %v2547_v10 }
 0x2eb   : > { %v5325_v36 = vpop.f32.mrf.mxu1 }
 0x2ec   : > { %v2548_v30 = vadd.f32 %v5325_v36, %v7005_v60  ;;  %v5421_v37 = vpop.f32.mrf.mxu0  ;;  %v2920_v55 = vadd.f32 %v6974_v33, %v2545_v3 }
 0x2ed   : > { %v2497_v15 = vpop.f32.mrf.mxu1 }
 0x2ee   : > { %v2546_v5 = vadd.f32 %v2497_v15, %v7013_v0  ;;  %v3509_v22 = vpop.f32.mrf.mxu0  ;;  %v2923_v12 = vadd.f32 %v6981_v45, %v2548_v30 }
 0x2f0   : > { %v2921_v11 = vadd.f32 %v6988_v58, %v2546_v5 }
 0x2f1   : > { %v5328_v18 = vpop.f32.mrf.mxu1 }
 0x2f2   : > { %v5424_v41 = vpop.f32.mrf.mxu0  ;;  %v2551_v59 = vadd.f32 %v5328_v18, %v7019_v32 }
 0x2f3   : > { %v2510_v39 = vpop.f32.mrf.mxu1 }
 0x2f4   : > { %v2549_v46 = vadd.f32 %v2510_v39, %v7027_v26  ;;  %v3522_v28 = vpop.f32.mrf.mxu0  ;;  %v2926_v60 = vadd.f32 %v6995_v7, %v2551_v59 }
 0x2f5   : > { %v5329_v56 = vpop.f32.mrf.mxu1 }
 0x2f6   : > { %v2552_v33 = vadd.f32 %v5329_v56, %v1961_v8  ;;  %v2924_v16 = vadd.f32 %v7007_v52, %v2549_v46  ;;  %v5425_v42 = vpop.f32.mrf.mxu0 }
 0x2f7   : > { %v2513_v0 = vpop.f32.mrf.mxu1 }
 0x2f8   : > { %v2550_v51 = vadd.f32 %v2513_v0, %v1959_v48  ;;  %v2927_v45 = vadd.f32 %v7021_v49, %v2552_v33  ;;  %v3525_v23 = vpop.f32.mrf.mxu0 }
 0x2fa   : > { %v2925_v58 = vadd.f32 %v7033_v9, %v2550_v51 }
 0x300   : > { %v5332_v17 = vpop.f32.mrf.mxu1  ;;  %v5428_v32 = vpop.f32.mrf.mxu0 }
 0x301   : > { %v2555_v62 = vadd.f32 %v5332_v17, %v7039_v38 }
 0x302   : > { %v2526_v26 = vpop.f32.mrf.mxu1  ;;  %v7094_v29 = vpop.f32.mrf.mxu0 }
 0x303   : > { %v2553_v7 = vadd.f32 %v2526_v26, %v1962_v50  ;;  %v2930_v8 = vadd.f32 %v7041_v61, %v2555_v62 }
 0x304   : > { %v5333_v43 = vpop.f32.mrf.mxu1  ;;  %v7097_v52 = vpop.f32.mrf.mxu0 }
 0x305   : > { %v2556_v48 = vadd.f32 %v5333_v43, %v7045_v44  ;;  %v2928_v49 = vadd.f32 %v7047_v63, %v2553_v7 }
 0x306   : > { %v2529_v53 = vpop.f32.mrf.mxu1  ;;  %v7101_v9 = vpop.f32.mrf.mxu0 }
 0x307   : > { %v2554_v27 = vadd.f32 %v2529_v53, %v7049_v31  ;;  %v2931_v38 = vadd.f32 %v7051_v40, %v2556_v48 }
 0x308   : > { %v5384_v6 = vpop.f32.mrf.mxu1  ;;  %v7105_v34 = vpop.f32.mrf.mxu0 }
 0x309   : > { %v2929_v50 = vadd.f32 %v7053_v25, %v2554_v27 }
 0x30a   : > { %v3127_v61 = vpop.f32.mrf.mxu1  ;;  %v7108_v1 = vpop.f32.mrf.mxu0 }
 0x30c   : > { %v5385_v10 = vpop.f32.mrf.mxu1  ;;  %v7110_v20 = vpop.f32.mrf.mxu0 }
 0x30e   : > { %v3130_v44 = vpop.f32.mrf.mxu1  ;;  %v7112_v63 = vpop.f32.mrf.mxu0 }
 0x310   : > { %v5388_v3 = vpop.f32.mrf.mxu1  ;;  %v7114_v36 = vpop.f32.mrf.mxu0 }
 0x311   : > { %v3196_v31 = vadd.f32 %v5388_v3, %v2922_v13 }
 0x312   : > { %v3143_v30 = vpop.f32.mrf.mxu1  ;;  %v7116_v40 = vpop.f32.mrf.mxu0 }
 0x313   : > { %v3194_v15 = vadd.f32 %v3143_v30, %v2920_v55  ;;  %v7118_v5 = vadd.f32 %v5420_v57, %v3196_v31  ;;  %v3192_v30 = vadd.f32 %v5384_v6, %v7058_v2 }
 0x314   : > { %v5389_v25 = vpop.f32.mrf.mxu1  ;;  %v7120_v18 = vpop.f32.mrf.mxu0 }
 0x315   : > { %v3197_v59 = vadd.f32 %v5389_v25, %v2923_v12  ;;  %v7122_v39 = vadd.f32 %v3506_v24, %v3194_v15  ;;  %v3555_v2 = vadd.f32 %v7060_v4, %v3192_v30 }
 0x316   : > { %v3146_v46 = vpop.f32.mrf.mxu1  ;;  %v7124_v56 = vpop.f32.mrf.mxu0 }
 0x317   : > { %v3195_v33 = vadd.f32 %v3146_v46, %v2921_v11  ;;  %v7126_v0 = vadd.f32 %v5421_v37, %v3197_v59  ;;  %v3193_v46 = vadd.f32 %v5385_v10, %v7068_v54 }
 0x318   : > { %v5392_v51 = vpop.f32.mrf.mxu1  ;;  %v7128_v13 = vpop.f32.mrf.mxu0 }
 0x319   : > { %v3200_v17 = vadd.f32 %v5392_v51, %v2926_v60  ;;  %v7130_v62 = vadd.f32 %v3509_v22, %v3195_v33  ;;  %v3191_v51 = vadd.f32 %v3130_v44, %v7073_v47  ;;  %v3556_v54 = vadd.f32 %v7075_v35, %v3193_v46 }
 0x31a   : > { %v3159_v57 = vpop.f32.mrf.mxu1  ;;  %v7132_v55 = vpop.f32.mrf.mxu0 }
 0x31b   : > { %v3198_v26 = vadd.f32 %v3159_v57, %v2924_v16  ;;  %v7134_v7 = vadd.f32 %v5424_v41, %v3200_v17 }
 0x31c   : > { %v5393_v24 = vpop.f32.mrf.mxu1  ;;  %v7136_v12 = vpop.f32.mrf.mxu0 }
 0x31d   : > { %v3201_v43 = vadd.f32 %v5393_v24, %v2927_v45  ;;  %v7138_v48 = vadd.f32 %v3522_v28, %v3198_v26  ;;  %v3554_v26 = vadd.f32 %v7077_v19, %v3191_v51 }
 0x31e   : > { %v3162_v37 = vpop.f32.mrf.mxu1  ;;  %v7140_v11 = vpop.f32.mrf.mxu0 }
 0x31f   : > { %v3199_v53 = vadd.f32 %v3162_v37, %v2925_v58  ;;  %v7142_v27 = vadd.f32 %v5425_v42, %v3201_v43  ;;  %v3190_v42 = vadd.f32 %v3127_v61, %v7064_v14 }
 0x320   : > { %v5396_v22 = vpop.f32.mrf.mxu1  ;;  %v7144_v60 = vpop.f32.mrf.mxu0 }
 0x321   : > { %v3204_v3 = vadd.f32 %v5396_v22, %v2930_v8  ;;  %v7146_v31 = vadd.f32 %v3525_v23, %v3199_v53 }
 0x322   : > { %v3175_v41 = vpop.f32.mrf.mxu1  ;;  %v7148_v16 = vpop.f32.mrf.mxu0 }
 0x323   : > { %v3202_v45 = vadd.f32 %v3175_v41, %v2928_v49  ;;  %v7151_v28 = vadd.f32 %v5428_v32, %v3204_v3 }
 0x324   : > { %v5397_v15 = vpop.f32.mrf.mxu1  ;;  %v7153_v25 = vpop.f32.mrf.mxu0 }
 0x325   : > { %v3205_v58 = vadd.f32 %v5397_v15, %v2931_v38  ;;  %v7157_v59 = vadd.f32 %v7094_v29, %v3202_v45  ;;  %v3553_v38 = vadd.f32 %v7070_v21, %v3190_v42 }
 0x326   : > { %v3178_v8 = vpop.f32.mrf.mxu1  ;;  %v7159_v23 = vpop.f32.mrf.mxu0 }
 0x327   : > { %v3203_v33 = vadd.f32 %v3178_v8, %v2929_v50  ;;  %v7164_v32 = vadd.f32 %v7097_v52, %v3205_v58 }
 0x328   : > { %v5448_v49 = vpop.f32.mrf.mxu1  ;;  %v5512_v6 = vpop.f32.mrf.mxu0 }
 0x329   : > { %v3930_v14 = vadd.f32 %v5448_v49, %v3555_v2  ;;  %v7169_v29 = vadd.f32 %v7101_v9, %v3203_v33 }
 0x32a   : > { %v3865_v61 = vpop.f32.mrf.mxu1  ;;  %v4502_v17 = vpop.f32.mrf.mxu0 }
 0x32b   : > { %v3928_v57 = vadd.f32 %v3865_v61, %v3553_v38  ;;  %v4204_v4 = vadd.f32 %v7105_v34, %v3930_v14 }
 0x32c   : > { %v5449_v50 = vpop.f32.mrf.mxu1  ;;  %v5513_v44 = vpop.f32.mrf.mxu0 }
 0x32d   : > { %v3931_v52 = vadd.f32 %v5449_v50, %v3556_v54  ;;  %v4567_v10 = vadd.f32 %v5512_v6, %v4204_v4  ;;  %v4202_v47 = vadd.f32 %v7108_v1, %v3928_v57 }
 0x32e   : > { %v3868_v21 = vpop.f32.mrf.mxu1  ;;  %v4505_v22 = vpop.f32.mrf.mxu0 }
 0x32f   : > { %vm4615_vm14 = vcmp.ge.f32.partialorder %v4567_v10, 0.0  ;;  %v4631_v9 = vmul.f32 0.1, %v4567_v10  ;;  %v3929_v24 = vadd.f32 %v3868_v21, %v3554_v26  ;;  %v4565_v43 = vadd.f32 %v4502_v17, %v4202_v47 }
 0x330   : > { %v5452_v37 = vpop.f32.mrf.mxu1  ;;  %v4205_v35 = vadd.f32 %v7110_v20, %v3931_v52 }
 0x331   : > { %v4647_v53 = vsel %vm4615_vm14, %v4567_v10, %v4631_v9  ;;  %vm4613_vm15 = vcmp.ge.f32.partialorder %v4565_v43, 0.0  ;;  %v4629_v34 = vmul.f32 0.1, %v4565_v43  ;;  %v4203_v1 = vadd.f32 %v7112_v63, %v3929_v24 }
 0x332   : > { %4663 = vst [vmem:[%s6139_s1 + $0x10] sm:$0xff] %v4647_v53  ;;  %v4568_v3 = vadd.f32 %v5513_v44, %v4205_v35  ;;  %v3881_v19 = vpop.f32.mrf.mxu1  ;;  %v3934_v63 = vadd.f32 %v5452_v37, %v7118_v5 }
 0x333   : > { %v4645_v41 = vsel %vm4613_vm15, %v4565_v43, %v4629_v34  ;;  %v4566_v45 = vadd.f32 %v4505_v22, %v4203_v1  ;;  %v3932_v38 = vadd.f32 %v3881_v19, %v7122_v39 }
 0x334   : > { %4661 = vst [vmem:[%s6139_s1] sm:$0xff] %v4645_v41  ;;  %vm4616_vm0 = vcmp.ge.f32.partialorder %v4568_v3, 0.0  ;;  %v4632_v30 = vmul.f32 0.1, %v4568_v3  ;;  %v5453_v15 = vpop.f32.mrf.mxu1  ;;  %v4208_v57 = vadd.f32 %v7114_v36, %v3934_v63 }
 0x335   : > { %vm4614_vm8 = vcmp.ge.f32.partialorder %v4566_v45, 0.0  ;;  %v4630_v20 = vmul.f32 0.1, %v4566_v45  ;;  %v3935_v17 = vadd.f32 %v5453_v15, %v7126_v0  ;;  %v4206_v52 = vadd.f32 %v7116_v40, %v3932_v38 }
 0x336   : > { %v4648_v42 = vsel %vm4616_vm0, %v4568_v3, %v4632_v30  ;;  %v3884_v58 = vpop.f32.mrf.mxu1 }
 0x337   : > { %4664 = vst [vmem:[%s6139_s1 + $0x18] sm:$0xff] %v4648_v42  ;;  %v4646_v8 = vsel %vm4614_vm8, %v4566_v45, %v4630_v20  ;;  %v3933_v54 = vadd.f32 %v3884_v58, %v7130_v62  ;;  %v4209_v39 = vadd.f32 %v7120_v18, %v3935_v17 }
 0x338   : > { %v5456_v46 = vpop.f32.mrf.mxu1  ;;  %4662 = vst [vmem:[%s6139_s1 + $0x8] sm:$0xff] %v4646_v8 }
 0x339   : > { %v3938_v10 = vadd.f32 %v5456_v46, %v7134_v7  ;;  %v4207_v36 = vadd.f32 %v7124_v56, %v3933_v54 }
 0x33a   : > { %v3897_v33 = vpop.f32.mrf.mxu1 }
 0x33b   : > { %v3936_v44 = vadd.f32 %v3897_v33, %v7138_v48  ;;  %v4212_v24 = vadd.f32 %v7128_v13, %v3938_v10 }
 0x33c   : > { %v5457_v2 = vpop.f32.mrf.mxu1 }
 0x33d   : > { %v3939_v40 = vadd.f32 %v5457_v2, %v7142_v27  ;;  %v4210_v35 = vadd.f32 %v7132_v55, %v3936_v44 }
 0x33e   : > { %v3900_v49 = vpop.f32.mrf.mxu1 }
 0x33f   : > { %v3937_v48 = vadd.f32 %v3900_v49, %v7146_v31  ;;  %v4213_v3 = vadd.f32 %v7136_v12, %v3939_v40 }
 0x340   : > { %v5460_v6 = vpop.f32.mrf.mxu1 }
 0x341   : > { %v3942_v22 = vadd.f32 %v5460_v6, %v7151_v28  ;;  %v4211_v30 = vadd.f32 %v7140_v11, %v3937_v48 }
 0x342   : > { %v3913_v51 = vpop.f32.mrf.mxu1 }
 0x343   : > { %v3940_v41 = vadd.f32 %v3913_v51, %v7157_v59  ;;  %v4216_v20 = vadd.f32 %v7144_v60, %v3942_v22 }
 0x344   : > { %v5461_v14 = vpop.f32.mrf.mxu1 }
 0x345   : > { %v3943_v42 = vadd.f32 %v5461_v14, %v7164_v32  ;;  %v4214_v33 = vadd.f32 %v7148_v16, %v3940_v41 }
 0x346   : > { %v3916_v61 = vpop.f32.mrf.mxu1 }
 0x347   : > { %v3941_v46 = vadd.f32 %v3916_v61, %v7169_v29  ;;  %v4217_v6 = vadd.f32 %v7153_v25, %v3943_v42 }
 0x348   : > { %v5516_v4 = vpop.f32.mrf.mxu1 }
 0x349   : > { %v4571_v50 = vadd.f32 %v5516_v4, %v4208_v57  ;;  %v4215_v14 = vadd.f32 %v7159_v23, %v3941_v46 }
 0x34a   : > { %v4518_v26 = vpop.f32.mrf.mxu1 }
 0x34b   : > { %vm4619_vm13 = vcmp.ge.f32.partialorder %v4571_v50, 0.0  ;;  %v4635_v5 = vmul.f32 0.1, %v4571_v50  ;;  %v4569_v47 = vadd.f32 %v4518_v26, %v4206_v52 }
 0x34c   : > { %v5517_v0 = vpop.f32.mrf.mxu1 }
 0x34d   : > { %v4651_v62 = vsel %vm4619_vm13, %v4571_v50, %v4635_v5  ;;  %vm4617_vm12 = vcmp.ge.f32.partialorder %v4569_v47, 0.0  ;;  %v4633_v21 = vmul.f32 0.1, %v4569_v47  ;;  %v4572_v9 = vadd.f32 %v5517_v0, %v4209_v39 }
 0x34e   : > { %4667 = vst [vmem:[%s6139_s1 + $0x30] sm:$0xff] %v4651_v62  ;;  %v4521_v7 = vpop.f32.mrf.mxu1 }
 0x34f   : > { %v4649_v43 = vsel %vm4617_vm12, %v4569_v47, %v4633_v21  ;;  %vm4620_vm7 = vcmp.ge.f32.partialorder %v4572_v9, 0.0  ;;  %v4636_v18 = vmul.f32 0.1, %v4572_v9  ;;  %v4570_v37 = vadd.f32 %v4521_v7, %v4207_v36 }
 0x350   : > { %4665 = vst [vmem:[%s6139_s1 + $0x20] sm:$0xff] %v4649_v43  ;;  %v5520_v56 = vpop.f32.mrf.mxu1 }
 0x351   : > { %v4652_v53 = vsel %vm4620_vm7, %v4572_v9, %v4636_v18  ;;  %vm4618_vm10 = vcmp.ge.f32.partialorder %v4570_v37, 0.0  ;;  %v4634_v34 = vmul.f32 0.1, %v4570_v37  ;;  %v4575_v27 = vadd.f32 %v5520_v56, %v4212_v24 }
 0x352   : > { %4668 = vst [vmem:[%s6139_s1 + $0x38] sm:$0xff] %v4652_v53  ;;  %v4534_v13 = vpop.f32.mrf.mxu1 }
 0x353   : > { %v4650_v19 = vsel %vm4618_vm10, %v4570_v37, %v4634_v34  ;;  %vm4623_vm1 = vcmp.ge.f32.partialorder %v4575_v27, 0.0  ;;  %v4639_v1 = vmul.f32 0.1, %v4575_v27  ;;  %v4573_v31 = vadd.f32 %v4534_v13, %v4210_v35 }
 0x354   : > { %4666 = vst [vmem:[%s6139_s1 + $0x28] sm:$0xff] %v4650_v19  ;;  %v5521_v55 = vpop.f32.mrf.mxu1 }
 0x355   : > { %v4655_v45 = vsel %vm4623_vm1, %v4575_v27, %v4639_v1  ;;  %vm4621_vm2 = vcmp.ge.f32.partialorder %v4573_v31, 0.0  ;;  %v4637_v28 = vmul.f32 0.1, %v4573_v31  ;;  %v4576_v15 = vadd.f32 %v5521_v55, %v4213_v3 }
 0x356   : > { %4671 = vst [vmem:[%s6139_s1 + $0x50] sm:$0xff] %v4655_v45  ;;  %v4537_v12 = vpop.f32.mrf.mxu1 }
 0x357   : > { %v4653_v58 = vsel %vm4621_vm2, %v4573_v31, %v4637_v28  ;;  %vm4624_vm3 = vcmp.ge.f32.partialorder %v4576_v15, 0.0  ;;  %v4640_v59 = vmul.f32 0.1, %v4576_v15  ;;  %v4574_v8 = vadd.f32 %v4537_v12, %v4211_v30 }
 0x358   : > { %4669 = vst [vmem:[%s6139_s1 + $0x40] sm:$0xff] %v4653_v58  ;;  %v5524_v11 = vpop.f32.mrf.mxu1 }
 0x359   : > { %v4656_v2 = vsel %vm4624_vm3, %v4576_v15, %v4640_v59  ;;  %vm4622_vm5 = vcmp.ge.f32.partialorder %v4574_v8, 0.0  ;;  %v4638_v32 = vmul.f32 0.1, %v4574_v8  ;;  %v4579_v49 = vadd.f32 %v5524_v11, %v4216_v20 }
 0x35a   : > { %4672 = vst [vmem:[%s6139_s1 + $0x58] sm:$0xff] %v4656_v2  ;;  %v4550_v60 = vpop.f32.mrf.mxu1 }
 0x35b   : > { %v4654_v51 = vsel %vm4622_vm5, %v4574_v8, %v4638_v32  ;;  %vm4627_vm6 = vcmp.ge.f32.partialorder %v4579_v49, 0.0  ;;  %v4643_v29 = vmul.f32 0.1, %v4579_v49  ;;  %v4577_v63 = vadd.f32 %v4550_v60, %v4214_v33 }
 0x35c   : > { %4670 = vst [vmem:[%s6139_s1 + $0x48] sm:$0xff] %v4654_v51  ;;  %v5525_v16 = vpop.f32.mrf.mxu1 }
 0x35d   : > { %v4659_v38 = vsel %vm4627_vm6, %v4579_v49, %v4643_v29  ;;  %vm4625_vm9 = vcmp.ge.f32.partialorder %v4577_v63, 0.0  ;;  %v4641_v61 = vmul.f32 0.1, %v4577_v63  ;;  %v4580_v17 = vadd.f32 %v5525_v16, %v4217_v6 }
 0x35e   : > { %4675 = vst [vmem:[%s6139_s1 + $0x70] sm:$0xff] %v4659_v38  ;;  %v4553_v25 = vpop.f32.mrf.mxu1 }
 0x35f   : > { %v4657_v57 = vsel %vm4625_vm9, %v4577_v63, %v4641_v61  ;;  %vm4628_vm11 = vcmp.ge.f32.partialorder %v4580_v17, 0.0  ;;  %v4644_v54 = vmul.f32 0.1, %v4580_v17  ;;  %v4578_v4 = vadd.f32 %v4553_v25, %v4215_v14 }
 0x360   : > { %4673 = vst [vmem:[%s6139_s1 + $0x60] sm:$0xff] %v4657_v57 }
 0x361   : > { %v4660_v50 = vsel %vm4628_vm11, %v4580_v17, %v4644_v54  ;;  %vm4626_vm4 = vcmp.ge.f32.partialorder %v4578_v4, 0.0  ;;  %v4642_v23 = vmul.f32 0.1, %v4578_v4 }
 0x362   : > { %4676 = vst [vmem:[%s6139_s1 + $0x78] sm:$0xff] %v4660_v50 }
 0x363   : > { %v4658_v52 = vsel %vm4626_vm4, %v4578_v4, %v4642_v23 }
 0x364   : > { %4674 = vst [vmem:[%s6139_s1 + $0x68] sm:$0xff] %v4658_v52 }
 0x365   : > { %5863 = shalt.err (!%p5860_p4)
}
 0x366   : > { %s5864_s1 = scalar_lea.hbm %s7222_s16, 2048  ;;  %s5868_s30 = scalar_lea.hbm %s7287_s6, 8192 }
 0x367   : > { %p5865_p5 = scmp.ne.s32.totalorder %s7222_s16, %s5864_s1  ;;  %p5869_p9 = scmp.lt.s32.totalorder %s7222_s16, %s7287_s6 }
 0x368   : > { %p5870_p8 = scmp.lt.s32.totalorder %s5868_s30, %s5864_s1 }
 0x369   : > { %p5866_p6 = pnand %p5865_p5, %p6056_p3 }
 0x36a   : > { %p5871_p10 = por %p5870_p8, %p5869_p9 }
 0x36b   : > { %p5867_p7 = pneg %p5866_p6 }
 0x36d   : > { %p5872_p12 = pnand %p5871_p10, %p5867_p7 }
 0x36f   : > { %5875 = shalt.err (!%p5872_p12)
}
 0x370   : > { %s5967_s14 = smov 128   ;;  %s5968_s25 = smov 8  }
 0x371   : > { %5550 = dma.vmem_to_hbm [thread:$0]  (%p6056_p3), %s7224_s18, 2048, %s7222_s16, %s7230_s10, %s5967_s14, %s5967_s14, %s5968_s25  }
 0x372 PF: > { %p5567_p0 = scmp.ge.s32.totalorder %s5952_s28, 2  ;;  %s4709_s24 = sand.u32 1, %s5924_s21  }
 0x373   : > { %p7500_p1 = scmp.ne.s32.totalorder %s7327_s12, 0  ;;  %s4710_s8 = scalar_lea.sflag [#allocation8], %s4709_s24 }
 0x375   : > { %p5560_p11 = pnand %p5567_p0, %p7500_p1 }
 0x377   : > { %p5561_p13 = pneg %p5560_p11 }
 0x379   : > { %5919 = dma.done.wait (%p5561_p13), %s4710_s8, 2048  }
 0x37a   : > { %5921 = vsyncadd (%p5561_p13), %s4710_s8, 4294965248  ;;  %s21_s28 = sadd.s32 1, %s5952_s28   ;;  %s7501_s25 = sld [smem:[#allocation20_spill]] }
 0x37b   : > { %p18_p2 = scmp.ge.s32.totalorder %s21_s28, 6   ;;  %s7502_s11 = sld [smem:[#allocation21_spill]] }
 0x37c   : > { %s7503_s27 = sld [smem:[#allocation22_spill]]  ;;  %s7504_s21 = smov %s5928_s22 }
 0x37d   : > { %s7505_s22 = smov %s5932_s23  ;;  %s7506_s23 = smov %s6083_s17 }
 0x37e   : > { %s7507_s24 = smov %s5944_s26  ;;  %20 = sbr.rel (!%p18_p2) target bundleno = 10 (0xa), region = 106 }
 0x381   : > { %s7508_s26 = smov %s7502_s11 }
 0x383   :  { %4715 = vsyncpa [#allocation7], 1 }
 0x384   :  { %4717 = vsyncpa [#allocation7 + $0x1], 1 }
 0x385   :  { %4718 = vsyncpa [#allocation10], 1 }
 0x386   :  { %4719 = vsyncpa [#allocation8], 1 }
 0x387   :  { %4721 = vsyncpa [#allocation8 + $0x1], 1 }
 0x388   :  { %4722 = vsyncmov [#allocation5] }
 0x38b   :  { %s4723_s12 = vpop.sfrf %4722 }
 0x38c   :  { %p5011_p3 = scmp.ne.s32.totalorder %s4723_s12, 0 }
 0x38e   :  { %4727 = shalt.err (%p5011_p3)  }

// kernel: tpu_custom_call.1
= control target key start
LH: loop header
LB: loop body
LE: loop exit
PB: predicated region body
PF: predicated region fallthrough
CT: control target
= control target key end

     0   :  { %s5554_s0 = inlined_call_operand.hbm [shape: bf16[2,18,16,128], index: 0, kind: input, shape index: {}]   ;;  %s5555_s1 = inlined_call_operand.hbm [shape: bf16[128,256], index: 1, kind: input, shape index: {}]   ;;  %s5556_s2 = inlined_call_operand.vmem [shape: f32[1,128], index: 2, kind: input, shape index: {}]   ;;  %s5557_s3 = inlined_call_operand.hbm [shape: bf16[9,128,128], index: 3, kind: input, shape index: {}]   ;;  %s5558_s4 = inlined_call_operand.vmem [shape: f32[1,128], index: 4, kind: input, shape index: {}]   ;;  %s5559_s5 = inlined_call_operand.vmem [shape: f32[1,128], index: 5, kind: input, shape index: {}]   ;;  %s5560_s6 = inlined_call_operand.hbm [shape: f32[2,16,16,128], index: 6, kind: output, shape index: {}]  }
   0x1   :  { %5568 = sst [smem:[#allocation23_spill]] %s5555_s1 }
   0x2   :  { %5569 = sst [smem:[#allocation24_spill]] %s5557_s3 }
   0x3   :  { %11 = vsyncpa [#allocation7], 0 }
   0x4   :  { %12 = vsyncpa [#allocation10], 0 }
   0x5   :  { %13 = vsyncpa [#allocation8], 0 }
   0x6   :  { %15 = vsyncpa [#allocation8 + $0x1], 0  ;;  %s4622_s21 = smov 0   ;;  %s4624_s22 = smov 0  }
   0x7   :  { %s4626_s23 = smov 0   ;;  %s4628_s24 = smov 0  }
   0x8   :  { %s4630_s25 = smov 0   ;;  %s4632_s26 = smov 0  }
   0x9   :  { %s4634_s27 = smov 0   ;;  %s4636_s28 = smov 0  }
   0xa LB: > { %5570 = sst [smem:[#allocation20_spill]] %s4566_s27  ;;  %s3467_s29 = sadd.s32 4294967295, %s4570_s28   ;;  %s4570_s28 = sphi %s4636_s28, %s21_s28   ;;  %s4566_s27 = sphi %s4634_s27, %s5627_s27   ;;  %s4562_s26 = sphi %s4632_s26, %s5632_s26   ;;  %s4558_s25 = sphi %s4630_s25, %s5625_s25   ;;  %s4554_s24 = sphi %s4628_s24, %s5631_s24   ;;  %s4550_s23 = sphi %s4626_s23, %s5630_s23   ;;  %s4546_s22 = sphi %s4624_s22, %s5629_s22   ;;  %s4542_s21 = sphi %s4622_s21, %s5628_s21  }
   0xb   : > { %s3468_s30 = sadd.s32 4294967294, %s4570_s28   ;;  %s30_s7 = sadd.s32 1, %s4562_s26 }
   0xc   : > { %s33_s8 = sadd.s32 1, %s4566_s27  ;;  %p31_p0 = scmp.ge.s32.totalorder %s30_s7, 2 }
   0xd   : > { %s147_s9 = sadd.s32 1, %s4550_s23  ;;  %p157_p1 = scmp.ne.s32.totalorder %s4550_s23, %s4546_s22 }
   0xe   : > { %p158_p2 = scmp.eq.s32.totalorder %s3467_s29, 3  ;;  %s5634_s7 = smov (%p31_p0, %s30_s7), 0 }
   0xf   : > { %5571 = sst [smem:[#allocation21_spill]] %s5634_s7  ;;  %s5636_s8 = smov (!%p31_p0, %s33_s8), %s4566_s27 }
  0x10   : > { %s143_s10 = ssub.s32 %s4562_s26, %s5634_s7  ;;  %p4674_p3 = por %p158_p2, %p157_p1 }
  0x11   : > { %p35_p4 = scmp.ge.s32.totalorder %s5636_s8, 2  ;;  %p163_p5 = scmp.ne.s32.totalorder %s4546_s22, %s4542_s21 }
  0x12   : > { %p164_p6 = scmp.eq.s32.totalorder %s3468_s30, 3  ;;  %p3469_p7 = scmp.ge.s32.totalorder %s4570_s28, 1 }
  0x13   : > { %s5638_s8 = smov (%p35_p4, %s5636_s8), 0  ;;  %p171_p9 = scmp.lt.s32.totalorder %s4570_s28, 5 }
  0x14   : > { %5573 = sst [smem:[#allocation22_spill]] %s5638_s8  ;;  %p4683_p8 = por %p164_p6, %p163_p5 }
  0x15   : > { %s142_s13 = ssub.s32 %s4566_s27, %s5638_s8  ;;  %p4690_p10 = pnand %p3469_p7, %p171_p9 }
  0x16   : > { %s5574_s12 = scalar_select %p4683_p8, 1, 0 }
  0x17   : > { %s144_s14 = sor.u32 %s143_s10, %s142_s13  ;;  %p4694_p12 = scmp.eq.s32.totalorder %s3467_s29, 0 }
  0x18   : > { %p145_p11 = scmp.eq.s32.totalorder %s144_s14, 0  ;;  %p4194_p13 = pneg %p4690_p10 }
  0x19   : > { %s4572_s18 = smov [#allocation6]  }
  0x1a   : > { %s4701_s17 = scalar_select %p145_p11, %s4550_s23, %s147_s9  }
  0x1b   : > { %s183_s19 = sshll.u32 %s4572_s18, 4  ;;  %p4705_p0 = pnand %p4694_p12, %p4194_p13  ;;  %s184_s19 = int_to_ptr.vmem [resolvable:$true] %s183_s19 }
  0x1c   : > { %s4405_s29 = scalar_lea.vmem %s184_s19, 2048  ;;  %p4413_p6 = scmp.lt.s32.totalorder %s184_s19, %s184_s19 }
  0x1d   : > { %p4396_p1 = pneg %p4705_p0  ;;  %p4406_p2 = scmp.ne.s32.totalorder %s184_s19, %s4405_s29 }
  0x1e   : > { %p4414_p7 = scmp.lt.s32.totalorder %s4405_s29, %s4405_s29 }
  0x1f   : > { %p4408_p4 = pnand %p4406_p2, %p4396_p1 }
  0x20   : > { %p4415_p9 = por %p4414_p7, %p4413_p6 }
  0x21   : > { %p4409_p5 = pneg %p4408_p4 }
  0x23   : > { %p4416_p11 = pnand %p4415_p9, %p4409_p5 }
  0x25   : > { %4419 = shalt.err (!%p4416_p11)
}
  0x26   : > { %s4573_s30 = smov 128   ;;  %s4574_s9 = smov 8  }
  0x27   : > { %s5578_s1 = sld [smem:[#allocation23_spill]]  ;;  %s4575_s14 = smov [#allocation9]  }
  0x28   : > { %s199_s18 = sshll.u32 %s4575_s14, 4  ;;  %s200_s18 = int_to_ptr.vmem [resolvable:$true] %s199_s18 }
  0x29   : > { %s4431_s8 = scalar_lea.vmem %s200_s18, 9216  ;;  %p4439_p5 = scmp.lt.s32.totalorder %s200_s18, %s200_s18 }
  0x2a   : > { %p4432_p13 = scmp.ne.s32.totalorder %s200_s18, %s4431_s8  ;;  %p4440_p6 = scmp.lt.s32.totalorder %s4431_s8, %s4431_s8 }
  0x2c   : > { %p4434_p2 = pnand %p4432_p13, %p4396_p1  ;;  %p4441_p7 = por %p4440_p6, %p4439_p5 }
  0x2d   : > { %4197 = dma.hbm_to_vmem [thread:$0]  (!%p4705_p0), %s5578_s1, 2048, %s184_s19, [#allocation7], %s4573_s30, %s4573_s30, %s4574_s9  }
  0x2e   : > { %p4435_p4 = pneg %p4434_p2 }
  0x30   : > { %p4442_p9 = pnand %p4441_p7, %p4435_p4 }
  0x32   : > { %4445 = shalt.err (!%p4442_p9)
}
  0x33   : > { %s4576_s29 = smov 64   ;;  %s4577_s7 = smov 4  }
  0x34   : > { %s5579_s3 = sld [smem:[#allocation24_spill]] }
  0x36   : > { %221 = sbr.rel (%p4690_p10) target bundleno = 843 (0x34b), region = 40 }
  0x3a   : > { %4200 = dma.hbm_to_vmem [thread:$0]  (!%p4705_p0), %s5579_s3, 9216, %s200_s18, [#allocation10], %s4576_s29, %s4576_s29, %s4577_s7  }
  0x3b   : > { %4527 = dma.done.wait (%p4694_p12), [#allocation7], 2048  }
  0x3c   : > { %4529 = vsyncadd (%p4694_p12), [#allocation7], 4294965248 }
  0x3d   : > { %4531 = dma.done.wait (%p4694_p12), [#allocation10], 9216  }
  0x3e   : > { %4533 = vsyncadd (%p4694_p12), [#allocation10], 4294958080  ;;  %s5564_s7 = sand.u32 1, %s4546_s22   ;;  %s3734_s8 = sshll.u32 %s4554_s24, 4 }
  0x3f   : > { %s3475_s15 = sshll.u32 %s5564_s7, 7  ;;  %s252_s20 = smul.u32 36, %s4558_s25 }
  0x40   : > { %s4578_s9 = smov [#allocation2]   ;;  %p267_p10 = scmp.eq.s32.totalorder %s4558_s25, 0 }
  0x41   : > { %s253_s30 = sadd.s32 %s3734_s8, %s252_s20  ;;  %s263_s13 = sshll.u32 %s4578_s9, 4  ;;  %s264_s13 = int_to_ptr.vmem [resolvable:$true] %s263_s13 }
  0x42   : > { %s3478_s14 = sshll.u32 %s253_s30, 6  ;;  %s4448_s3 = scalar_lea.hbm %s5554_s0, 4608 }
  0x43   : > { %s255_s29 = scalar_lea.hbm %s5554_s0, %s3478_s14 }
  0x44   : > { %s4446_s10 = scalar_lea.hbm %s255_s29, 1280  ;;  %p4449_p0 = scmp.lt.s32.totalorder %s255_s29, %s5554_s0 }
  0x45   : > { %p4447_p12 = scmp.ne.s32.totalorder %s255_s29, %s4446_s10  ;;  %p4450_p1 = scmp.lt.s32.totalorder %s4448_s3, %s4446_s10 }
  0x47   : > { %p4451_p11 = por %p4450_p1, %p4449_p0 }
  0x49   : > { %p4452_p13 = pnand %p4451_p11, %p4447_p12 }
  0x4b   : > { %4455 = shalt.err (!%p4452_p13)  }
  0x4c   : > { %s4456_s20 = scalar_lea.vmem %s264_s13, 1280  ;;  %p4461_p4 = scmp.lt.s32.totalorder %s264_s13, %s264_s13 }
  0x4d   : > { %p4457_p2 = scmp.ne.s32.totalorder %s264_s13, %s4456_s20  ;;  %p4462_p5 = scmp.lt.s32.totalorder %s4456_s20, %s4456_s20 }
  0x4f   : > { %p4463_p6 = por %p4462_p5, %p4461_p4 }
  0x51   : > { %p4464_p7 = pnand %p4463_p6, %p4457_p2 }
  0x53   : > { %4467 = shalt.err (!%p4464_p7)  }
  0x54   : > { %266 = dma.hbm_to_vmem [thread:$0]  %s255_s29, 1280, %s264_s13, [#allocation5] }
  0x55   : > { %p268_p9 = scmp.eq.s32.totalorder %s4554_s24, 0  ;;  %s4757_s1 = scalar_lea.vmem [#allocation11], %s3475_s15 }
  0x57   : > { %p269_p8 = pnand %p268_p9, %p267_p10 }
  0x59   : > { %272 = sbr.rel (%p269_p8) target bundleno = 96 (0x60), region = 56 }
  0x5e   : > { %v4579_v0 = vmov 0.0  }
  0x5f   : > { %274 = vst [vmem:[#allocation3 + $0x8] sm:$0xff] %v4579_v0  ;;  %275 = vst [vmem:[#allocation3 + $0xb0] sm:$0xff] %v4579_v0 }
  0x60 PF: > { %4534 = dma.done.wait [#allocation5], 1280 }
  0x61   : > { %4535 = vsyncadd [#allocation5], 4294966016  ;;  %v4580_v1 = vmov 0   ;;  %v4288_v2 = vld [vmem:[#allocation6 + $0x74] ss:$8 sps:$4 sm:$0xff]   ;;  %v4314_v20 = vld [vmem:[#allocation2 + $0x10] sm:$0xff]  }
  0x62   : > { %490 = vmatprep.mubr.bf16.mxu0 %v4580_v1  ;;  %v4290_v3 = vld [vmem:[#allocation6 + $0x70] ss:$8 sps:$4 sm:$0xff]   ;;  %458 = vmatprep.subr.bf16.mxu0 %v4288_v2  ;;  %v4291_v4 = vld [vmem:[#allocation6 + $0x64] ss:$8 sps:$4 sm:$0xff]   ;;  %v4293_v5 = vld [vmem:[#allocation6 + $0x60] ss:$8 sps:$4 sm:$0xff]  }
  0x63   : > { %459 = vmatpush1.bf16.msra.mxu0 %v4290_v3  ;;  %v4294_v6 = vld [vmem:[#allocation6 + $0x54] ss:$8 sps:$4 sm:$0xff]   ;;  %v4296_v7 = vld [vmem:[#allocation6 + $0x50] ss:$8 sps:$4 sm:$0xff]   ;;  %v4297_v8 = vld [vmem:[#allocation6 + $0x44] ss:$8 sps:$4 sm:$0xff]  }
  0x64   : > { %460 = vmatprep.subr.bf16.mxu0 %v4291_v4  ;;  %v4299_v9 = vld [vmem:[#allocation6 + $0x40] ss:$8 sps:$4 sm:$0xff]   ;;  %v4300_v10 = vld [vmem:[#allocation6 + $0x34] ss:$8 sps:$4 sm:$0xff]   ;;  %v4302_v11 = vld [vmem:[#allocation6 + $0x30] ss:$8 sps:$4 sm:$0xff]  }
  0x65   : > { %v4303_v12 = vld [vmem:[#allocation6 + $0x24] ss:$8 sps:$4 sm:$0xff]   ;;  %v4305_v13 = vld [vmem:[#allocation6 + $0x20] ss:$8 sps:$4 sm:$0xff]   ;;  %v4306_v14 = vld [vmem:[#allocation6 + $0x14] ss:$8 sps:$4 sm:$0xff]  }
  0x66   : > { %v4308_v15 = vld [vmem:[#allocation6 + $0x10] ss:$8 sps:$4 sm:$0xff]   ;;  %v4309_v16 = vld [vmem:[#allocation6 + $0x4] ss:$8 sps:$4 sm:$0xff]   ;;  %v4311_v17 = vld [vmem:[#allocation6] ss:$8 sps:$4 sm:$0xff]  }
  0x67   : > { %461 = vmatpush1.bf16.msra.mxu0 %v4293_v5  ;;  %v4312_v18 = vld [vmem:[#allocation2] sm:$0xff]   ;;  %v4313_v19 = vld [vmem:[#allocation2 + $0x8] sm:$0xff]   ;;  %v4315_v21 = vld [vmem:[#allocation2 + $0x18] sm:$0xff]   ;;  %p3506_p8 = scmp.ne.s32.totalorder %s4554_s24, 0 }
  0x68   : > { %462 = vmatprep.subr.bf16.mxu0 %v4294_v6  ;;  %v4316_v22 = vld [vmem:[#allocation2 + $0x20] sm:$0xff]   ;;  %v4317_v23 = vld [vmem:[#allocation2 + $0x28] sm:$0xff]   ;;  %v4318_v24 = vld [vmem:[#allocation2 + $0x30] sm:$0xff]  }
  0x69   : > { %v4319_v25 = vld [vmem:[#allocation2 + $0x38] sm:$0xff]   ;;  %v4320_v26 = vld [vmem:[#allocation2 + $0x40] sm:$0xff]   ;;  %v4321_v27 = vld [vmem:[#allocation2 + $0x48] sm:$0xff]  }
  0x6a   : > { %v4762_v28 = vld [vmem:[%s5556_s2] ss:$0 sm:$0xff] }
  0x6b   : > { %463 = vmatpush1.bf16.msra.mxu0 %v4296_v7 }
  0x6c   : > { %464 = vmatprep.subr.bf16.mxu0 %v4297_v8 }
  0x6f   : > { %465 = vmatpush1.bf16.msra.mxu0 %v4299_v9 }
  0x70   : > { %466 = vmatprep.subr.bf16.mxu0 %v4300_v10 }
  0x73   : > { %467 = vmatpush1.bf16.msra.mxu0 %v4302_v11 }
  0x74   : > { %468 = vmatprep.subr.bf16.mxu0 %v4303_v12 }
  0x77   : > { %469 = vmatpush1.bf16.msra.mxu0 %v4305_v13 }
  0x78   : > { %470 = vmatprep.subr.bf16.mxu0 %v4306_v14 }
  0x7b   : > { %471 = vmatpush1.bf16.msra.mxu0 %v4308_v15 }
  0x7c   : > { %472 = vmatprep.subr.bf16.mxu0 %v4309_v16 }
  0x7f   : > { %473 = vmatpush1.bf16.msra.mxu0 %v4311_v17 }
  0x82   : > { %491 = vmatmul.mubr.bf16.vlgmr.msra.gmra.mxu0 %v4312_v18 }
  0x83   : > { %498 = vmatprep.mubr.bf16.mxu0 %v4580_v1 }
  0x8a   : > { %499 = vmatmul.mubr.bf16.gmra.mxu0 %v4313_v19 }
  0x8b   : > { %508 = vmatprep.mubr.bf16.mxu0 %v4580_v1 }
  0x92   : > { %509 = vmatmul.mubr.bf16.gmra.mxu0 %v4314_v20 }
  0x93   : > { %518 = vmatprep.mubr.bf16.mxu0 %v4580_v1 }
  0x9a   : > { %519 = vmatmul.mubr.bf16.gmra.mxu0 %v4315_v21 }
  0x9b   : > { %528 = vmatprep.mubr.bf16.mxu0 %v4580_v1 }
  0xa2   : > { %529 = vmatmul.mubr.bf16.gmra.mxu0 %v4316_v22 }
  0xa3   : > { %538 = vmatprep.mubr.bf16.mxu0 %v4580_v1 }
  0xaa   : > { %539 = vmatmul.mubr.bf16.gmra.mxu0 %v4317_v23 }
  0xab   : > { %548 = vmatprep.mubr.bf16.mxu0 %v4580_v1 }
  0xb2   : > { %549 = vmatmul.mubr.bf16.gmra.mxu0 %v4318_v24 }
  0xb3   : > { %558 = vmatprep.mubr.bf16.mxu0 %v4580_v1 }
  0xba   : > { %559 = vmatmul.mubr.bf16.gmra.mxu0 %v4319_v25 }
  0xbb   : > { %568 = vmatprep.mubr.bf16.mxu0 %v4580_v1 }
  0xc2   : > { %569 = vmatmul.mubr.bf16.gmra.mxu0 %v4320_v26 }
  0xc3   : > { %578 = vmatprep.mubr.bf16.mxu0 %v4580_v1 }
  0xca   : > { %579 = vmatmul.mubr.bf16.gmra.mxu0 %v4321_v27 }
 0x142   : > { %v492_v29 = vpop.f32.mrf.mxu0 }
 0x143   : > { %v594_v30 = vadd.f32 %v4762_v28, %v492_v29 }
 0x144   : > { %v494_v31 = vpop.f32.mrf.mxu0 }
 0x145   : > { %vm614_vm0 = vcmp.ge.f32.partialorder %v594_v30, 0.0  ;;  %v634_v32 = vmul.f32 0.1, %v594_v30 }
 0x146   : > { %v495_v33 = vpop.f32.mrf.mxu0 }
 0x147   : > { %v654_v34 = vsel %vm614_vm0, %v594_v30, %v634_v32  ;;  %v595_v35 = vadd.f32 %v4762_v28, %v495_v33 }
 0x148   : > { %674 = vst [vmem:[#allocation3 + $0x10] sm:$0xff] %v654_v34  ;;  %v497_v36 = vpop.f32.mrf.mxu0 }
 0x149   : > { %vm615_vm1 = vcmp.ge.f32.partialorder %v595_v35, 0.0  ;;  %v635_v37 = vmul.f32 0.1, %v595_v35 }
 0x14a   : > { %v500_v38 = vpop.f32.mrf.mxu0 }
 0x14b   : > { %v655_v39 = vsel %vm615_vm1, %v595_v35, %v635_v37  ;;  %v596_v40 = vadd.f32 %v4762_v28, %v500_v38 }
 0x14c   : > { %675 = vst [vmem:[#allocation3 + $0x18] sm:$0xff] %v655_v39  ;;  %v4767_v41 = vpop.f32.mrf.mxu0 }
 0x14d   : > { %vm616_vm2 = vcmp.ge.f32.partialorder %v596_v40, 0.0  ;;  %v636_v42 = vmul.f32 0.1, %v596_v40 }
 0x14e   : > { %v504_v43 = vpop.f32.mrf.mxu0 }
 0x14f   : > { %v656_v44 = vsel %vm616_vm2, %v596_v40, %v636_v42  ;;  %v597_v45 = vadd.f32 %v4762_v28, %v504_v43 }
 0x150   : > { %676 = vst [vmem:[#allocation3 + $0x20] sm:$0xff] %v656_v44  ;;  %v4770_v46 = vpop.f32.mrf.mxu0 }
 0x151   : > { %vm617_vm3 = vcmp.ge.f32.partialorder %v597_v45, 0.0  ;;  %v637_v47 = vmul.f32 0.1, %v597_v45 }
 0x152   : > { %v510_v48 = vpop.f32.mrf.mxu0 }
 0x153   : > { %v657_v49 = vsel %vm617_vm3, %v597_v45, %v637_v47  ;;  %v598_v50 = vadd.f32 %v4762_v28, %v510_v48 }
 0x154   : > { %677 = vst [vmem:[#allocation3 + $0x28] sm:$0xff] %v657_v49  ;;  %v4773_v51 = vpop.f32.mrf.mxu0 }
 0x155   : > { %vm618_vm4 = vcmp.ge.f32.partialorder %v598_v50, 0.0  ;;  %v638_v52 = vmul.f32 0.1, %v598_v50 }
 0x156   : > { %v514_v53 = vpop.f32.mrf.mxu0 }
 0x157   : > { %v658_v54 = vsel %vm618_vm4, %v598_v50, %v638_v52  ;;  %v599_v55 = vadd.f32 %v4762_v28, %v514_v53 }
 0x158   : > { %678 = vst [vmem:[#allocation3 + $0x30] sm:$0xff] %v658_v54  ;;  %v4776_v56 = vpop.f32.mrf.mxu0 }
 0x159   : > { %vm619_vm5 = vcmp.ge.f32.partialorder %v599_v55, 0.0  ;;  %v639_v57 = vmul.f32 0.1, %v599_v55 }
 0x15a   : > { %v520_v58 = vpop.f32.mrf.mxu0 }
 0x15b   : > { %v659_v59 = vsel %vm619_vm5, %v599_v55, %v639_v57  ;;  %v600_v60 = vadd.f32 %v4762_v28, %v520_v58 }
 0x15c   : > { %679 = vst [vmem:[#allocation3 + $0x38] sm:$0xff] %v659_v59  ;;  %v4779_v61 = vpop.f32.mrf.mxu0 }
 0x15d   : > { %vm620_vm6 = vcmp.ge.f32.partialorder %v600_v60, 0.0  ;;  %v640_v62 = vmul.f32 0.1, %v600_v60 }
 0x15e   : > { %v524_v63 = vpop.f32.mrf.mxu0 }
 0x15f   : > { %v660_v0 = vsel %vm620_vm6, %v600_v60, %v640_v62  ;;  %v601_v1 = vadd.f32 %v4762_v28, %v524_v63 }
 0x160   : > { %680 = vst [vmem:[#allocation3 + $0x40] sm:$0xff] %v660_v0  ;;  %v4782_v2 = vpop.f32.mrf.mxu0 }
 0x161   : > { %vm621_vm7 = vcmp.ge.f32.partialorder %v601_v1, 0.0  ;;  %v641_v3 = vmul.f32 0.1, %v601_v1 }
 0x162   : > { %v530_v4 = vpop.f32.mrf.mxu0 }
 0x163   : > { %v661_v5 = vsel %vm621_vm7, %v601_v1, %v641_v3  ;;  %v602_v6 = vadd.f32 %v4762_v28, %v530_v4 }
 0x164   : > { %681 = vst [vmem:[#allocation3 + $0x48] sm:$0xff] %v661_v5  ;;  %v4785_v7 = vpop.f32.mrf.mxu0 }
 0x165   : > { %vm622_vm8 = vcmp.ge.f32.partialorder %v602_v6, 0.0  ;;  %v642_v8 = vmul.f32 0.1, %v602_v6 }
 0x166   : > { %v534_v9 = vpop.f32.mrf.mxu0 }
 0x167   : > { %v662_v10 = vsel %vm622_vm8, %v602_v6, %v642_v8  ;;  %v603_v11 = vadd.f32 %v4762_v28, %v534_v9 }
 0x168   : > { %682 = vst [vmem:[#allocation3 + $0x50] sm:$0xff] %v662_v10  ;;  %v4788_v12 = vpop.f32.mrf.mxu0 }
 0x169   : > { %vm623_vm9 = vcmp.ge.f32.partialorder %v603_v11, 0.0  ;;  %v643_v13 = vmul.f32 0.1, %v603_v11 }
 0x16a   : > { %v540_v14 = vpop.f32.mrf.mxu0 }
 0x16b   : > { %v663_v15 = vsel %vm623_vm9, %v603_v11, %v643_v13  ;;  %v604_v16 = vadd.f32 %v4762_v28, %v540_v14 }
 0x16c   : > { %683 = vst [vmem:[#allocation3 + $0x58] sm:$0xff] %v663_v15  ;;  %v4791_v17 = vpop.f32.mrf.mxu0 }
 0x16d   : > { %vm624_vm10 = vcmp.ge.f32.partialorder %v604_v16, 0.0  ;;  %v644_v18 = vmul.f32 0.1, %v604_v16 }
 0x16e   : > { %v544_v19 = vpop.f32.mrf.mxu0 }
 0x16f   : > { %v664_v20 = vsel %vm624_vm10, %v604_v16, %v644_v18  ;;  %v605_v21 = vadd.f32 %v4762_v28, %v544_v19 }
 0x170   : > { %684 = vst [vmem:[#allocation3 + $0x60] sm:$0xff] %v664_v20  ;;  %v4794_v22 = vpop.f32.mrf.mxu0 }
 0x171   : > { %vm625_vm11 = vcmp.ge.f32.partialorder %v605_v21, 0.0  ;;  %v645_v23 = vmul.f32 0.1, %v605_v21 }
 0x172   : > { %v550_v24 = vpop.f32.mrf.mxu0 }
 0x173   : > { %v665_v25 = vsel %vm625_vm11, %v605_v21, %v645_v23  ;;  %v606_v26 = vadd.f32 %v4762_v28, %v550_v24 }
 0x174   : > { %685 = vst [vmem:[#allocation3 + $0x68] sm:$0xff] %v665_v25  ;;  %v4797_v27 = vpop.f32.mrf.mxu0 }
 0x175   : > { %vm626_vm12 = vcmp.ge.f32.partialorder %v606_v26, 0.0  ;;  %v646_v29 = vmul.f32 0.1, %v606_v26 }
 0x176   : > { %v554_v30 = vpop.f32.mrf.mxu0 }
 0x177   : > { %v666_v31 = vsel %vm626_vm12, %v606_v26, %v646_v29  ;;  %v607_v32 = vadd.f32 %v4762_v28, %v554_v30 }
 0x178   : > { %686 = vst [vmem:[#allocation3 + $0x70] sm:$0xff] %v666_v31  ;;  %v4800_v33 = vpop.f32.mrf.mxu0 }
 0x179   : > { %vm627_vm13 = vcmp.ge.f32.partialorder %v607_v32, 0.0  ;;  %v647_v34 = vmul.f32 0.1, %v607_v32 }
 0x17a   : > { %v560_v35 = vpop.f32.mrf.mxu0 }
 0x17b   : > { %v667_v36 = vsel %vm627_vm13, %v607_v32, %v647_v34  ;;  %v608_v37 = vadd.f32 %v4762_v28, %v560_v35 }
 0x17c   : > { %687 = vst [vmem:[#allocation3 + $0x78] sm:$0xff] %v667_v36  ;;  %v4803_v38 = vpop.f32.mrf.mxu0 }
 0x17d   : > { %vm628_vm14 = vcmp.ge.f32.partialorder %v608_v37, 0.0  ;;  %v648_v39 = vmul.f32 0.1, %v608_v37 }
 0x17e   : > { %v564_v40 = vpop.f32.mrf.mxu0 }
 0x17f   : > { %v668_v42 = vsel %vm628_vm14, %v608_v37, %v648_v39  ;;  %v609_v43 = vadd.f32 %v4762_v28, %v564_v40 }
 0x180   : > { %688 = vst [vmem:[#allocation3 + $0x80] sm:$0xff] %v668_v42  ;;  %v4806_v44 = vpop.f32.mrf.mxu0 }
 0x181   : > { %vm629_vm15 = vcmp.ge.f32.partialorder %v609_v43, 0.0  ;;  %v649_v45 = vmul.f32 0.1, %v609_v43 }
 0x182   : > { %v570_v47 = vpop.f32.mrf.mxu0 }
 0x183   : > { %v669_v48 = vsel %vm629_vm15, %v609_v43, %v649_v45  ;;  %v610_v49 = vadd.f32 %v4762_v28, %v570_v47 }
 0x184   : > { %689 = vst [vmem:[#allocation3 + $0x88] sm:$0xff] %v669_v48  ;;  %v4809_v50 = vpop.f32.mrf.mxu0 }
 0x185   : > { %vm630_vm0 = vcmp.ge.f32.partialorder %v610_v49, 0.0  ;;  %v650_v52 = vmul.f32 0.1, %v610_v49 }
 0x186   : > { %v574_v53 = vpop.f32.mrf.mxu0 }
 0x187   : > { %v670_v54 = vsel %vm630_vm0, %v610_v49, %v650_v52  ;;  %v611_v55 = vadd.f32 %v4762_v28, %v574_v53 }
 0x188   : > { %690 = vst [vmem:[#allocation3 + $0x90] sm:$0xff] %v670_v54  ;;  %v4812_v57 = vpop.f32.mrf.mxu0 }
 0x189   : > { %vm631_vm1 = vcmp.ge.f32.partialorder %v611_v55, 0.0  ;;  %v651_v58 = vmul.f32 0.1, %v611_v55 }
 0x18a   : > { %v580_v59 = vpop.f32.mrf.mxu0 }
 0x18b   : > { %v671_v60 = vsel %vm631_vm1, %v611_v55, %v651_v58  ;;  %v612_v62 = vadd.f32 %v4762_v28, %v580_v59 }
 0x18c   : > { %691 = vst [vmem:[#allocation3 + $0x98] sm:$0xff] %v671_v60  ;;  %v582_v63 = vpop.f32.mrf.mxu0 }
 0x18d   : > { %vm632_vm2 = vcmp.ge.f32.partialorder %v612_v62, 0.0  ;;  %v652_v0 = vmul.f32 0.1, %v612_v62 }
 0x18e   : > { %v583_v1 = vpop.f32.mrf.mxu0 }
 0x18f   : > { %v672_v3 = vsel %vm632_vm2, %v612_v62, %v652_v0  ;;  %v613_v4 = vadd.f32 %v4762_v28, %v583_v1 }
 0x190   : > { %692 = vst [vmem:[#allocation3 + $0xa0] sm:$0xff] %v672_v3  ;;  %v585_v5 = vpop.f32.mrf.mxu0  ;;  %696 = sbr.rel (%p3506_p8) target bundleno = 407 (0x197), region = 60 }
 0x191   : > { %vm633_vm3 = vcmp.ge.f32.partialorder %v613_v4, 0.0  ;;  %v653_v6 = vmul.f32 0.1, %v613_v4 }
 0x193   : > { %v673_v8 = vsel %vm633_vm3, %v613_v4, %v653_v6 }
 0x194   : > { %693 = vst [vmem:[#allocation3 + $0xa8] sm:$0xff] %v673_v8 }
 0x195   : > { %v4581_v9 = vmov 0.0  }
 0x196   : > { %697 = vst [vmem:[#allocation3 + $0x10] sm:$0xff] %v4581_v9  ;;  %698 = vst [vmem:[#allocation3 + $0x18] sm:$0xff] %v4581_v9 }
 0x197 PF: > { %p3507_p10 = scmp.ne.s32.totalorder %s4554_s24, 1 }
 0x199   : > { %702 = sbr.rel (%p3507_p10) target bundleno = 416 (0x1a0), region = 64 }
 0x19e   : > { %v4582_v10 = vmov 0.0  }
 0x19f   : > { %703 = vst [vmem:[#allocation3 + $0xa0] sm:$0xff] %v4582_v10  ;;  %704 = vst [vmem:[#allocation3 + $0xa8] sm:$0xff] %v4582_v10 }
 0x1a0 PF: > { %v4322_v28 = vld [vmem:[#allocation9 + $0x38] sm:$0xff]   ;;  %v767_v11 = vlaneseq  ;;  %v4323_v13 = vld [vmem:[#allocation9 + $0x30] sm:$0xff]   ;;  %v4324_v15 = vld [vmem:[#allocation9 + $0x28] sm:$0xff]   ;;  %vm4583_vm5 = vmmov 1   ;;  %s3729_s13 = sshll.u32 %s4558_s25, 5  ;;  %s3370_s18 = sshll.u32 %s4757_s1, 4  ;;  %s5497_s18 = int_to_ptr.vmem [resolvable:$true] %s3370_s18 }
 0x1a1   : > { %3880 = vmatprep.subr.bf16.mxu1 %v4322_v28  ;;  %v4325_v18 = vld [vmem:[#allocation9 + $0x20] sm:$0xff]   ;;  %v1008_v19 = vld [vmem:[#allocation3 + $0xf] sm:$0xff]  ;;  %v1009_v20 = vld [vmem:[#allocation3 + $0x17] sm:$0xff]  ;;  %s3367_s14 = sadd.s32 %s3734_s8, %s3729_s13  ;;  %s5623_s29 = sand.u32 1, %s4546_s22  }
 0x1a2   : > { %v4818_v14 = vshrl.u32 %v767_v11, 7  ;;  %3881 = vmatpush3.bf16.msra.mxu1 %v4322_v28  ;;  %v3519_v23 = vpack.c.bf16 %v1009_v20, %v1008_v19  ;;  %v1010_v24 = vld [vmem:[#allocation3 + $0x1f] sm:$0xff]  ;;  %v1011_v25 = vld [vmem:[#allocation3 + $0x27] sm:$0xff]  ;;  %v4327_v31 = vld [vmem:[#allocation9 + $0x10] sm:$0xff]   ;;  %s3730_s25 = sshll.u32 %s3367_s14, 7  ;;  %s5503_s10 = scalar_lea.sflag [#allocation8], %s5623_s29 }
 0x1a3   : > { %3882 = vmatprep.subr.bf16.mxu1 %v4323_v13  ;;  %v3522_v26 = vpack.c.bf16 %v1011_v25, %v1010_v24  ;;  %v4326_v29 = vld [vmem:[#allocation9 + $0x18] sm:$0xff]   ;;  %v4334_v32 = vld [vmem:[#allocation9 + $0xf0] sm:$0xff]   ;;  %v4336_v34 = vld [vmem:[#allocation9 + $0xe8] sm:$0xff]   ;;  %s5495_s16 = scalar_lea.hbm %s5560_s6, %s3730_s25  ;;  %s4468_s19 = scalar_lea.vmem %s5497_s18, 2048 }
 0x1a4   : > { %v788_v16 = vand.u32 15, %v4818_v14  ;;  %v4332_v30 = vld [vmem:[#allocation9 + $0xf8] sm:$0xff]   ;;  %v4328_v35 = vld [vmem:[#allocation9 + $0x8] sm:$0xff]   ;;  %v770_v36 = vadd.s32 16, %v4818_v14  ;;  %v772_v37 = vadd.s32 32, %v4818_v14  ;;  %v4338_v39 = vld [vmem:[#allocation9 + $0xe0] sm:$0xff]   ;;  %p4469_p12 = scmp.ne.s32.totalorder %s5497_s18, %s4468_s19 }
 0x1a5   : > { %3976 = vmatprep.subr.bf16.mxu0 %v4332_v30  ;;  %v4329_v40 = vld [vmem:[#allocation9] sm:$0xff]   ;;  %v4340_v43 = vld [vmem:[#allocation9 + $0xd8] sm:$0xff]   ;;  %v1012_v48 = vld [vmem:[#allocation3 + $0x2f] sm:$0xff]  ;;  %v774_v52 = vadd.s32 48, %v4818_v14  ;;  %v776_v54 = vadd.s32 64, %v4818_v14  ;;  %v778_v8 = vadd.s32 80, %v4818_v14 }
 0x1a6   : > { %vm976_vm4 = vcmp.ne.s32.totalorder %v788_v16, 0  ;;  %3883 = vmatpush3.bf16.msra.mxu1 %v4323_v13  ;;  %3977 = vmatpush3.bf16.msra.mxu0 %v4332_v30  ;;  %v802_v42 = vand.u32 15, %v770_v36  ;;  %v816_v45 = vand.u32 15, %v772_v37  ;;  %v4330_v47 = vld [vmem:[#allocation9 + $0x78] sm:$0xff]   ;;  %v4342_v53 = vld [vmem:[#allocation9 + $0xd0] sm:$0xff]   ;;  %v4344_v0 = vld [vmem:[#allocation9 + $0xc8] sm:$0xff]   ;;  %p4470_p0 = pnand %p4469_p12, %p4674_p3 }
 0x1a7   : > { %3884 = vmatprep.subr.bf16.mxu1 %v4324_v15  ;;  %vm4822_vm6 = vmpackc.low %vm4583_vm5, %vm976_vm4  ;;  %3978 = vmatprep.subr.bf16.mxu0 %v4334_v32  ;;  %v1013_v49 = vld [vmem:[#allocation3 + $0x37] sm:$0xff]  ;;  %v830_v60 = vand.u32 15, %v774_v52  ;;  %v844_v63 = vand.u32 15, %v776_v54  ;;  %v1014_v1 = vld [vmem:[#allocation3 + $0x3f] sm:$0xff]  ;;  %v780_v9 = vadd.s32 96, %v4818_v14  ;;  %v5588_v16 = vmov 0 }
 0x1a8   : > { %3896 = vmatprep.mubr.msk.bf16.mxu1 %vm4822_vm6, %v3519_v23  ;;  %3992 = vmatprep.mubr.msk.bf16.mxu0 %vm4822_vm6, %v3522_v26  ;;  %vm978_vm7 = vcmp.ne.s32.totalorder %v802_v42, 0  ;;  %vm980_vm8 = vcmp.ne.s32.totalorder %v816_v45, 0  ;;  %v4331_v58 = vld [vmem:[#allocation9 + $0x70] sm:$0xff]   ;;  %v3525_v59 = vpack.c.bf16 %v1013_v49, %v1012_v48  ;;  %v1015_v3 = vld [vmem:[#allocation3 + $0x47] sm:$0xff]  ;;  %v4348_v20 = vld [vmem:[#allocation9 + $0x178] sm:$0xff]   ;;  %v771_v30 = vadd.s32 24, %v4818_v14  ;;  %p4471_p1 = pneg %p4470_p0 }
 0x1a9   : > { %vm4835_vm9 = vmpackc.low %vm4583_vm5, %vm978_vm7  ;;  %vm982_vm11 = vcmp.ne.s32.totalorder %v830_v60, 0  ;;  %v4333_v4 = vld [vmem:[#allocation9 + $0x68] sm:$0xff]   ;;  %v1017_v6 = vld [vmem:[#allocation3 + $0x57] sm:$0xff]  ;;  %vm984_vm12 = vcmp.ne.s32.totalorder %v844_v63, 0  ;;  %v3528_v11 = vpack.c.bf16 %v1015_v3, %v1014_v1  ;;  %v872_v19 = vand.u32 15, %v780_v9  ;;  %s4584_s20 = smov [#allocation11]  }
 0x1aa   : > { %3885 = vmatpush3.bf16.msra.mxu1 %v4324_v15  ;;  %3979 = vmatpush3.bf16.msra.mxu0 %v4334_v32  ;;  %vm4840_vm10 = vmpackc.low %vm4583_vm5, %vm980_vm8  ;;  %v1016_v5 = vld [vmem:[#allocation3 + $0x4f] sm:$0xff]  ;;  %v4346_v10 = vld [vmem:[#allocation9 + $0xc0] sm:$0xff]   ;;  %v5592_v42 = vmov 0  ;;  %v777_v3 = vadd.s32 72, %v4818_v14  ;;  %s4472_s3 = sshll.u32 %s4584_s20, 4  ;;  %s4473_s3 = int_to_ptr.vmem [resolvable:$false] %s4472_s3 }
 0x1ab   : > { %3886 = vmatprep.subr.bf16.mxu1 %v4325_v18  ;;  %3980 = vmatprep.subr.bf16.mxu0 %v4336_v34  ;;  %vm4851_vm13 = vmpackc.low %vm4583_vm5, %vm982_vm11  ;;  %v4335_v13 = vld [vmem:[#allocation9 + $0x60] sm:$0xff]   ;;  %v3531_v15 = vpack.c.bf16 %v1017_v6, %v1016_v5  ;;  %v4337_v25 = vld [vmem:[#allocation9 + $0x58] sm:$0xff]   ;;  %vm988_vm0 = vcmp.ne.s32.totalorder %v872_v19, 0  ;;  %v779_v6 = vadd.s32 88, %v4818_v14  ;;  %s4474_s27 = scalar_lea.vmem %s4473_s3, 4096  ;;  %p4475_p11 = scmp.lt.s32.totalorder %s5497_s18, %s4473_s3 }
 0x1ac   : > { %vm4856_vm14 = vmpackc.low %vm4583_vm5, %vm984_vm12  ;;  %v1018_v23 = vld [vmem:[#allocation3 + $0x5f] sm:$0xff]  ;;  %v1019_v24 = vld [vmem:[#allocation3 + $0x67] sm:$0xff]  ;;  %p4476_p13 = scmp.lt.s32.totalorder %s4474_s27, %s4468_s19 }
 0x1ad   : > { %v5589_v16 = vsel %vm4856_vm14, 4294967295, %v5588_v16  ;;  %v4350_v32 = vld [vmem:[#allocation9 + $0x170] sm:$0xff]   ;;  %vm4876_vm2 = vmpackc.low %vm4583_vm5, %vm988_vm0  ;;  %v4352_v45 = vld [vmem:[#allocation9 + $0x168] sm:$0xff]  }
 0x1ae   : > { %3887 = vmatpush3.bf16.msra.mxu1 %v4325_v18  ;;  %3981 = vmatpush3.bf16.msra.mxu0 %v4336_v34  ;;  %v858_v18 = vand.u32 15, %v778_v8  ;;  %v3534_v34 = vpack.c.bf16 %v1019_v24, %v1018_v23  ;;  %v4339_v36 = vld [vmem:[#allocation9 + $0x50] sm:$0xff]   ;;  %v5593_v42 = vsel %vm4876_vm2, 4294967295, %v5592_v42  ;;  %v1022_v48 = vld [vmem:[#allocation3 + $0x7f] sm:$0xff]  ;;  %v1023_v52 = vld [vmem:[#allocation3 + $0x87] sm:$0xff]  ;;  %v865_v23 = vand.u32 15, %v779_v6  ;;  %p4477_p2 = por %p4476_p13, %p4475_p11 }
 0x1af   : > { %3888 = vmatprep.subr.bf16.mxu1 %v4326_v29  ;;  %3982 = vmatprep.subr.bf16.mxu0 %v4338_v39  ;;  %v1289_v54 = vld [vmem:[#allocation3 + $0x10] sm:$0xff]  ;;  %v4354_v60 = vld [vmem:[#allocation9 + $0x160] sm:$0xff]   ;;  %v4356_v9 = vld [vmem:[#allocation9 + $0x158] sm:$0xff]  }
 0x1b0   : > { %vm986_vm15 = vcmp.ne.s32.totalorder %v858_v18, 0  ;;  %v4343_v8 = vld [vmem:[#allocation9 + $0x40] sm:$0xff]   ;;  %v851_v18 = vand.u32 15, %v777_v3  ;;  %v4345_v19 = vld [vmem:[#allocation9 + $0xb8] sm:$0xff]   ;;  %v1293_v24 = vld [vmem:[#allocation3 + $0x30] sm:$0xff]  ;;  %p4478_p4 = pnand %p4477_p2, %p4471_p1 }
 0x1b1   : > { %vm4867_vm1 = vmpackc.low %vm4583_vm5, %vm986_vm15  ;;  %v1296_v49 = vld [vmem:[#allocation3 + $0x48] sm:$0xff]  ;;  %v2541_v1 = vld [vmem:[#allocation3 + $0x3f] sm:$0xff] }
 0x1b2   : > { %3889 = vmatpush3.bf16.msra.mxu1 %v4326_v29  ;;  %3983 = vmatpush3.bf16.msra.mxu0 %v4338_v39  ;;  %v1020_v29 = vld [vmem:[#allocation3 + $0x6f] sm:$0xff]  ;;  %v2545_v21 = vld [vmem:[#allocation3 + $0x5f] sm:$0xff]  ;;  %v2550_v62 = vld [vmem:[#allocation3 + $0x87] sm:$0xff] }
 0x1b3   : > { %3890 = vmatprep.subr.bf16.mxu1 %v4327_v31  ;;  %3984 = vmatprep.subr.bf16.mxu0 %v4340_v43  ;;  %v1526_v3 = vld [vmem:[#allocation3 + $0x29] sm:$0xff]  ;;  %v2549_v55 = vld [vmem:[#allocation3 + $0x7f] sm:$0xff] }
 0x1b4   : > { %v2553_v28 = vld [vmem:[#allocation3 + $0x9f] sm:$0xff] }
 0x1b6   : > { %3891 = vmatpush3.bf16.msra.mxu1 %v4327_v31  ;;  %3985 = vmatpush3.bf16.msra.mxu0 %v4340_v43  ;;  %v1021_v31 = vld [vmem:[#allocation3 + $0x77] sm:$0xff]  ;;  %v773_v43 = vadd.s32 40, %v4818_v14 }
 0x1b7   : > { %3892 = vmatprep.subr.bf16.mxu1 %v4328_v35  ;;  %3986 = vmatprep.subr.bf16.mxu0 %v4342_v53  ;;  %v4871_v37 = vpack.c.bf16 %v1021_v31, %v1020_v29  ;;  %v781_v29 = vadd.s32 104, %v4818_v14  ;;  %v783_v31 = vadd.s32 120, %v4818_v14 }
 0x1ba   : > { %3893 = vmatpush3.bf16.msra.mxu1 %v4328_v35  ;;  %3987 = vmatpush3.bf16.msra.mxu0 %v4342_v53  ;;  %v5590_v35 = vmov 0  ;;  %v4341_v53 = vld [vmem:[#allocation9 + $0x48] sm:$0xff]  }
 0x1bb   : > { %3894 = vmatprep.subr.bf16.mxu1 %v4329_v40  ;;  %3988 = vmatprep.subr.bf16.mxu0 %v4344_v0  ;;  %v5591_v35 = vsel %vm4867_vm1, 4294967295, %v5590_v35 }
 0x1be   : > { %3895 = vmatpush3.bf16.msra.mxu1 %v4329_v40  ;;  %3989 = vmatpush3.bf16.msra.mxu0 %v4344_v0  ;;  %v809_v40 = vand.u32 15, %v771_v30  ;;  %v3540_v0 = vpack.c.bf16 %v1023_v52, %v1022_v48  ;;  %v4358_v30 = vld [vmem:[#allocation9 + $0x150] sm:$0xff]   ;;  %v1295_v48 = vld [vmem:[#allocation3 + $0x40] sm:$0xff]  ;;  %v4360_v52 = vld [vmem:[#allocation9 + $0x148] sm:$0xff]  }
 0x1bf   : > { %3912 = vmatprep.subr.bf16.mxu1 %v4330_v47  ;;  %3990 = vmatprep.subr.bf16.mxu0 %v4346_v10  ;;  %v4967_v6 = vpack.c.bf16 %v1296_v49, %v1295_v48  ;;  %v2295_v49 = vld [vmem:[#allocation3 + $0x51] sm:$0xff] }
 0x1c0   : > { %vm995_vm4 = vcmp.ne.s32.totalorder %v809_v40, 15 }
 0x1c1   : > { %3897 = vmatmul.mubr.msk.bf16.vlgmr.msra.gmra.mxu1 %vm4835_vm9, %v3522_v26  ;;  %v782_v26 = vadd.s32 112, %v4818_v14  ;;  %vm4894_vm7 = vmpackc.low %vm995_vm4, %vm4583_vm5  ;;  %vm4943_vm4 = vcmp.ne.s32.totalorder %v865_v23, 15  ;;  %v1299_v23 = vld [vmem:[#allocation3 + $0x60] sm:$0xff] }
 0x1c2   : > { %3913 = vmatpush3.bf16.msra.mxu1 %v4330_v47  ;;  %3900 = vmatprep.mubr.msk.bf16.mxu1 %vm4840_vm10, %v3525_v59  ;;  %v775_v47 = vadd.s32 56, %v4818_v14 }
 0x1c3   : > { %3914 = vmatprep.subr.bf16.mxu1 %v4331_v58  ;;  %3991 = vmatpush3.bf16.msra.mxu0 %v4346_v10  ;;  %v886_v39 = vand.u32 15, %v782_v26 }
 0x1c4   : > { %4040 = vmatprep.subr.bf16.mxu0 %v4348_v20  ;;  %v837_v63 = vand.u32 15, %v775_v47  ;;  %v879_v47 = vand.u32 15, %v781_v29  ;;  %v4353_v29 = vld [vmem:[#allocation9 + $0x98] sm:$0xff]  }
 0x1c5   : > { %vm4889_vm3 = vcmp.ne.s32.totalorder %v886_v39, 0  ;;  %v4347_v39 = vld [vmem:[#allocation9 + $0xb0] sm:$0xff]  }
 0x1c6   : > { %3915 = vmatpush3.bf16.msra.mxu1 %v4331_v58  ;;  %3993 = vmatmul.mubr.msk.bf16.vlgmr.msra.gmra.mxu0 %vm4835_vm9, %v3525_v59  ;;  %v1290_v58 = vld [vmem:[#allocation3 + $0x18] sm:$0xff]  ;;  %v823_v59 = vand.u32 15, %v773_v43  ;;  %vm4902_vm8 = vmpackc.low %vm4583_vm5, %vm4889_vm3  ;;  %vm4911_vm12 = vcmp.ne.s32.totalorder %v837_v63, 15  ;;  %vm4934_vm3 = vcmp.ne.s32.totalorder %v851_v18, 15  ;;  %v4366_v43 = vld [vmem:[#allocation9 + $0x1f0] sm:$0xff]  }
 0x1c7   : > { %3916 = vmatprep.subr.bf16.mxu1 %v4333_v4  ;;  %4041 = vmatpush3.bf16.msra.mxu0 %v4348_v20  ;;  %v1321_v5 = vpack.c.bf16 %v1290_v58, %v1289_v54  ;;  %vm4926_vm0 = vmpackc.low %vm4911_vm12, %vm4583_vm5  ;;  %v4349_v54 = vld [vmem:[#allocation9 + $0xa8] sm:$0xff]   ;;  %v1297_v58 = vld [vmem:[#allocation3 + $0x50] sm:$0xff] }
 0x1c8   : > { %4042 = vmatprep.subr.bf16.mxu0 %v4350_v32  ;;  %3996 = vmatprep.mubr.msk.bf16.mxu0 %vm4840_vm10, %v3528_v11  ;;  %vm997_vm11 = vcmp.ne.s32.totalorder %v823_v59, 15  ;;  %v1298_v59 = vld [vmem:[#allocation3 + $0x58] sm:$0xff]  ;;  %vm4960_vm12 = vmpackc.low %vm4943_vm4, %vm4583_vm5 }
 0x1c9   : > { %3901 = vmatmul.mubr.msk.bf16.gmra.mxu1 %vm4851_vm13, %v3528_v11  ;;  %v1291_v11 = vld [vmem:[#allocation3 + $0x20] sm:$0xff]  ;;  %vm4919_vm15 = vmpackc.low %vm997_vm11, %vm4583_vm5  ;;  %v4974_v10 = vpack.c.bf16 %v1298_v59, %v1297_v58  ;;  %v4368_v58 = vld [vmem:[#allocation9 + $0x1e8] sm:$0xff]  }
 0x1ca   : > { %3917 = vmatpush3.bf16.msra.mxu1 %v4333_v4  ;;  %3904 = vmatprep.mubr.msk.bf16.mxu1 %vm4856_vm14, %v3531_v15  ;;  %vm4952_vm11 = vmpackc.low %vm4934_vm3, %vm4583_vm5  ;;  %v2292_v18 = vld [vmem:[#allocation3 + $0x39] sm:$0xff]  ;;  %v4357_v59 = vld [vmem:[#allocation9 + $0x88] sm:$0xff]  }
 0x1cb   : > { %3918 = vmatprep.subr.bf16.mxu1 %v4335_v13  ;;  %4043 = vmatpush3.bf16.msra.mxu0 %v4350_v32 }
 0x1cc   : > { %4044 = vmatprep.subr.bf16.mxu0 %v4352_v45 }
 0x1ce   : > { %3919 = vmatpush3.bf16.msra.mxu1 %v4335_v13  ;;  %3997 = vmatmul.mubr.msk.bf16.gmra.mxu0 %vm4851_vm13, %v3531_v15  ;;  %v1292_v13 = vld [vmem:[#allocation3 + $0x28] sm:$0xff]  ;;  %v769_v15 = vadd.s32 8, %v4818_v14 }
 0x1cf   : > { %3920 = vmatprep.subr.bf16.mxu1 %v4337_v25  ;;  %4045 = vmatpush3.bf16.msra.mxu0 %v4352_v45  ;;  %v4932_v32 = vpack.c.bf16 %v1292_v13, %v1291_v11  ;;  %v1819_v14 = vld [vmem:[#allocation3 + $0x8f] sm:$0xff]  ;;  %v1820_v45 = vld [vmem:[#allocation3 + $0x97] sm:$0xff] }
 0x1d0   : > { %4046 = vmatprep.subr.bf16.mxu0 %v4354_v60  ;;  %4000 = vmatprep.mubr.msk.bf16.mxu0 %vm4856_vm14, %v3534_v34  ;;  %v4965_v63 = vpack.c.bf16 %v1820_v45, %v1819_v14  ;;  %v4355_v45 = vld [vmem:[#allocation9 + $0x90] sm:$0xff]  }
 0x1d1   : > { %3905 = vmatmul.mubr.msk.bf16.gmra.mxu1 %vm4867_vm1, %v3534_v34  ;;  %v795_v34 = vand.u32 15, %v769_v15  ;;  %v2291_v15 = vld [vmem:[#allocation3 + $0x31] sm:$0xff] }
 0x1d2   : > { %3921 = vmatpush3.bf16.msra.mxu1 %v4337_v25  ;;  %3908 = vmatprep.mubr.msk.bf16.mxu1 %vm4876_vm2, %v4871_v37  ;;  %v1294_v25 = vld [vmem:[#allocation3 + $0x38] sm:$0xff] }
 0x1d3   : > { %3922 = vmatprep.subr.bf16.mxu1 %v4339_v36  ;;  %4047 = vmatpush3.bf16.msra.mxu0 %v4354_v60  ;;  %v4938_v40 = vpack.c.bf16 %v1294_v25, %v1293_v24  ;;  %vm993_vm3 = vcmp.ne.s32.totalorder %v795_v34, 15  ;;  %v1300_v24 = vld [vmem:[#allocation3 + $0x68] sm:$0xff]  ;;  %v4364_v25 = vld [vmem:[#allocation9 + $0x1f8] sm:$0xff]   ;;  %v4996_v34 = vpack.c.bf16 %v2292_v18, %v2291_v15  ;;  %v4370_v18 = vld [vmem:[#allocation9 + $0x1e0] sm:$0xff]  }
 0x1d4   : > { %4048 = vmatprep.subr.bf16.mxu0 %v4356_v9  ;;  %vm4970_vm4 = vmpackc.low %vm993_vm3, %vm4583_vm5  ;;  %v4998_v14 = vpack.c.bf16 %v1300_v24, %v1299_v23  ;;  %v1534_v15 = vld [vmem:[#allocation3 + $0x69] sm:$0xff]  ;;  %v4359_v24 = vld [vmem:[#allocation9 + $0x80] sm:$0xff]  }
 0x1d6   : > { %3923 = vmatpush3.bf16.msra.mxu1 %v4339_v36  ;;  %4001 = vmatmul.mubr.msk.bf16.gmra.mxu0 %vm4867_vm1, %v4871_v37  ;;  %v1529_v36 = vld [vmem:[#allocation3 + $0x41] sm:$0xff] }
 0x1d7   : > { %3924 = vmatprep.subr.bf16.mxu1 %v4341_v53  ;;  %4049 = vmatpush3.bf16.msra.mxu0 %v4356_v9  ;;  %v4351_v9 = vld [vmem:[#allocation9 + $0xa0] sm:$0xff]  }
 0x1d8   : > { %4050 = vmatprep.subr.bf16.mxu0 %v4358_v30  ;;  %4004 = vmatprep.mubr.msk.bf16.mxu0 %vm4876_vm2, %v3540_v0  ;;  %vm1005_vm2 = vcmp.ne.s32.totalorder %v879_v47, 15 }
 0x1d9   : > { %3909 = vmatmul.mubr.msk.bf16.gmra.mxu1 %vm4902_vm8, %v3540_v0  ;;  %v1525_v0 = vld [vmem:[#allocation3 + $0x21] sm:$0xff]  ;;  %vm4982_vm14 = vmpackc.low %vm1005_vm2, %vm4583_vm5 }
 0x1da   : > { %3925 = vmatpush3.bf16.msra.mxu1 %v4341_v53  ;;  %3928 = vmatprep.mubr.bf16.mxu1 %v1321_v5  ;;  %v893_v53 = vand.u32 15, %v783_v31  ;;  %v4362_v5 = vld [vmem:[#allocation9 + $0x140] sm:$0xff]   ;;  %v4979_v11 = vpack.c.bf16 %v1526_v3, %v1525_v0  ;;  %v1302_v31 = vld [vmem:[#allocation3 + $0x78] sm:$0xff] }
 0x1db   : > { %3926 = vmatprep.subr.bf16.mxu1 %v4343_v8  ;;  %4051 = vmatpush3.bf16.msra.mxu0 %v4358_v30  ;;  %v1301_v30 = vld [vmem:[#allocation3 + $0x70] sm:$0xff]  ;;  %v1524_v3 = vld [vmem:[#allocation3 + $0x19] sm:$0xff] }
 0x1dc   : > { %4052 = vmatprep.subr.bf16.mxu0 %v4360_v52  ;;  %vm1007_vm1 = vcmp.ne.s32.totalorder %v893_v53, 15  ;;  %v5000_v47 = vpack.c.bf16 %v1302_v31, %v1301_v30  ;;  %v1303_v53 = vld [vmem:[#allocation3 + $0x80] sm:$0xff]  ;;  %v1523_v0 = vld [vmem:[#allocation3 + $0x11] sm:$0xff] }
 0x1dd   : > { %vm4987_vm3 = vmpackc.low %vm1007_vm1, %vm4583_vm5  ;;  %v2299_v30 = vld [vmem:[#allocation3 + $0x71] sm:$0xff]  ;;  %v2300_v31 = vld [vmem:[#allocation3 + $0x79] sm:$0xff]  ;;  %vm5620_vm5 = vnez %v5589_v16 }
 0x1de   : > { %3927 = vmatpush3.bf16.msra.mxu1 %v4343_v8  ;;  %4005 = vmatmul.mubr.msk.bf16.gmra.mxu0 %vm4902_vm8, %v4965_v63  ;;  %v4389_v8 = vld [vmem:[#allocation9 + $0x188] sm:$0xff]  }
 0x1df   : > { %3944 = vmatprep.subr.bf16.mxu1 %v4345_v19  ;;  %4053 = vmatpush3.bf16.msra.mxu0 %v4360_v52  ;;  %v2296_v52 = vld [vmem:[#allocation3 + $0x59] sm:$0xff]  ;;  %v2554_v16 = vld [vmem:[#allocation3 + $0xa7] sm:$0xff] }
 0x1e0   : > { %4054 = vmatprep.subr.bf16.mxu0 %v4362_v5  ;;  %4056 = vmatprep.mubr.msk.bf16.mxu0 %vm4970_vm4, %v4979_v11 }
 0x1e1   : > { %3929 = vmatmul.mubr.bf16.vlgmr.msra.gmra.mxu1 %v4932_v32 }
 0x1e2   : > { %3945 = vmatpush3.bf16.msra.mxu1 %v4345_v19  ;;  %3932 = vmatprep.mubr.bf16.mxu1 %v4938_v40 }
 0x1e3   : > { %3946 = vmatprep.subr.bf16.mxu1 %v4347_v39  ;;  %4055 = vmatpush3.bf16.msra.mxu0 %v4362_v5  ;;  %v5012_v5 = vpack.c.bf16 %v2296_v52, %v2295_v49  ;;  %v1538_v49 = vld [vmem:[#allocation3 + $0x89] sm:$0xff] }
 0x1e4   : > { %4104 = vmatprep.subr.bf16.mxu0 %v4364_v25  ;;  %v4374_v52 = vld [vmem:[#allocation9 + $0x1d0] sm:$0xff]  }
 0x1e6   : > { %3947 = vmatpush3.bf16.msra.mxu1 %v4347_v39  ;;  %v1530_v39 = vld [vmem:[#allocation3 + $0x49] sm:$0xff]  ;;  %4057 = vmatmul.mubr.msk.bf16.vlgmr.msra.gmra.mxu0 %vm4894_vm7, %v4996_v34 }
 0x1e7   : > { %3948 = vmatprep.subr.bf16.mxu1 %v4349_v54  ;;  %v5005_v48 = vpack.c.bf16 %v1530_v39, %v1529_v36  ;;  %4105 = vmatpush3.bf16.msra.mxu0 %v4364_v25  ;;  %v3559_v25 = vpack.c.bf16 %v1524_v3, %v1523_v0  ;;  %v4372_v36 = vld [vmem:[#allocation9 + $0x1d8] sm:$0xff]   ;;  %v4376_v0 = vld [vmem:[#allocation9 + $0x1c8] sm:$0xff]  }
 0x1e8   : > { %4106 = vmatprep.subr.bf16.mxu0 %v4366_v43  ;;  %v4361_v39 = vld [vmem:[#allocation9 + $0x138] sm:$0xff]  }
 0x1e9   : > { %3933 = vmatmul.mubr.bf16.gmra.mxu1 %v4967_v6  ;;  %4060 = vmatprep.mubr.msk.bf16.mxu0 %vm4919_vm15, %v5005_v48 }
 0x1ea   : > { %3949 = vmatpush3.bf16.msra.mxu1 %v4349_v54  ;;  %3936 = vmatprep.mubr.bf16.mxu1 %v4974_v10  ;;  %v1304_v54 = vld [vmem:[#allocation3 + $0x88] sm:$0xff] }
 0x1eb   : > { %3950 = vmatprep.subr.bf16.mxu1 %v4351_v9  ;;  %4107 = vmatpush3.bf16.msra.mxu0 %v4366_v43  ;;  %v5014_v23 = vpack.c.bf16 %v1304_v54, %v1303_v53  ;;  %v5027_v43 = vpack.c.bf16 %v2300_v31, %v2299_v30  ;;  %v4363_v53 = vld [vmem:[#allocation9 + $0x130] sm:$0xff]   ;;  %v5064_v31 = vld [vmem:[#allocation9 + $0x228] sm:$0xff]  }
 0x1ec   : > { %4108 = vmatprep.subr.bf16.mxu0 %v4368_v58  ;;  %v4371_v30 = vld [vmem:[#allocation9 + $0x110] sm:$0xff]  }
 0x1ee   : > { %3951 = vmatpush3.bf16.msra.mxu1 %v4351_v9  ;;  %v1533_v9 = vld [vmem:[#allocation3 + $0x61] sm:$0xff]  ;;  %4061 = vmatmul.mubr.msk.bf16.gmra.mxu0 %vm4926_vm0, %v5012_v5 }
 0x1ef   : > { %3952 = vmatprep.subr.bf16.mxu1 %v4353_v29  ;;  %4109 = vmatpush3.bf16.msra.mxu0 %v4368_v58  ;;  %v2303_v58 = vld [vmem:[#allocation3 + $0x91] sm:$0xff] }
 0x1f0   : > { %4110 = vmatprep.subr.bf16.mxu0 %v4370_v18 }
 0x1f1   : > { %3937 = vmatmul.mubr.bf16.gmra.mxu1 %v4998_v14 }
 0x1f2   : > { %3953 = vmatpush3.bf16.msra.mxu1 %v4353_v29  ;;  %3940 = vmatprep.mubr.bf16.mxu1 %v5000_v47  ;;  %v5019_v29 = vpack.c.bf16 %v1534_v15, %v1533_v9  ;;  %v4365_v9 = vld [vmem:[#allocation9 + $0x128] sm:$0xff]   ;;  %v4378_v15 = vld [vmem:[#allocation9 + $0x1c0] sm:$0xff]  }
 0x1f3   : > { %3954 = vmatprep.subr.bf16.mxu1 %v4355_v45  ;;  %4111 = vmatpush3.bf16.msra.mxu0 %v4370_v18  ;;  %v4367_v18 = vld [vmem:[#allocation9 + $0x120] sm:$0xff]  }
 0x1f4   : > { %4064 = vmatprep.mubr.msk.bf16.mxu0 %vm4952_vm11, %v5019_v29  ;;  %4112 = vmatprep.subr.bf16.mxu0 %v4372_v36 }
 0x1f6   : > { %3955 = vmatpush3.bf16.msra.mxu1 %v4355_v45  ;;  %v1537_v45 = vld [vmem:[#allocation3 + $0x81] sm:$0xff]  ;;  %4065 = vmatmul.mubr.msk.bf16.gmra.mxu0 %vm4960_vm12, %v5027_v43 }
 0x1f7   : > { %3956 = vmatprep.subr.bf16.mxu1 %v4357_v59  ;;  %v5032_v54 = vpack.c.bf16 %v1538_v49, %v1537_v45  ;;  %4113 = vmatpush3.bf16.msra.mxu0 %v4372_v36  ;;  %v4373_v36 = vld [vmem:[#allocation9 + $0x108] sm:$0xff]   ;;  %v4375_v45 = vld [vmem:[#allocation9 + $0x100] sm:$0xff]   ;;  %v5080_v49 = vld [vmem:[#allocation9 + $0x218] sm:$0xff]  }
 0x1f8   : > { %4114 = vmatprep.subr.bf16.mxu0 %v4374_v52 }
 0x1f9   : > { %3941 = vmatmul.mubr.bf16.gmra.mxu1 %v5014_v23  ;;  %4068 = vmatprep.mubr.msk.bf16.mxu0 %vm4982_vm14, %v5032_v54 }
 0x1fa   : > { %3957 = vmatpush3.bf16.msra.mxu1 %v4357_v59  ;;  %3960 = vmatprep.mubr.msk.bf16.mxu1 %vm4970_vm4, %v3559_v25  ;;  %v2304_v59 = vld [vmem:[#allocation3 + $0x99] sm:$0xff]  ;;  %v5058_v25 = vld [vmem:[#allocation9 + $0x230] sm:$0xff]  }
 0x1fb   : > { %3958 = vmatprep.subr.bf16.mxu1 %v4359_v24  ;;  %v5043_v3 = vpack.c.bf16 %v2304_v59, %v2303_v58  ;;  %4115 = vmatpush3.bf16.msra.mxu0 %v4374_v52  ;;  %v4377_v52 = vld [vmem:[#allocation9 + $0x1b8] sm:$0xff]   ;;  %v5088_v59 = vld [vmem:[#allocation9 + $0x210] sm:$0xff]  }
 0x1fc   : > { %4116 = vmatprep.subr.bf16.mxu0 %v4376_v0  ;;  %v2070_v58 = vld [vmem:[#allocation3 + $0x98] sm:$0xff] }
 0x1fe   : > { %3959 = vmatpush3.bf16.msra.mxu1 %v4359_v24  ;;  %4069 = vmatmul.mubr.msk.bf16.gmra.mxu0 %vm4987_vm3, %v5043_v3  ;;  %v4369_v24 = vld [vmem:[#allocation9 + $0x118] sm:$0xff]  }
 0x1ff   : > { %4008 = vmatprep.subr.bf16.mxu1 %v4361_v39  ;;  %4117 = vmatpush3.bf16.msra.mxu0 %v4376_v0 }
 0x200   : > { %4118 = vmatprep.subr.bf16.mxu0 %v4378_v15  ;;  %4120 = vmatprep.mubr.bf16.mxu0 %v4938_v40 }
 0x201   : > { %3961 = vmatmul.mubr.msk.bf16.vlgmr.msra.gmra.mxu1 %vm4894_vm7, %v4979_v11  ;;  %v5049_v11 = vld [vmem:[#allocation9 + $0x238] sm:$0xff]  }
 0x202   : > { %4009 = vmatpush3.bf16.msra.mxu1 %v4361_v39  ;;  %3964 = vmatprep.mubr.msk.bf16.mxu1 %vm4919_vm15, %v4996_v34  ;;  %v5074_v39 = vld [vmem:[#allocation9 + $0x220] sm:$0xff]  }
 0x203   : > { %4010 = vmatprep.subr.bf16.mxu1 %v4363_v53  ;;  %4119 = vmatpush3.bf16.msra.mxu0 %v4378_v15  ;;  %v2803_v15 = vld [vmem:[#allocation3 + $0xa0] sm:$0xff] }
 0x204   : > { %4136 = vmatprep.subr.bf16.mxu0 %v5049_v11 }
 0x206   : > { %4011 = vmatpush3.bf16.msra.mxu1 %v4363_v53  ;;  %4121 = vmatmul.mubr.bf16.vlgmr.msra.gmra.mxu0 %v4967_v6  ;;  %v2069_v53 = vld [vmem:[#allocation3 + $0x90] sm:$0xff] }
 0x207   : > { %4012 = vmatprep.subr.bf16.mxu1 %v4365_v9  ;;  %4137 = vmatpush3.bf16.msra.mxu0 %v5049_v11  ;;  %v2094_v0 = vpack.c.bf16 %v2070_v58, %v2069_v53  ;;  %v2544_v53 = vld [vmem:[#allocation3 + $0x57] sm:$0xff] }
 0x208   : > { %4138 = vmatprep.subr.bf16.mxu0 %v5058_v25  ;;  %4124 = vmatprep.mubr.bf16.mxu0 %v4974_v10 }
 0x209   : > { %3965 = vmatmul.mubr.msk.bf16.gmra.mxu1 %vm4926_vm0, %v5005_v48 }
 0x20a   : > { %4013 = vmatpush3.bf16.msra.mxu1 %v4365_v9  ;;  %3968 = vmatprep.mubr.msk.bf16.mxu1 %vm4952_vm11, %v5012_v5  ;;  %v4379_v9 = vld [vmem:[#allocation9 + $0x1b0] sm:$0xff]  }
 0x20b   : > { %4014 = vmatprep.subr.bf16.mxu1 %v4367_v18  ;;  %4139 = vmatpush3.bf16.msra.mxu0 %v5058_v25 }
 0x20c   : > { %4140 = vmatprep.subr.bf16.mxu0 %v5064_v31 }
 0x20e   : > { %4015 = vmatpush3.bf16.msra.mxu1 %v4367_v18  ;;  %4125 = vmatmul.mubr.bf16.gmra.mxu0 %v4998_v14  ;;  %v5093_v18 = vld [vmem:[#allocation9 + $0x208] sm:$0xff]  }
 0x20f   : > { %4016 = vmatprep.subr.bf16.mxu1 %v4369_v24  ;;  %4141 = vmatpush3.bf16.msra.mxu0 %v5064_v31 }
 0x210   : > { %4142 = vmatprep.subr.bf16.mxu0 %v5074_v39  ;;  %4128 = vmatprep.mubr.bf16.mxu0 %v5000_v47 }
 0x211   : > { %3969 = vmatmul.mubr.msk.bf16.gmra.mxu1 %vm4960_vm12, %v5019_v29 }
 0x212   : > { %4017 = vmatpush3.bf16.msra.mxu1 %v4369_v24  ;;  %3972 = vmatprep.mubr.msk.bf16.mxu1 %vm4982_vm14, %v5027_v43 }
 0x213   : > { %4018 = vmatprep.subr.bf16.mxu1 %v4371_v30  ;;  %4143 = vmatpush3.bf16.msra.mxu0 %v5074_v39 }
 0x214   : > { %4144 = vmatprep.subr.bf16.mxu0 %v5080_v49 }
 0x216   : > { %4019 = vmatpush3.bf16.msra.mxu1 %v4371_v30  ;;  %4129 = vmatmul.mubr.bf16.gmra.mxu0 %v5014_v23  ;;  %v4381_v30 = vld [vmem:[#allocation9 + $0x1a8] sm:$0xff]  }
 0x217   : > { %4020 = vmatprep.subr.bf16.mxu1 %v4373_v36  ;;  %4145 = vmatpush3.bf16.msra.mxu0 %v5080_v49 }
 0x218   : > { %4146 = vmatprep.subr.bf16.mxu0 %v5088_v59  ;;  %4132 = vmatprep.mubr.bf16.mxu0 %v2094_v0 }
 0x219   : > { %3973 = vmatmul.mubr.msk.bf16.gmra.mxu1 %vm4987_vm3, %v5032_v54 }
 0x21a   : > { %4021 = vmatpush3.bf16.msra.mxu1 %v4373_v36  ;;  %4024 = vmatprep.mubr.bf16.mxu1 %v4932_v32  ;;  %v2804_v32 = vld [vmem:[#allocation3 + $0xa8] sm:$0xff]  ;;  %v5099_v36 = vld [vmem:[#allocation9 + $0x200] sm:$0xff]  }
 0x21b   : > { %4022 = vmatprep.subr.bf16.mxu1 %v4375_v45  ;;  %v2828_v24 = vpack.c.bf16 %v2804_v32, %v2803_v15  ;;  %4147 = vmatpush3.bf16.msra.mxu0 %v5088_v59  ;;  %v2548_v15 = vld [vmem:[#allocation3 + $0x77] sm:$0xff] }
 0x21c   : > { %4148 = vmatprep.subr.bf16.mxu0 %v5093_v18 }
 0x21e   : > { %4023 = vmatpush3.bf16.msra.mxu1 %v4375_v45  ;;  %4133 = vmatmul.mubr.bf16.gmra.mxu0 %v2828_v24  ;;  %v4383_v45 = vld [vmem:[#allocation9 + $0x1a0] sm:$0xff]  }
 0x21f   : > { %4072 = vmatprep.subr.bf16.mxu1 %v4377_v52  ;;  %4149 = vmatpush3.bf16.msra.mxu0 %v5093_v18 }
 0x220   : > { %4150 = vmatprep.subr.bf16.mxu0 %v5099_v36  ;;  %4152 = vmatprep.mubr.msk.bf16.mxu0 %vm4970_vm4, %v4996_v34  ;;  %v2540_v34 = vld [vmem:[#allocation3 + $0x37] sm:$0xff] }
 0x221   : > { %4025 = vmatmul.mubr.bf16.vlgmr.msra.gmra.mxu1 %v4938_v40  ;;  %v4385_v40 = vld [vmem:[#allocation9 + $0x198] sm:$0xff]  }
 0x222   : > { %4073 = vmatpush3.bf16.msra.mxu1 %v4377_v52  ;;  %4028 = vmatprep.mubr.bf16.mxu1 %v4967_v6  ;;  %v4387_v6 = vld [vmem:[#allocation9 + $0x190] sm:$0xff]   ;;  %v4391_v52 = vld [vmem:[#allocation9 + $0x180] sm:$0xff]  }
 0x223   : > { %4074 = vmatprep.subr.bf16.mxu1 %v4379_v9  ;;  %4151 = vmatpush3.bf16.msra.mxu0 %v5099_v36 }
 0x226   : > { %4075 = vmatpush3.bf16.msra.mxu1 %v4379_v9  ;;  %4153 = vmatmul.mubr.msk.bf16.vlgmr.msra.gmra.mxu0 %vm4894_vm7, %v5005_v48  ;;  %v2542_v48 = vld [vmem:[#allocation3 + $0x47] sm:$0xff]  ;;  %v2547_v9 = vld [vmem:[#allocation3 + $0x6f] sm:$0xff] }
 0x227   : > { %4076 = vmatprep.subr.bf16.mxu1 %v4381_v30  ;;  %v3666_v58 = vpack.c.bf16 %v2542_v48, %v2541_v1  ;;  %v3675_v24 = vpack.c.bf16 %v2548_v15, %v2547_v9 }
 0x229   : > { %4029 = vmatmul.mubr.bf16.gmra.mxu1 %v4974_v10  ;;  %v2539_v10 = vld [vmem:[#allocation3 + $0x2f] sm:$0xff] }
 0x22a   : > { %4077 = vmatpush3.bf16.msra.mxu1 %v4381_v30  ;;  %4032 = vmatprep.mubr.bf16.mxu1 %v4998_v14  ;;  %v3663_v14 = vpack.c.bf16 %v2540_v34, %v2539_v10 }
 0x22b   : > { %4078 = vmatprep.subr.bf16.mxu1 %v4383_v45 }
 0x22e   : > { %4079 = vmatpush3.bf16.msra.mxu1 %v4383_v45 }
 0x22f   : > { %4080 = vmatprep.subr.bf16.mxu1 %v4385_v40 }
 0x231   : > { %4033 = vmatmul.mubr.bf16.gmra.mxu1 %v5000_v47  ;;  %v2543_v47 = vld [vmem:[#allocation3 + $0x4f] sm:$0xff] }
 0x232   : > { %4081 = vmatpush3.bf16.msra.mxu1 %v4385_v40  ;;  %4036 = vmatprep.mubr.bf16.mxu1 %v5014_v23  ;;  %v3669_v23 = vpack.c.bf16 %v2544_v53, %v2543_v47  ;;  %v5196_v40 = vld [vmem:[%s5558_s4] ss:$0 sm:$0xff] }
 0x233   : > { %4082 = vmatprep.subr.bf16.mxu1 %v4387_v6 }
 0x236   : > { %4083 = vmatpush3.bf16.msra.mxu1 %v4387_v6 }
 0x237   : > { %4084 = vmatprep.subr.bf16.mxu1 %v4389_v8 }
 0x239   : > { %4037 = vmatmul.mubr.bf16.gmra.mxu1 %v2094_v0  ;;  %v2546_v0 = vld [vmem:[#allocation3 + $0x67] sm:$0xff] }
 0x23a   : > { %4085 = vmatpush3.bf16.msra.mxu1 %v4389_v8  ;;  %4088 = vmatprep.mubr.msk.bf16.mxu1 %vm4822_vm6, %v3663_v14  ;;  %v3672_v32 = vpack.c.bf16 %v2546_v0, %v2545_v21  ;;  %vm5621_vm6 = vnez %v5591_v35  ;;  %v3037_v35 = vld [vmem:[#allocation3 + $0xa1] sm:$0xff] }
 0x23b   : > { %4086 = vmatprep.subr.bf16.mxu1 %v4391_v52 }
 0x23e   : > { %4087 = vmatpush3.bf16.msra.mxu1 %v4391_v52 }
 0x23f   : > { %4168 = vmatprep.subr.bf16.mxu1 %v5049_v11 }
 0x241   : > { %4089 = vmatmul.mubr.msk.bf16.vlgmr.msra.gmra.mxu1 %vm4835_vm9, %v3666_v58  ;;  %vm5622_vm9 = vnez %v5593_v42  ;;  %v3038_v42 = vld [vmem:[#allocation3 + $0xa9] sm:$0xff] }
 0x242   : > { %4176 = vmatpush3.bf16.msra.mxu1 %v5049_v11  ;;  %4092 = vmatprep.mubr.msk.bf16.mxu1 %vm4840_vm10, %v3669_v23  ;;  %v3678_v11 = vpack.c.bf16 %v2550_v62, %v2549_v55  ;;  %v3724_v4 = vpack.c.bf16 %v3038_v42, %v3037_v35 }
 0x243   : > { %4169 = vmatprep.subr.bf16.mxu1 %v5058_v25 }
 0x246   : > { %4177 = vmatpush3.bf16.msra.mxu1 %v5058_v25  ;;  %v3684_v25 = vpack.c.bf16 %v2554_v16, %v2553_v28 }
 0x247   : > { %4170 = vmatprep.subr.bf16.mxu1 %v5064_v31 }
 0x249   : > { %4093 = vmatmul.mubr.msk.bf16.gmra.mxu1 %vm4851_vm13, %v3672_v32 }
 0x24a   : > { %4178 = vmatpush3.bf16.msra.mxu1 %v5064_v31  ;;  %4096 = vmatprep.mubr.msk.bf16.mxu1 %vm5620_vm5, %v3675_v24 }
 0x24b   : > { %4171 = vmatprep.subr.bf16.mxu1 %v5074_v39 }
 0x24e   : > { %4179 = vmatpush3.bf16.msra.mxu1 %v5074_v39 }
 0x24f   : > { %4172 = vmatprep.subr.bf16.mxu1 %v5080_v49 }
 0x251   : > { %4097 = vmatmul.mubr.msk.bf16.gmra.mxu1 %vm5621_vm6, %v3678_v11 }
 0x252   : > { %4180 = vmatpush3.bf16.msra.mxu1 %v5080_v49  ;;  %4100 = vmatprep.mubr.msk.bf16.mxu1 %vm5622_vm9, %v4965_v63  ;;  %v5181_v49 = vld [vmem:[%s5559_s5] ss:$0 sm:$0xff] }
 0x253   : > { %4173 = vmatprep.subr.bf16.mxu1 %v5088_v59  ;;  %v712_v8 = vadd.f32 %v5181_v49, %v4767_v41  ;;  %v713_v47 = vadd.f32 %v5181_v49, %v4770_v46  ;;  %v718_v21 = vadd.f32 %v5181_v49, %v4785_v7  ;;  %v716_v32 = vadd.f32 %v5181_v49, %v4779_v61 }
 0x254   : > { %v719_v7 = vadd.f32 %v5181_v49, %v4788_v12  ;;  %v717_v61 = vadd.f32 %v5181_v49, %v4782_v2  ;;  %v722_v12 = vadd.f32 %v5181_v49, %v4797_v27  ;;  %v720_v2 = vadd.f32 %v5181_v49, %v4791_v17 }
 0x255   : > { %v735_v48 = vadd.f32 %v5196_v40, %v712_v8  ;;  %v736_v15 = vadd.f32 %v5196_v40, %v713_v47  ;;  %v741_v11 = vadd.f32 %v5196_v40, %v718_v21  ;;  %v739_v42 = vadd.f32 %v5196_v40, %v716_v32 }
 0x256   : > { %4181 = vmatpush3.bf16.msra.mxu1 %v5088_v59  ;;  %v745_v21 = vadd.f32 %v5196_v40, %v722_v12  ;;  %v723_v27 = vadd.f32 %v5181_v49, %v4800_v33  ;;  %v743_v17 = vadd.f32 %v5196_v40, %v720_v2  ;;  %v721_v32 = vadd.f32 %v5181_v49, %v4794_v22 }
 0x257   : > { %4174 = vmatprep.subr.bf16.mxu1 %v5093_v18  ;;  %v727_v12 = vadd.f32 %v5181_v49, %v4812_v57  ;;  %v725_v2 = vadd.f32 %v5181_v49, %v4806_v44 }
 0x258   : > { %v746_v33 = vadd.f32 %v5196_v40, %v723_v27  ;;  %v744_v22 = vadd.f32 %v5196_v40, %v721_v32 }
 0x259   : > { %4101 = vmatmul.mubr.msk.bf16.gmra.mxu1 %vm4902_vm8, %v3684_v25  ;;  %v750_v57 = vadd.f32 %v5196_v40, %v727_v12 }
 0x25a   : > { %4182 = vmatpush3.bf16.msra.mxu1 %v5093_v18  ;;  %4156 = vmatprep.mubr.msk.bf16.mxu1 %vm4919_vm15, %v5012_v5 }
 0x25b   : > { %4175 = vmatprep.subr.bf16.mxu1 %v5099_v36 }
 0x25e   : > { %4183 = vmatpush3.bf16.msra.mxu1 %v5099_v36  ;;  %v714_v36 = vadd.f32 %v5181_v49, %v4773_v51  ;;  %v715_v51 = vadd.f32 %v5181_v49, %v4776_v56 }
 0x260   : > { %v737_v14 = vadd.f32 %v5196_v40, %v714_v36  ;;  %v738_v23 = vadd.f32 %v5196_v40, %v715_v51  ;;  %v742_v36 = vadd.f32 %v5196_v40, %v719_v7  ;;  %v726_v7 = vadd.f32 %v5181_v49, %v4809_v50 }
 0x261   : > { %4157 = vmatmul.mubr.msk.bf16.vlgmr.msra.gmra.mxu1 %vm4926_vm0, %v5019_v29 }
 0x262   : > { %4160 = vmatprep.mubr.msk.bf16.mxu1 %vm4952_vm11, %v5027_v43  ;;  %v749_v50 = vadd.f32 %v5196_v40, %v726_v7 }
 0x269   : > { %4161 = vmatmul.mubr.msk.bf16.gmra.mxu1 %vm4960_vm12, %v5032_v54 }
 0x26a   : > { %4164 = vmatprep.mubr.msk.bf16.mxu1 %vm4982_vm14, %v5043_v3 }
 0x271   : > { %4165 = vmatmul.mubr.msk.bf16.gmra.mxu1 %vm4987_vm3, %v3724_v4 }
 0x281   : > { %v3898_v20 = vpop.f32.mrf.mxu1 }
 0x282   : > { %v1259_v58 = vadd.f32 %v3898_v20, %v737_v14 }
 0x283   : > { %v1194_v26 = vpop.f32.mrf.mxu1 }
 0x284   : > { %v1257_v9 = vadd.f32 %v1194_v26, %v735_v48  ;;  %v740_v48 = vadd.f32 %v5196_v40, %v717_v61  ;;  %v724_v61 = vadd.f32 %v5181_v49, %v4803_v38 }
 0x285   : > { %v3899_v63 = vpop.f32.mrf.mxu1 }
 0x286   : > { %v5164_v31 = vpop.f32.mrf.mxu0  ;;  %v1260_v62 = vadd.f32 %v3899_v63, %v738_v23  ;;  %v747_v38 = vadd.f32 %v5196_v40, %v724_v61 }
 0x287   : > { %v1197_v5 = vpop.f32.mrf.mxu1 }
 0x288   : > { %v5168_v54 = vpop.f32.mrf.mxu0  ;;  %v1258_v35 = vadd.f32 %v1197_v5, %v736_v15 }
 0x289   : > { %v3902_v37 = vpop.f32.mrf.mxu1 }
 0x28a   : > { %v5172_v3 = vpop.f32.mrf.mxu0  ;;  %v1263_v63 = vadd.f32 %v3902_v37, %v741_v11 }
 0x28b   : > { %v1210_v29 = vpop.f32.mrf.mxu1 }
 0x28c   : > { %v5176_v19 = vpop.f32.mrf.mxu0  ;;  %v1261_v51 = vadd.f32 %v1210_v29, %v739_v42 }
 0x28d   : > { %v3903_v43 = vpop.f32.mrf.mxu1 }
 0x28e   : > { %v5185_v18 = vpop.f32.mrf.mxu0  ;;  %v1264_v23 = vadd.f32 %v3903_v43, %v742_v36 }
 0x28f   : > { %v5166_v60 = vpop.f32.mrf.mxu1 }
 0x290   : > { %v5191_v45 = vpop.f32.mrf.mxu0  ;;  %v1262_v15 = vadd.f32 %v5166_v60, %v740_v48 }
 0x291   : > { %v5170_v13 = vpop.f32.mrf.mxu1 }
 0x292   : > { %v5202_v10 = vpop.f32.mrf.mxu0  ;;  %v1267_v11 = vadd.f32 %v5170_v13, %v745_v21 }
 0x293   : > { %v5174_v39 = vpop.f32.mrf.mxu1 }
 0x294   : > { %v5209_v52 = vpop.f32.mrf.mxu0  ;;  %v1265_v42 = vadd.f32 %v5174_v39, %v743_v17  ;;  %v748_v17 = vadd.f32 %v5196_v40, %v725_v2 }
 0x295   : > { %v5183_v59 = vpop.f32.mrf.mxu1 }
 0x296   : > { %v5216_v53 = vpop.f32.mrf.mxu0  ;;  %v1268_v36 = vadd.f32 %v5183_v59, %v746_v33 }
 0x297   : > { %v5187_v30 = vpop.f32.mrf.mxu1 }
 0x298   : > { %v5223_v56 = vpop.f32.mrf.mxu0  ;;  %v1266_v48 = vadd.f32 %v5187_v30, %v744_v22 }
 0x299   : > { %v5198_v6 = vpop.f32.mrf.mxu1 }
 0x29a   : > { %v5230_v24 = vpop.f32.mrf.mxu0  ;;  %v1271_v21 = vadd.f32 %v5198_v6, %v749_v50 }
 0x29b   : > { %v5204_v34 = vpop.f32.mrf.mxu1 }
 0x29c   : > { %v5237_v16 = vpop.f32.mrf.mxu0  ;;  %v1269_v30 = vadd.f32 %v5204_v34, %v747_v38 }
 0x29d   : > { %v5211_v1 = vpop.f32.mrf.mxu1 }
 0x29e   : > { %v5244_v20 = vpop.f32.mrf.mxu0  ;;  %v1272_v49 = vadd.f32 %v5211_v1, %v750_v57 }
 0x29f   : > { %v5218_v41 = vpop.f32.mrf.mxu1 }
 0x2a0   : > { %v5251_v14 = vpop.f32.mrf.mxu0  ;;  %v1270_v7 = vadd.f32 %v5218_v41, %v748_v17 }
 0x2a1   : > { %v3930_v0 = vpop.f32.mrf.mxu1 }
 0x2a2   : > { %v5228_v46 = vadd.f32 %v3930_v0, %v1259_v58  ;;  %v5258_v58 = vpop.f32.mrf.mxu0 }
 0x2a3   : > { %v1428_v55 = vpop.f32.mrf.mxu1 }
 0x2a4   : > { %v5235_v28 = vadd.f32 %v1428_v55, %v1257_v9  ;;  %v5265_v9 = vpop.f32.mrf.mxu0 }
 0x2a5   : > { %v3931_v25 = vpop.f32.mrf.mxu1 }
 0x2a6   : > { %v5242_v4 = vadd.f32 %v3931_v25, %v1260_v62  ;;  %v5273_v43 = vpop.f32.mrf.mxu0 }
 0x2a7   : > { %v1431_v26 = vpop.f32.mrf.mxu1 }
 0x2a8   : > { %v5249_v8 = vadd.f32 %v1431_v26, %v1258_v35  ;;  %v5281_v60 = vpop.f32.mrf.mxu0 }
 0x2a9   : > { %v3934_v5 = vpop.f32.mrf.mxu1 }
 0x2aa   : > { %v5256_v47 = vadd.f32 %v3934_v5, %v1263_v63  ;;  %v5289_v13 = vpop.f32.mrf.mxu0 }
 0x2ab   : > { %v1444_v37 = vpop.f32.mrf.mxu1 }
 0x2ac   : > { %v5263_v0 = vadd.f32 %v1444_v37, %v1261_v51  ;;  %v5297_v39 = vpop.f32.mrf.mxu0 }
 0x2ad   : > { %v3935_v29 = vpop.f32.mrf.mxu1 }
 0x2ae   : > { %v5271_v55 = vadd.f32 %v3935_v29, %v1264_v23  ;;  %v5305_v59 = vpop.f32.mrf.mxu0 }
 0x2af   : > { %v1447_v62 = vpop.f32.mrf.mxu1 }
 0x2b0   : > { %v5279_v25 = vadd.f32 %v1447_v62, %v1262_v15  ;;  %v5309_v29 = vpop.f32.mrf.mxu0 }
 0x2b1   : > { %v3938_v35 = vpop.f32.mrf.mxu1 }
 0x2b2   : > { %v5287_v26 = vadd.f32 %v3938_v35, %v1267_v11  ;;  %v5313_v62 = vpop.f32.mrf.mxu0 }
 0x2b3   : > { %v1460_v63 = vpop.f32.mrf.mxu1 }
 0x2b4   : > { %v5295_v5 = vadd.f32 %v1460_v63, %v1265_v42  ;;  %v5316_v33 = vpop.f32.mrf.mxu0 }
 0x2b5   : > { %v3939_v51 = vpop.f32.mrf.mxu1 }
 0x2b6   : > { %v5303_v37 = vadd.f32 %v3939_v51, %v1268_v36  ;;  %v5319_v42 = vpop.f32.mrf.mxu0 }
 0x2b7   : > { %v1463_v23 = vpop.f32.mrf.mxu1 }
 0x2b8   : > { %v1500_v27 = vadd.f32 %v1463_v23, %v1266_v48  ;;  %v5321_v34 = vpop.f32.mrf.mxu0 }
 0x2b9   : > { %v3942_v15 = vpop.f32.mrf.mxu1 }
 0x2ba   : > { %v1505_v32 = vadd.f32 %v3942_v15, %v1271_v21  ;;  %v5324_v36 = vpop.f32.mrf.mxu0 }
 0x2bb   : > { %v1476_v44 = vpop.f32.mrf.mxu1 }
 0x2bc   : > { %v1503_v11 = vadd.f32 %v1476_v44, %v1269_v30  ;;  %v5327_v12 = vpop.f32.mrf.mxu0 }
 0x2bd   : > { %v3943_v6 = vpop.f32.mrf.mxu1 }
 0x2be   : > { %v1506_v35 = vadd.f32 %v3943_v6, %v1272_v49  ;;  %v5333_v38 = vpop.f32.mrf.mxu0 }
 0x2bf   : > { %v1479_v22 = vpop.f32.mrf.mxu1 }
 0x2c0   : > { %v1504_v61 = vadd.f32 %v1479_v22, %v1270_v7  ;;  %v5339_v21 = vpop.f32.mrf.mxu0 }
 0x2c1   : > { %v3962_v40 = vpop.f32.mrf.mxu1 }
 0x2c2   : > { %v1775_v63 = vadd.f32 %v3962_v40, %v5228_v46  ;;  %v5345_v15 = vpop.f32.mrf.mxu0 }
 0x2c3   : > { %v1710_v50 = vpop.f32.mrf.mxu1 }
 0x2c4   : > { %v1773_v1 = vadd.f32 %v1710_v50, %v5235_v28  ;;  %v5330_v51 = vadd.f32 %v5164_v31, %v1775_v63  ;;  %v5351_v17 = vpop.f32.mrf.mxu0 }
 0x2c5   : > { %v3963_v41 = vpop.f32.mrf.mxu1 }
 0x2c6   : > { %v1776_v48 = vadd.f32 %v3963_v41, %v5242_v4  ;;  %v5336_v2 = vadd.f32 %v5168_v54, %v1773_v1 }
 0x2c7   : > { %v1713_v23 = vpop.f32.mrf.mxu1 }
 0x2c8   : > { %v1774_v46 = vadd.f32 %v1713_v23, %v5249_v8  ;;  %v5342_v28 = vadd.f32 %v5172_v3, %v1776_v48  ;;  %v5355_v3 = vpop.f32.mrf.mxu0 }
 0x2c9   : > { %v3966_v57 = vpop.f32.mrf.mxu1 }
 0x2ca   : > { %v1779_v31 = vadd.f32 %v3966_v57, %v5256_v47  ;;  %v5348_v4 = vadd.f32 %v5176_v19, %v1774_v46  ;;  %v5359_v22 = vpop.f32.mrf.mxu0 }
 0x2cb   : > { %v1726_v30 = vpop.f32.mrf.mxu1 }
 0x2cc   : > { %v1777_v54 = vadd.f32 %v1726_v30, %v5263_v0  ;;  %v2029_v8 = vadd.f32 %v5185_v18, %v1779_v31  ;;  %v5363_v63 = vpop.f32.mrf.mxu0 }
 0x2cd   : > { %v3967_v44 = vpop.f32.mrf.mxu1 }
 0x2ce   : > { %v1780_v49 = vadd.f32 %v3967_v44, %v5271_v55  ;;  %v2027_v6 = vadd.f32 %v5191_v45, %v1777_v54  ;;  %v5367_v1 = vpop.f32.mrf.mxu0 }
 0x2cf   : > { %v1729_v47 = vpop.f32.mrf.mxu1 }
 0x2d0   : > { %v1778_v7 = vadd.f32 %v1729_v47, %v5279_v25  ;;  %v2030_v19 = vadd.f32 %v5202_v10, %v1780_v49  ;;  %v5371_v48 = vpop.f32.mrf.mxu0 }
 0x2d1   : > { %v3970_v40 = vpop.f32.mrf.mxu1 }
 0x2d2   : > { %v1783_v0 = vadd.f32 %v3970_v40, %v5287_v26  ;;  %v2028_v18 = vadd.f32 %v5209_v52, %v1778_v7  ;;  %v5374_v46 = vpop.f32.mrf.mxu0 }
 0x2d3   : > { %v1742_v50 = vpop.f32.mrf.mxu1 }
 0x2d4   : > { %v1781_v55 = vadd.f32 %v1742_v50, %v5295_v5  ;;  %v2033_v45 = vadd.f32 %v5216_v53, %v1783_v0  ;;  %v5377_v5 = vpop.f32.mrf.mxu0 }
 0x2d5   : > { %v3971_v41 = vpop.f32.mrf.mxu1 }
 0x2d6   : > { %v1784_v25 = vadd.f32 %v3971_v41, %v5303_v37  ;;  %v2031_v10 = vadd.f32 %v5223_v56, %v1781_v55  ;;  %v5380_v44 = vpop.f32.mrf.mxu0 }
 0x2d7   : > { %v1745_v23 = vpop.f32.mrf.mxu1 }
 0x2d8   : > { %v1782_v26 = vadd.f32 %v1745_v23, %v1500_v27  ;;  %v2034_v52 = vadd.f32 %v5230_v24, %v1784_v25  ;;  %v5383_v47 = vpop.f32.mrf.mxu0 }
 0x2d9   : > { %v3974_v57 = vpop.f32.mrf.mxu1 }
 0x2da   : > { %v1787_v31 = vadd.f32 %v3974_v57, %v1505_v32  ;;  %v2032_v30 = vadd.f32 %v5237_v16, %v1782_v26  ;;  %v5387_v0 = vpop.f32.mrf.mxu0 }
 0x2db   : > { %v1758_v53 = vpop.f32.mrf.mxu1 }
 0x2dc   : > { %v1785_v54 = vadd.f32 %v1758_v53, %v1503_v11  ;;  %v2037_v37 = vadd.f32 %v5244_v20, %v1787_v31  ;;  %v5390_v55 = vpop.f32.mrf.mxu0 }
 0x2dd   : > { %v3975_v49 = vpop.f32.mrf.mxu1 }
 0x2de   : > { %v1788_v56 = vadd.f32 %v3975_v49, %v1506_v35  ;;  %v2035_v27 = vadd.f32 %v5251_v14, %v1785_v54  ;;  %v5392_v25 = vpop.f32.mrf.mxu0 }
 0x2df   : > { %v1761_v7 = vpop.f32.mrf.mxu1 }
 0x2e0   : > { %v1786_v24 = vadd.f32 %v1761_v7, %v1504_v61  ;;  %v2038_v32 = vadd.f32 %v5258_v58, %v1788_v56  ;;  %v5397_v57 = vpop.f32.mrf.mxu0 }
 0x2e1   : > { %v4026_v40 = vpop.f32.mrf.mxu1 }
 0x2e2   : > { %v2036_v16 = vadd.f32 %v5265_v9, %v1786_v24  ;;  %v5405_v56 = vpop.f32.mrf.mxu0 }
 0x2e3   : > { %v2194_v11 = vpop.f32.mrf.mxu1 }
 0x2e5   : > { %v4027_v50 = vpop.f32.mrf.mxu1 }
 0x2e7   : > { %v2197_v20 = vpop.f32.mrf.mxu1 }
 0x2e9   : > { %v4030_v41 = vpop.f32.mrf.mxu1 }
 0x2ea   : > { %v2263_v35 = vadd.f32 %v4030_v41, %v2029_v8  ;;  %v5413_v41 = vpop.f32.mrf.mxu0 }
 0x2eb   : > { %v2210_v23 = vpop.f32.mrf.mxu1 }
 0x2ec   : > { %v2261_v14 = vadd.f32 %v2210_v23, %v2027_v6  ;;  %v5395_v61 = vadd.f32 %v5305_v59, %v2263_v35 }
 0x2ed   : > { %v4031_v58 = vpop.f32.mrf.mxu1 }
 0x2ee   : > { %v2264_v26 = vadd.f32 %v4031_v58, %v2030_v19  ;;  %v5400_v9 = vadd.f32 %v5309_v29, %v2261_v14  ;;  %v5421_v14 = vpop.f32.mrf.mxu0 }
 0x2ef   : > { %v2213_v31 = vpop.f32.mrf.mxu1 }
 0x2f0   : > { %v2262_v53 = vadd.f32 %v2213_v31, %v2028_v18  ;;  %v5403_v54 = vadd.f32 %v5313_v62, %v2264_v26 }
 0x2f1   : > { %v4034_v8 = vpop.f32.mrf.mxu1 }
 0x2f2   : > { %v2267_v49 = vadd.f32 %v4034_v8, %v2033_v45  ;;  %v5408_v6 = vadd.f32 %v5316_v33, %v2262_v53  ;;  %v2260_v8 = vadd.f32 %v4027_v50, %v5342_v28 }
 0x2f3   : > { %v2226_v59 = vpop.f32.mrf.mxu1 }
 0x2f4   : > { %v2265_v7 = vadd.f32 %v2226_v59, %v2031_v10  ;;  %v5411_v19 = vadd.f32 %v5319_v42, %v2267_v49  ;;  %v2510_v28 = vadd.f32 %v5289_v13, %v2260_v8 }
 0x2f5   : > { %v4035_v24 = vpop.f32.mrf.mxu1 }
 0x2f6   : > { %v2268_v29 = vadd.f32 %v4035_v24, %v2034_v52  ;;  %v5416_v18 = vadd.f32 %v5321_v34, %v2265_v7  ;;  %v2259_v52 = vadd.f32 %v4026_v40, %v5330_v51 }
 0x2f7   : > { %v2229_v62 = vpop.f32.mrf.mxu1 }
 0x2f8   : > { %v2266_v35 = vadd.f32 %v2229_v62, %v2032_v30  ;;  %v5419_v45 = vadd.f32 %v5324_v36, %v2268_v29  ;;  %v2257_v30 = vadd.f32 %v2194_v11, %v5336_v2  ;;  %v4154_v36 = vpop.f32.mrf.mxu0  ;;  %v2509_v49 = vadd.f32 %v5273_v43, %v2259_v52 }
 0x2f9   : > { %v4038_v23 = vpop.f32.mrf.mxu1 }
 0x2fa   : > { %v2271_v33 = vadd.f32 %v4038_v23, %v2037_v37  ;;  %v5424_v10 = vadd.f32 %v5327_v12, %v2266_v35  ;;  %v2507_v2 = vadd.f32 %v5281_v60, %v2257_v30 }
 0x2fb   : > { %v2242_v42 = vpop.f32.mrf.mxu1 }
 0x2fc   : > { %v2269_v58 = vadd.f32 %v2242_v42, %v2035_v27  ;;  %v5428_v26 = vadd.f32 %v5333_v38, %v2271_v33  ;;  %v2258_v38 = vadd.f32 %v2197_v20, %v5348_v4 }
 0x2fd   : > { %v4039_v34 = vpop.f32.mrf.mxu1 }
 0x2fe   : > { %v2272_v31 = vadd.f32 %v4039_v34, %v2038_v32  ;;  %v5432_v53 = vadd.f32 %v5339_v21, %v2269_v58  ;;  %v3178_v32 = vpop.f32.mrf.mxu0  ;;  %v2508_v7 = vadd.f32 %v5297_v39, %v2258_v38 }
 0x2ff   : > { %v2245_v37 = vpop.f32.mrf.mxu1 }
 0x300   : > { %v2270_v12 = vadd.f32 %v2245_v37, %v2036_v16  ;;  %v5437_v51 = vadd.f32 %v5345_v15, %v2272_v31  ;;  %v4155_v20 = vpop.f32.mrf.mxu0 }
 0x301   : > { %v4090_v27 = vpop.f32.mrf.mxu1 }
 0x302   : > { %v2759_v40 = vadd.f32 %v4090_v27, %v2509_v49  ;;  %v5442_v11 = vadd.f32 %v5351_v17, %v2270_v12  ;;  %v3181_v23 = vpop.f32.mrf.mxu0 }
 0x303   : > { %v2694_v21 = vpop.f32.mrf.mxu1 }
 0x304   : > { %v2757_v59 = vadd.f32 %v2694_v21, %v2507_v2  ;;  %v2993_v16 = vadd.f32 %v5355_v3, %v2759_v40 }
 0x305   : > { %v4091_v43 = vpop.f32.mrf.mxu1 }
 0x306   : > { %v2760_v50 = vadd.f32 %v4091_v43, %v2510_v28  ;;  %v3243_v15 = vadd.f32 %v4154_v36, %v2993_v16  ;;  %v2991_v4 = vadd.f32 %v5359_v22, %v2757_v59 }
 0x307   : > { %v2697_v60 = vpop.f32.mrf.mxu1 }
 0x308   : > { %vm3291_vm10 = vcmp.ge.f32.partialorder %v3243_v15, 0.0  ;;  %v3307_v17 = vmul.f32 0.1, %v3243_v15  ;;  %v2758_v24 = vadd.f32 %v2697_v60, %v2508_v7  ;;  %v3241_v29 = vadd.f32 %v3178_v32, %v2991_v4 }
 0x309   : > { %v4094_v62 = vpop.f32.mrf.mxu1  ;;  %v2994_v13 = vadd.f32 %v5363_v63, %v2760_v50 }
 0x30a   : > { %v3323_v35 = vsel %vm3291_vm10, %v3243_v15, %v3307_v17  ;;  %vm3289_vm13 = vcmp.ge.f32.partialorder %v3241_v29, 0.0  ;;  %v3305_v3 = vmul.f32 0.1, %v3241_v29  ;;  %v2992_v22 = vadd.f32 %v5367_v1, %v2758_v24 }
 0x30b   : > { %3339 = vst [vmem:[%s4757_s1 + $0x10] sm:$0xff] %v3323_v35  ;;  %v3244_v33 = vadd.f32 %v4155_v20, %v2994_v13  ;;  %v2710_v39 = vpop.f32.mrf.mxu1  ;;  %v2763_v1 = vadd.f32 %v4094_v62, %v5395_v61 }
 0x30c   : > { %v3321_v42 = vsel %vm3289_vm13, %v3241_v29, %v3305_v3  ;;  %v3242_v58 = vadd.f32 %v3181_v23, %v2992_v22  ;;  %v2761_v2 = vadd.f32 %v2710_v39, %v5400_v9 }
 0x30d   : > { %3337 = vst [vmem:[%s4757_s1] sm:$0xff] %v3321_v42  ;;  %vm3292_vm14 = vcmp.ge.f32.partialorder %v3244_v33, 0.0  ;;  %v3308_v52 = vmul.f32 0.1, %v3244_v33  ;;  %v4095_v34 = vpop.f32.mrf.mxu1  ;;  %v2997_v59 = vadd.f32 %v5371_v48, %v2763_v1 }
 0x30e   : > { %vm3290_vm1 = vcmp.ge.f32.partialorder %v3242_v58, 0.0  ;;  %v3306_v63 = vmul.f32 0.1, %v3242_v58  ;;  %v2764_v21 = vadd.f32 %v4095_v34, %v5403_v54  ;;  %v2995_v50 = vadd.f32 %v5374_v46, %v2761_v2 }
 0x30f   : > { %v3324_v30 = vsel %vm3292_vm14, %v3244_v33, %v3308_v52  ;;  %v2713_v31 = vpop.f32.mrf.mxu1 }
 0x310   : > { %3340 = vst [vmem:[%s4757_s1 + $0x18] sm:$0xff] %v3324_v30  ;;  %v3322_v36 = vsel %vm3290_vm1, %v3242_v58, %v3306_v63  ;;  %v2762_v28 = vadd.f32 %v2713_v31, %v5408_v6  ;;  %v2998_v9 = vadd.f32 %v5377_v5, %v2764_v21 }
 0x311   : > { %v4098_v37 = vpop.f32.mrf.mxu1  ;;  %3338 = vst [vmem:[%s4757_s1 + $0x8] sm:$0xff] %v3322_v36 }
 0x312   : > { %v2767_v15 = vadd.f32 %v4098_v37, %v5411_v19  ;;  %v2996_v48 = vadd.f32 %v5380_v44, %v2762_v28 }
 0x313   : > { %v2726_v8 = vpop.f32.mrf.mxu1 }
 0x314   : > { %v2765_v20 = vadd.f32 %v2726_v8, %v5416_v18  ;;  %v3001_v24 = vadd.f32 %v5383_v47, %v2767_v15 }
 0x315   : > { %v4099_v12 = vpop.f32.mrf.mxu1 }
 0x316   : > { %v2768_v46 = vadd.f32 %v4099_v12, %v5419_v45  ;;  %v2999_v13 = vadd.f32 %v5387_v0, %v2765_v20 }
 0x317   : > { %v2729_v49 = vpop.f32.mrf.mxu1 }
 0x318   : > { %v2766_v18 = vadd.f32 %v2729_v49, %v5424_v10  ;;  %v3002_v33 = vadd.f32 %v5390_v55, %v2768_v46 }
 0x319   : > { %v4102_v27 = vpop.f32.mrf.mxu1 }
 0x31a   : > { %v2771_v23 = vadd.f32 %v4102_v27, %v5428_v26  ;;  %v3000_v52 = vadd.f32 %v5392_v25, %v2766_v18 }
 0x31b   : > { %v2742_v38 = vpop.f32.mrf.mxu1 }
 0x31c   : > { %v2769_v42 = vadd.f32 %v2742_v38, %v5432_v53  ;;  %v3005_v63 = vadd.f32 %v5397_v57, %v2771_v23 }
 0x31d   : > { %v4103_v40 = vpop.f32.mrf.mxu1 }
 0x31e   : > { %v2772_v30 = vadd.f32 %v4103_v40, %v5437_v51  ;;  %v3003_v8 = vadd.f32 %v5405_v56, %v2769_v42 }
 0x31f   : > { %v2745_v32 = vpop.f32.mrf.mxu1 }
 0x320   : > { %v2770_v37 = vadd.f32 %v2745_v32, %v5442_v11  ;;  %v3006_v27 = vadd.f32 %v5413_v41, %v2772_v30 }
 0x321   : > { %v4158_v16 = vpop.f32.mrf.mxu1 }
 0x322   : > { %v3247_v43 = vadd.f32 %v4158_v16, %v2997_v59  ;;  %v3004_v40 = vadd.f32 %v5421_v14, %v2770_v37 }
 0x323   : > { %v3194_v7 = vpop.f32.mrf.mxu1 }
 0x324   : > { %vm3295_vm2 = vcmp.ge.f32.partialorder %v3247_v43, 0.0  ;;  %v3311_v61 = vmul.f32 0.1, %v3247_v43  ;;  %v3245_v4 = vadd.f32 %v3194_v7, %v2995_v50 }
 0x325   : > { %v4159_v54 = vpop.f32.mrf.mxu1 }
 0x326   : > { %v3327_v6 = vsel %vm3295_vm2, %v3247_v43, %v3311_v61  ;;  %vm3293_vm7 = vcmp.ge.f32.partialorder %v3245_v4, 0.0  ;;  %v3309_v60 = vmul.f32 0.1, %v3245_v4  ;;  %v3248_v17 = vadd.f32 %v4159_v54, %v2998_v9 }
 0x327   : > { %3343 = vst [vmem:[%s4757_s1 + $0x30] sm:$0xff] %v3327_v6  ;;  %v3197_v19 = vpop.f32.mrf.mxu1 }
 0x328   : > { %v3325_v29 = vsel %vm3293_vm7, %v3245_v4, %v3309_v60  ;;  %vm3296_vm8 = vcmp.ge.f32.partialorder %v3248_v17, 0.0  ;;  %v3312_v5 = vmul.f32 0.1, %v3248_v17  ;;  %v3246_v62 = vadd.f32 %v3197_v19, %v2996_v48 }
 0x329   : > { %3341 = vst [vmem:[%s4757_s1 + $0x20] sm:$0xff] %v3325_v29  ;;  %v4162_v44 = vpop.f32.mrf.mxu1 }
 0x32a   : > { %v3328_v35 = vsel %vm3296_vm8, %v3248_v17, %v3312_v5  ;;  %vm3294_vm15 = vcmp.ge.f32.partialorder %v3246_v62, 0.0  ;;  %v3310_v3 = vmul.f32 0.1, %v3246_v62  ;;  %v3251_v45 = vadd.f32 %v4162_v44, %v3001_v24 }
 0x32b   : > { %3344 = vst [vmem:[%s4757_s1 + $0x38] sm:$0xff] %v3328_v35  ;;  %v3210_v47 = vpop.f32.mrf.mxu1 }
 0x32c   : > { %v3326_v39 = vsel %vm3294_vm15, %v3246_v62, %v3310_v3  ;;  %vm3299_vm0 = vcmp.ge.f32.partialorder %v3251_v45, 0.0  ;;  %v3315_v22 = vmul.f32 0.1, %v3251_v45  ;;  %v3249_v10 = vadd.f32 %v3210_v47, %v2999_v13 }
 0x32d   : > { %3342 = vst [vmem:[%s4757_s1 + $0x28] sm:$0xff] %v3326_v39  ;;  %v4163_v0 = vpop.f32.mrf.mxu1 }
 0x32e   : > { %v3331_v58 = vsel %vm3299_vm0, %v3251_v45, %v3315_v22  ;;  %vm3297_vm11 = vcmp.ge.f32.partialorder %v3249_v10, 0.0  ;;  %v3313_v26 = vmul.f32 0.1, %v3249_v10  ;;  %v3252_v34 = vadd.f32 %v4163_v0, %v3002_v33 }
 0x32f   : > { %3347 = vst [vmem:[%s4757_s1 + $0x50] sm:$0xff] %v3331_v58  ;;  %v3213_v55 = vpop.f32.mrf.mxu1 }
 0x330   : > { %v3329_v31 = vsel %vm3297_vm11, %v3249_v10, %v3313_v26  ;;  %vm3300_vm12 = vcmp.ge.f32.partialorder %v3252_v34, 0.0  ;;  %v3316_v53 = vmul.f32 0.1, %v3252_v34  ;;  %v3250_v36 = vadd.f32 %v3213_v55, %v3000_v52 }
 0x331   : > { %3345 = vst [vmem:[%s4757_s1 + $0x40] sm:$0xff] %v3329_v31  ;;  %v4166_v25 = vpop.f32.mrf.mxu1 }
 0x332   : > { %v3332_v12 = vsel %vm3300_vm12, %v3252_v34, %v3316_v53  ;;  %vm3298_vm4 = vcmp.ge.f32.partialorder %v3250_v36, 0.0  ;;  %v3314_v51 = vmul.f32 0.1, %v3250_v36  ;;  %v3255_v49 = vadd.f32 %v4166_v25, %v3005_v63 }
 0x333   : > { %3348 = vst [vmem:[%s4757_s1 + $0x58] sm:$0xff] %v3332_v12  ;;  %v3226_v57 = vpop.f32.mrf.mxu1 }
 0x334   : > { %v3330_v38 = vsel %vm3298_vm4, %v3250_v36, %v3314_v51  ;;  %vm3303_vm3 = vcmp.ge.f32.partialorder %v3255_v49, 0.0  ;;  %v3319_v11 = vmul.f32 0.1, %v3255_v49  ;;  %v3253_v1 = vadd.f32 %v3226_v57, %v3003_v8 }
 0x335   : > { %3346 = vst [vmem:[%s4757_s1 + $0x48] sm:$0xff] %v3330_v38  ;;  %v4167_v56 = vpop.f32.mrf.mxu1 }
 0x336   : > { %v3335_v2 = vsel %vm3303_vm3, %v3255_v49, %v3319_v11  ;;  %vm3301_vm5 = vcmp.ge.f32.partialorder %v3253_v1, 0.0  ;;  %v3317_v32 = vmul.f32 0.1, %v3253_v1  ;;  %v3256_v21 = vadd.f32 %v4167_v56, %v3006_v27 }
 0x337   : > { %3351 = vst [vmem:[%s4757_s1 + $0x70] sm:$0xff] %v3335_v2  ;;  %v3229_v41 = vpop.f32.mrf.mxu1 }
 0x338   : > { %v3333_v59 = vsel %vm3301_vm5, %v3253_v1, %v3317_v32  ;;  %vm3304_vm6 = vcmp.ge.f32.partialorder %v3256_v21, 0.0  ;;  %v3320_v28 = vmul.f32 0.1, %v3256_v21  ;;  %v3254_v16 = vadd.f32 %v3229_v41, %v3004_v40 }
 0x339   : > { %3349 = vst [vmem:[%s4757_s1 + $0x60] sm:$0xff] %v3333_v59 }
 0x33a   : > { %v3336_v43 = vsel %vm3304_vm6, %v3256_v21, %v3320_v28  ;;  %vm3302_vm9 = vcmp.ge.f32.partialorder %v3254_v16, 0.0  ;;  %v3318_v14 = vmul.f32 0.1, %v3254_v16 }
 0x33b   : > { %3352 = vst [vmem:[%s4757_s1 + $0x78] sm:$0xff] %v3336_v43 }
 0x33c   : > { %v3334_v50 = vsel %vm3302_vm9, %v3254_v16, %v3318_v14 }
 0x33d   : > { %3350 = vst [vmem:[%s4757_s1 + $0x68] sm:$0xff] %v3334_v50 }
 0x33e   : > { %4481 = shalt.err (!%p4478_p4)
}
 0x33f   : > { %s4482_s1 = scalar_lea.hbm %s5495_s16, 2048  ;;  %s4486_s30 = scalar_lea.hbm %s5560_s6, 8192 }
 0x340   : > { %p4483_p5 = scmp.ne.s32.totalorder %s5495_s16, %s4482_s1  ;;  %p4487_p9 = scmp.lt.s32.totalorder %s5495_s16, %s5560_s6 }
 0x341   : > { %p4488_p8 = scmp.lt.s32.totalorder %s4486_s30, %s4482_s1 }
 0x342   : > { %p4484_p6 = pnand %p4483_p5, %p4674_p3 }
 0x343   : > { %p4489_p10 = por %p4488_p8, %p4487_p9 }
 0x344   : > { %p4485_p7 = pneg %p4484_p6 }
 0x346   : > { %p4490_p12 = pnand %p4489_p10, %p4485_p7 }
 0x348   : > { %4493 = shalt.err (!%p4490_p12)
}
 0x349   : > { %s4585_s14 = smov 128   ;;  %s4586_s25 = smov 8  }
 0x34a   : > { %4192 = dma.vmem_to_hbm [thread:$0]  (%p4674_p3), %s5497_s18, 2048, %s5495_s16, %s5503_s10, %s4585_s14, %s4585_s14, %s4586_s25  }
 0x34b PF: > { %p4209_p0 = scmp.ge.s32.totalorder %s4570_s28, 2  ;;  %s3385_s24 = sand.u32 1, %s4542_s21  }
 0x34c   : > { %p5624_p1 = scmp.ne.s32.totalorder %s5574_s12, 0  ;;  %s3386_s8 = scalar_lea.sflag [#allocation8], %s3385_s24 }
 0x34e   : > { %p4202_p11 = pnand %p4209_p0, %p5624_p1 }
 0x350   : > { %p4203_p13 = pneg %p4202_p11 }
 0x352   : > { %4537 = dma.done.wait (%p4203_p13), %s3386_s8, 2048  }
 0x353   : > { %4539 = vsyncadd (%p4203_p13), %s3386_s8, 4294965248  ;;  %s21_s28 = sadd.s32 1, %s4570_s28   ;;  %s5625_s25 = sld [smem:[#allocation20_spill]] }
 0x354   : > { %p18_p2 = scmp.ge.s32.totalorder %s21_s28, 6   ;;  %s5626_s11 = sld [smem:[#allocation21_spill]] }
 0x355   : > { %s5627_s27 = sld [smem:[#allocation22_spill]]  ;;  %s5628_s21 = smov %s4546_s22 }
 0x356   : > { %s5629_s22 = smov %s4550_s23  ;;  %s5630_s23 = smov %s4701_s17 }
 0x357   : > { %s5631_s24 = smov %s4562_s26  ;;  %20 = sbr.rel (!%p18_p2) target bundleno = 10 (0xa), region = 106 }
 0x35a   : > { %s5632_s26 = smov %s5626_s11 }
 0x35c   :  { %3391 = vsyncpa [#allocation7], 1 }
 0x35d   :  { %3393 = vsyncpa [#allocation7 + $0x1], 1 }
 0x35e   :  { %3394 = vsyncpa [#allocation10], 1 }
 0x35f   :  { %3395 = vsyncpa [#allocation8], 1 }
 0x360   :  { %3397 = vsyncpa [#allocation8 + $0x1], 1 }
 0x361   :  { %3398 = vsyncmov [#allocation5] }
 0x364   :  { %s3399_s12 = vpop.sfrf %3398 }
 0x365   :  { %p3733_p3 = scmp.ne.s32.totalorder %s3399_s12, 0 }
 0x367   :  { %3403 = shalt.err (%p3733_p3)  }

</bundles_post_ra>
